<compile_context>
chip_gen: v7x
topology: tpu7x:2x2x1
jax: 0.10.0
libtpu: 0.0.40
codegen_flags: <defaults>
</compile_context>

<pallas_src>
import jax
import jax.numpy as jnp
from jax import lax
from jax.experimental import pallas as pl
from jax.experimental.pallas import tpu as pltpu

_FW = 8           # per-branch feature width inside the fused TCN (max Cout = 8)
_FW2 = 2 * _FW    # fused width: cols [0:8) = max branch, [8:16) = avg branch


def _sigmoid(z):
    # exp + reciprocal run on the EUP slot; overflow of exp(-z) still yields a
    # correct 0.0 through the reciprocal.
    return pl.reciprocal(1.0 + jnp.exp(-z), approx=True)


# --------------------------------------------------------------------------
# Fused TSAM kernel factory
# --------------------------------------------------------------------------
def _make_tsam_kernel(C, H, W, bpb, plan):
    HW = H * W
    BC = bpb * C          # batch-stacked TCN sequence rows
    N = bpb * HW          # batch-stacked spatial lanes

    def kernel(x_ref, w_ref, b_ref, wsp_ref, o_ref):
        x2 = x_ref[...]                                       # (BC, HW) f32

        # ---------------- global max / avg pool (per (b, c)) ----------------
        mx = jnp.max(x2, axis=-1, keepdims=True)              # (BC, 1)
        av = jnp.mean(x2, axis=-1, keepdims=True)             # (BC, 1)
        zpad = jnp.zeros((BC, _FW - 1), jnp.float32)
        h = jnp.concatenate([mx, zpad, av, zpad], axis=-1)    # (BC, 16)

        # per-row "time" index inside each batch segment (causal masking when
        # several batch elements share the TCN row axis)
        if bpb > 1:
            tvec = lax.broadcasted_iota(jnp.int32, (C, 1), 0)
            row_t = jnp.concatenate([tvec] * bpb, axis=0)     # (BC, 1)
        mask_cache = {}

        def shift_rows(a, s):
            # a[t - s, :], zero for t < s, independently per batch segment
            out = jnp.concatenate(
                [jnp.zeros((s, a.shape[1]), a.dtype), a[:BC - s, :]], axis=0)
            if bpb > 1:
                if s not in mask_cache:
                    mask_cache[s] = row_t >= s
                out = jnp.where(mask_cache[s], out, jnp.zeros_like(out))
            return out

        def causal_taps(hc, K, d):
            # Conv1d(padding=(K-1)*d, dilation=d) + Chomp1d im2col taps
            if K == 1:
                return hc
            parts = []
            for k in range(K):
                s = (K - 1 - k) * d
                parts.append(hc if s == 0 else shift_rows(hc, s))
            return jnp.concatenate(parts, axis=-1)            # (BC, K*16)

        def mm(a, w_bf16):
            return lax.dot_general(a.astype(jnp.bfloat16), w_bf16,
                                   (((1,), (0,)), ((), ())),
                                   preferred_element_type=jnp.float32)

        # ---------------- fused (max ⊕ avg) TCN stacks ----------------
        for meta in plan:
            K, d = meta['K'], meta['d']
            o1, r1 = meta['w1']
            o2, r2 = meta['w2']
            w1 = w_ref[o1:o1 + r1, :]                         # (K*16, 16) bf16
            w2 = w_ref[o2:o2 + r2, :]
            b1 = b_ref[meta['b1']:meta['b1'] + 1, :]          # (1, 16) f32
            b2 = b_ref[meta['b2']:meta['b2'] + 1, :]
            h1 = jnp.maximum(mm(causal_taps(h, K, d), w1) + b1, 0.0)
            h2 = jnp.maximum(mm(causal_taps(h1, K, d), w2) + b2, 0.0)
            if meta['has_down']:
                od, rd = meta['wd']
                res = mm(h, w_ref[od:od + rd, :]) + \
                    b_ref[meta['bd']:meta['bd'] + 1, :]
            else:
                res = h
            h = jnp.maximum(h2 + res, 0.0)                    # (BC, 16)

        # ---------------- channel attention ----------------
        att = _sigmoid(h[:, 0:1] + h[:, _FW:_FW + 1])         # (BC, 1)
        x1 = x2 * att                                         # (BC, HW)

        # ---------------- spatial attention: 7x7 conv (pad 3) ----------------
        # channel max/mean maps per batch element, stacked batch-along-lanes
        mx_rows, av_rows = [], []
        for b in range(bpb):
            seg = x1[b * C:(b + 1) * C, :]
            mx_rows.append(jnp.max(seg, axis=0, keepdims=True))
            av_rows.append(jnp.mean(seg, axis=0, keepdims=True))
        sp_mx = mx_rows[0] if bpb == 1 else jnp.concatenate(mx_rows, axis=-1)
        sp_av = av_rows[0] if bpb == 1 else jnp.concatenate(av_rows, axis=-1)
        sp2 = jnp.concatenate([sp_mx, sp_av], axis=0)         # (2, N) [max; avg]

        lane = lax.broadcasted_iota(jnp.int32, (1, N), 1)
        if (W & (W - 1)) == 0:
            col = lane & (W - 1)
            q = lane >> (W.bit_length() - 1)
        else:
            col = lane % W
            q = lane // W
        row_img = (q & (H - 1)) if (H & (H - 1)) == 0 else (q % H)

        def shift_lanes(a, delta):
            # out[:, p] = a[:, p + delta] (zero outside)
            if delta == 0:
                return a
            r = a.shape[0]
            if delta > 0:
                pad = jnp.zeros((r, delta), a.dtype)
                return jnp.concatenate([a[:, delta:], pad], axis=-1)
            pad = jnp.zeros((r, -delta), a.dtype)
            return jnp.concatenate([pad, a[:, :N + delta]], axis=-1)

        # horizontal taps hoisted out of the ky loop: (14, N), row = kx*2 + cin
        hrows = []
        for kx in range(7):
            ox = kx - 3
            t = shift_lanes(sp2, ox)
            if ox != 0:
                ok = jnp.logical_and(col + ox >= 0, col + ox < W)
                t = jnp.where(ok, t, jnp.zeros_like(t))
            hrows.append(t)
        hslab = jnp.concatenate(hrows, axis=0)                # (14, N)

        # vertical shifts of the whole slab -> one im2col slab (98, N),
        # row index = ky*14 + kx*2 + cin
        vparts = []
        for ky in range(7):
            oy = ky - 3
            t = shift_lanes(hslab, oy * W)
            if oy != 0:
                ok = jnp.logical_and(row_img + oy >= 0, row_img + oy < H)
                t = jnp.where(ok, t, jnp.zeros_like(t))
            vparts.append(t)
        slab = jnp.concatenate(vparts, axis=0)                # (98, N)

        # single (1, 98) @ (98, N) matmul instead of 7 M=1 matmuls
        logits = lax.dot_general(wsp_ref[...], slab,
                                 (((1,), (0,)), ((), ())),
                                 preferred_element_type=jnp.float32)  # (1, N)
        sp = _sigmoid(logits)

        # ---------------- final multiply, lane-dense stores ----------------
        for b in range(bpb):
            o_ref[b * C:(b + 1) * C, :] = (
                x1[b * C:(b + 1) * C, :] * sp[:, b * HW:(b + 1) * HW])

    return kernel


# --------------------------------------------------------------------------
# Wrapper: one pallas_call, whole batch per grid step by default
# --------------------------------------------------------------------------
def tsam_forward(x, params, batch_per_step=None):
    """Fused TSAM forward.

    batch_per_step=None processes the whole batch in a single grid step (best
    on single-TensorCore v5e/v6e).  On v7x pass batch_per_step=B//2 so both
    TensorCores get a "parallel" grid step.
    """
    B, C, H, W = x.shape
    HW = H * W
    bpb = B if batch_per_step is None else batch_per_step
    assert B % bpb == 0
    assert bpb == B or (bpb * C) % 8 == 0, "sub-batch blocks need 8-row rows"
    # NOTE: keep H*W a multiple of 128 so all big loads/stores stay unmasked
    # full-lane accesses; pad spatial dims upstream otherwise.

    kernel = _make_tsam_kernel(C, H, W, bpb, params['plan'])
    x2d = x.reshape(B * C, HW)

    out = pl.pallas_call(
        kernel,
        out_shape=jax.ShapeDtypeStruct((B * C, HW), jnp.float32),
        grid=(B // bpb,),
        in_specs=[
            pl.BlockSpec((bpb * C, HW), lambda i: (i, 0)),
            pl.BlockSpec(params['w_slab'].shape, lambda i: (0, 0)),
            pl.BlockSpec(params['b_slab'].shape, lambda i: (0, 0)),
            pl.BlockSpec(params['w_spatial'].shape, lambda i: (0, 0)),
        ],
        out_specs=pl.BlockSpec((bpb * C, HW), lambda i: (i, 0)),
        compiler_params=pltpu.CompilerParams(
            dimension_semantics=("parallel",)),
    )(x2d, params['w_slab'], params['b_slab'], params['w_spatial'])
    return out.reshape(B, C, H, W)


# --------------------------------------------------------------------------
# Deterministic parameter construction + offline packing
# --------------------------------------------------------------------------
def init_tsam_params(key, channels):
    """Shapes follow the PyTorch __init__: conv weights ~ N(0, 0.01)
    (TemporalBlock.init_weights), biases ~ torch's default U(+-1/sqrt(fan_in)).
    weight_norm only reparameterizes the effective weight, so effective
    weights are sampled directly."""
    ks = channels // 12
    assert ks >= 1, "TSAM needs channels >= 12 (TCN kernel_size = channels//12)"

    w_chunks, b_chunks, plan, raw_blocks = [], [], [], []
    w_off = 0

    def add_w(Wf):
        nonlocal w_off
        off = w_off
        w_chunks.append(Wf)
        w_off += Wf.shape[0]
        return off, Wf.shape[0]

    def add_b(bf):
        b_chunks.append(bf)
        return len(b_chunks) - 1

    def fuse_w(wm, wa, K, cin, cout):
        # per-branch (K*cin, cout) -> block-diagonal fused (K*16, 16):
        # row k*16 + branch*8 + ci multiplies the tap column of the same index
        # and writes output column branch*8 + co.
        Wf = jnp.zeros((K * _FW2, _FW2), jnp.float32)
        for k in range(K):
            Wf = Wf.at[k * _FW2:k * _FW2 + cin, 0:cout].set(
                wm[k * cin:(k + 1) * cin])
            Wf = Wf.at[k * _FW2 + _FW:k * _FW2 + _FW + cin,
                       _FW:_FW + cout].set(wa[k * cin:(k + 1) * cin])
        return Wf

    def fuse_b(bm, ba, cout):
        return (jnp.zeros((1, _FW2), jnp.float32)
                .at[0, 0:cout].set(bm).at[0, _FW:_FW + cout].set(ba))

    def conv_init(k, K, cin, cout):
        kw, kb = jax.random.split(k)
        w = jax.random.normal(kw, (K * cin, cout), jnp.float32) * 0.01
        bound = 1.0 / float(cin * K) ** 0.5
        b = jax.random.uniform(kb, (cout,), jnp.float32, -bound, bound)
        return w, b

    cfgs = [(1, (8, 8, 8), ks), (8, (8, 8, 8), ks), (8, (1, 1), 1)]
    for nin, chans, K in cfgs:
        cin = nin
        for i, cout in enumerate(chans):
            d = 2 ** i
            key, k1, k2, k3, k4, k5, k6 = jax.random.split(key, 7)
            w1m, b1m = conv_init(k1, K, cin, cout)
            w2m, b2m = conv_init(k2, K, cout, cout)
            w1a, b1a = conv_init(k3, K, cin, cout)
            w2a, b2a = conv_init(k4, K, cout, cout)
            has_down = (cin != cout)
            meta = dict(K=K, d=d, has_down=has_down,
                        w1=add_w(fuse_w(w1m, w1a, K, cin, cout)),
                        b1=add_b(fuse_b(b1m, b1a, cout)),
                        w2=add_w(fuse_w(w2m, w2a, K, cout, cout)),
                        b2=add_b(fuse_b(b2m, b2a, cout)))
            raw = dict(K=K, d=d,
                       max=dict(w1=w1m, b1=b1m, w2=w2m, b2=b2m),
                       avg=dict(w1=w1a, b1=b1a, w2=w2a, b2=b2a))
            if has_down:
                wdm, bdm = conv_init(k5, 1, cin, cout)
                wda, bda = conv_init(k6, 1, cin, cout)
                meta['wd'] = add_w(fuse_w(wdm, wda, 1, cin, cout))
                meta['bd'] = add_b(fuse_b(bdm, bda, cout))
                raw['max'].update(wd=wdm, bd=bdm)
                raw['avg'].update(wd=wda, bd=bda)
            plan.append(meta)
            raw_blocks.append(raw)
            cin = cout

    key, ksp = jax.random.split(key)
    bound = 1.0 / float(2 * 7 * 7) ** 0.5
    w_sp4 = jax.random.uniform(ksp, (2, 7, 7), jnp.float32, -bound, bound)
    # flat order ky*14 + kx*2 + cin matches the kernel's im2col row order
    w_spatial = jnp.transpose(w_sp4, (1, 2, 0)).reshape(1, 98)

    return dict(
        plan=plan,
        w_slab=jnp.concatenate(w_chunks, axis=0).astype(jnp.bfloat16),
        b_slab=jnp.concatenate(b_chunks, axis=0),      # f32 biases
        w_spatial=w_spatial,                           # f32, (1, 98)
        raw=dict(blocks=raw_blocks, w_spatial=w_sp4),  # for the reference only
    )


# --------------------------------------------------------------------------
# Plain-JAX (f32, unfused) reference, used only for testing
# --------------------------------------------------------------------------
def _ref_causal_conv(h, w, b, K, d):
    L, cin = h.shape
    parts = []
    for k in range(K):
        s = (K - 1 - k) * d
        parts.append(h if s == 0 else jnp.concatenate(
            [jnp.zeros((s, cin), h.dtype), h[:L - s]], axis=0))
    return jnp.concatenate(parts, axis=-1) @ w + b


def _ref_temporal_block(h, p, K, d):
    h1 = jax.nn.relu(_ref_causal_conv(h, p['w1'], p['b1'], K, d))
    h2 = jax.nn.relu(_ref_causal_conv(h1, p['w2'], p['b2'], K, d))
    res = (h @ p['wd'] + p['bd']) if 'wd' in p else h
    return jax.nn.relu(h2 + res)


def tsam_reference(x, raw):
    B, C, H, W = x.shape
    HW = H * W
    outs = []
    for b in range(B):
        xb = x[b].reshape(C, HW)
        hm = jnp.max(xb, axis=-1, keepdims=True)
        ha = jnp.mean(xb, axis=-1, keepdims=True)
        for blk in raw['blocks']:
            hm = _ref_temporal_block(hm, blk['max'], blk['K'], blk['d'])
            ha = _ref_temporal_block(ha, blk['avg'], blk['K'], blk['d'])
        att = jax.nn.sigmoid(hm + ha)                          # (C, 1)
        x1 = xb * att
        img = x1.reshape(C, H, W)
        maps = jnp.stack([jnp.max(img, axis=0), jnp.mean(img, axis=0)], axis=0)
        pad = jnp.pad(maps, ((0, 0), (3, 3), (3, 3)))
        logit = jnp.zeros((H, W), jnp.float32)
        for cin in range(2):
            for ky in range(7):
                for kx in range(7):
                    logit = logit + raw['w_spatial'][cin, ky, kx] * \
                        pad[cin, ky:ky + H, kx:kx + W]
        sp = jax.nn.sigmoid(logit).reshape(1, HW)
        outs.append(x1 * sp)
    return jnp.stack(outs, axis=0).reshape(B, C, H, W)


# --------------------------------------------------------------------------
if __name__ == "__main__":
    key = jax.random.PRNGKey(0)
    kx, kp = jax.random.split(key)

    B, C, H, W = 2, 24, 16, 16            # channels=24 -> TCN kernel_size = 2
    x = jax.random.normal(kx, (B, C, H, W), jnp.float32)
    params = init_tsam_params(kp, C)

    fwd = jax.jit(lambda inp: tsam_forward(inp, params))
    out = fwd(x)
    jax.block_until_ready(out)

    assert out.shape == (B, C, H, W)
    assert bool(jnp.all(jnp.isfinite(out)))

    # correctness vs. plain-JAX f32 reference (tolerance absorbs the bf16 TCN
    # matmuls and the approximate-reciprocal sigmoids)
    ref = tsam_reference(x, params['raw'])
    max_err = float(jnp.max(jnp.abs(out - ref)))
    assert bool(jnp.allclose(out, ref, rtol=2e-2, atol=2e-2)), max_err

    print("KERNEL_OK")
</pallas_src>

<mosaic_0001>
module attributes {stable_mosaic.version = 11 : i64} {
  func.func @kernel(%arg0: i32, %arg1: memref<48x256xf32, #tpu.memory_space<vmem>>, %arg2: memref<480x16xbf16, #tpu.memory_space<vmem>>, %arg3: memref<18x16xf32, #tpu.memory_space<vmem>>, %arg4: memref<1x98xf32, #tpu.memory_space<vmem>>, %arg5: memref<48x256xf32, #tpu.memory_space<vmem>>) attributes {dimension_semantics = [#tpu.dimension_semantics<parallel>], iteration_bounds = array<i64: 1>, scalar_prefetch = 0 : i64, scratch_operands = 0 : i64, tpu.core_type = #tpu.core_type<tc>, window_params = [{transform_indices = @transform_0, window_bounds = array<i64: 48, 256>}, {pipeline_mode = #tpu.pipeline_mode<synchronous>, transform_indices = @transform_1, window_bounds = array<i64: 480, 16>}, {pipeline_mode = #tpu.pipeline_mode<synchronous>, transform_indices = @transform_2, window_bounds = array<i64: 18, 16>}, {pipeline_mode = #tpu.pipeline_mode<synchronous>, transform_indices = @transform_3, window_bounds = array<i64: 1, 98>}, {transform_indices = @transform_4, window_bounds = array<i64: 48, 256>}]} {
    %c0 = arith.constant 0 : index
    %c0_0 = arith.constant 0 : index
    %0 = vector.load %arg1[%c0, %c0_0] : memref<48x256xf32, #tpu.memory_space<vmem>>, vector<48x256xf32>
    %cst = arith.constant dense<0xFF800000> : vector<48xf32>
    %1 = vector.multi_reduction <maximumf>, %0, %cst [1] : vector<48x256xf32> to vector<48xf32>
    %2 = vector.shape_cast %1 : vector<48xf32> to vector<48x1xf32>
    %cst_1 = arith.constant dense<0.000000e+00> : vector<48xf32>
    %3 = vector.multi_reduction <add>, %0, %cst_1 [1] : vector<48x256xf32> to vector<48xf32>
    %4 = vector.shape_cast %3 : vector<48xf32> to vector<48x1xf32>
    %cst_2 = arith.constant 2.560000e+02 : f32
    %5 = vector.broadcast %cst_2 : f32 to vector<48x1xf32>
    %6 = arith.divf %4, %5 : vector<48x1xf32>
    %cst_3 = arith.constant 0.000000e+00 : f32
    %7 = vector.broadcast %cst_3 : f32 to vector<48x7xf32>
    %8 = tpu.concatenate %2, %7, %6, %7 in 1 : vector<48x1xf32>, vector<48x7xf32>, vector<48x1xf32>, vector<48x7xf32> -> vector<48x16xf32>
    %9 = tpu.iota {dimensions = array<i32: 0>} : vector<24x1xi32>
    %10 = tpu.concatenate %9, %9 in 0 : vector<24x1xi32>, vector<24x1xi32> -> vector<48x1xi32>
    %c0_4 = arith.constant 0 : index
    %c0_5 = arith.constant 0 : index
    %11 = vector.load %arg2[%c0_4, %c0_5] : memref<480x16xbf16, #tpu.memory_space<vmem>>, vector<32x16xbf16>
    %c32 = arith.constant 32 : index
    %c0_6 = arith.constant 0 : index
    %12 = vector.load %arg2[%c32, %c0_6] : memref<480x16xbf16, #tpu.memory_space<vmem>>, vector<32x16xbf16>
    %c0_7 = arith.constant 0 : index
    %c0_8 = arith.constant 0 : index
    %13 = vector.load %arg3[%c0_7, %c0_8] : memref<18x16xf32, #tpu.memory_space<vmem>>, vector<1x16xf32>
    %c1 = arith.constant 1 : index
    %c0_9 = arith.constant 0 : index
    %14 = vector.load %arg3[%c1, %c0_9] : memref<18x16xf32, #tpu.memory_space<vmem>>, vector<1x16xf32>
    %cst_10 = arith.constant 0.000000e+00 : f32
    %15 = vector.broadcast %cst_10 : f32 to vector<1x16xf32>
    %16 = vector.extract_strided_slice %8 {offsets = [0, 0], sizes = [47, 16], strides = [1, 1]} : vector<48x16xf32> to vector<47x16xf32>
    %17 = tpu.concatenate %15, %16 in 0 : vector<1x16xf32>, vector<47x16xf32> -> vector<48x16xf32>
    %c1_i32 = arith.constant 1 : i32
    %18 = vector.broadcast %c1_i32 : i32 to vector<48x1xi32>
    %19 = arith.cmpi sge, %10, %18 : vector<48x1xi32>
    %cst_11 = arith.constant 0.000000e+00 : f32
    %20 = vector.broadcast %cst_11 : f32 to vector<48x16xf32>
    %21 = vector.shape_cast %19 : vector<48x1xi1> to vector<48x1xi1>
    %22 = vector.broadcast %21 : vector<48x1xi1> to vector<48x16xi1>
    %23 = arith.select %22, %17, %20 : vector<48x16xi1>, vector<48x16xf32>
    %24 = tpu.concatenate %23, %8 in 1 : vector<48x16xf32>, vector<48x16xf32> -> vector<48x32xf32>
    %25 = arith.truncf %24 : vector<48x32xf32> to vector<48x32xbf16>
    %cst_12 = arith.constant dense<0.000000e+00> : vector<48x16xf32>
    %26 = tpu.matmul %25, %11, %cst_12 {dimension_numbers = #tpu.dot_dimension_numbers<[1], [0], [0], [1], [0, 0, 1, 1], [], []>} : vector<48x32xbf16>, vector<32x16xbf16>, vector<48x16xf32> -> vector<48x16xf32>
    %27 = vector.broadcast %13 : vector<1x16xf32> to vector<48x16xf32>
    %28 = arith.addf %26, %27 : vector<48x16xf32>
    %cst_13 = arith.constant 0.000000e+00 : f32
    %29 = vector.broadcast %cst_13 : f32 to vector<48x16xf32>
    %30 = arith.maximumf %28, %29 : vector<48x16xf32>
    %cst_14 = arith.constant 0.000000e+00 : f32
    %31 = vector.broadcast %cst_14 : f32 to vector<1x16xf32>
    %32 = vector.extract_strided_slice %30 {offsets = [0, 0], sizes = [47, 16], strides = [1, 1]} : vector<48x16xf32> to vector<47x16xf32>
    %33 = tpu.concatenate %31, %32 in 0 : vector<1x16xf32>, vector<47x16xf32> -> vector<48x16xf32>
    %cst_15 = arith.constant 0.000000e+00 : f32
    %34 = vector.broadcast %cst_15 : f32 to vector<48x16xf32>
    %35 = vector.shape_cast %19 : vector<48x1xi1> to vector<48x1xi1>
    %36 = vector.broadcast %35 : vector<48x1xi1> to vector<48x16xi1>
    %37 = arith.select %36, %33, %34 : vector<48x16xi1>, vector<48x16xf32>
    %38 = tpu.concatenate %37, %30 in 1 : vector<48x16xf32>, vector<48x16xf32> -> vector<48x32xf32>
    %39 = arith.truncf %38 : vector<48x32xf32> to vector<48x32xbf16>
    %cst_16 = arith.constant dense<0.000000e+00> : vector<48x16xf32>
    %40 = tpu.matmul %39, %12, %cst_16 {dimension_numbers = #tpu.dot_dimension_numbers<[1], [0], [0], [1], [0, 0, 1, 1], [], []>} : vector<48x32xbf16>, vector<32x16xbf16>, vector<48x16xf32> -> vector<48x16xf32>
    %41 = vector.broadcast %14 : vector<1x16xf32> to vector<48x16xf32>
    %42 = arith.addf %40, %41 : vector<48x16xf32>
    %cst_17 = arith.constant 0.000000e+00 : f32
    %43 = vector.broadcast %cst_17 : f32 to vector<48x16xf32>
    %44 = arith.maximumf %42, %43 : vector<48x16xf32>
    %c64 = arith.constant 64 : index
    %c0_18 = arith.constant 0 : index
    %45 = vector.load %arg2[%c64, %c0_18] : memref<480x16xbf16, #tpu.memory_space<vmem>>, vector<16x16xbf16>
    %46 = arith.truncf %8 : vector<48x16xf32> to vector<48x16xbf16>
    %cst_19 = arith.constant dense<0.000000e+00> : vector<48x16xf32>
    %47 = tpu.matmul %46, %45, %cst_19 {dimension_numbers = #tpu.dot_dimension_numbers<[1], [0], [0], [1], [0, 0, 1, 1], [], []>} : vector<48x16xbf16>, vector<16x16xbf16>, vector<48x16xf32> -> vector<48x16xf32>
    %c2 = arith.constant 2 : index
    %c0_20 = arith.constant 0 : index
    %48 = vector.load %arg3[%c2, %c0_20] : memref<18x16xf32, #tpu.memory_space<vmem>>, vector<1x16xf32>
    %49 = vector.broadcast %48 : vector<1x16xf32> to vector<48x16xf32>
    %50 = arith.addf %47, %49 : vector<48x16xf32>
    %51 = arith.addf %44, %50 : vector<48x16xf32>
    %cst_21 = arith.constant 0.000000e+00 : f32
    %52 = vector.broadcast %cst_21 : f32 to vector<48x16xf32>
    %53 = arith.maximumf %51, %52 : vector<48x16xf32>
    %c80 = arith.constant 80 : index
    %c0_22 = arith.constant 0 : index
    %54 = vector.load %arg2[%c80, %c0_22] : memref<480x16xbf16, #tpu.memory_space<vmem>>, vector<32x16xbf16>
    %c112 = arith.constant 112 : index
    %c0_23 = arith.constant 0 : index
    %55 = vector.load %arg2[%c112, %c0_23] : memref<480x16xbf16, #tpu.memory_space<vmem>>, vector<32x16xbf16>
    %c3 = arith.constant 3 : index
    %c0_24 = arith.constant 0 : index
    %56 = vector.load %arg3[%c3, %c0_24] : memref<18x16xf32, #tpu.memory_space<vmem>>, vector<1x16xf32>
    %c4 = arith.constant 4 : index
    %c0_25 = arith.constant 0 : index
    %57 = vector.load %arg3[%c4, %c0_25] : memref<18x16xf32, #tpu.memory_space<vmem>>, vector<1x16xf32>
    %cst_26 = arith.constant 0.000000e+00 : f32
    %58 = vector.broadcast %cst_26 : f32 to vector<2x16xf32>
    %59 = vector.extract_strided_slice %53 {offsets = [0, 0], sizes = [46, 16], strides = [1, 1]} : vector<48x16xf32> to vector<46x16xf32>
    %60 = tpu.concatenate %58, %59 in 0 : vector<2x16xf32>, vector<46x16xf32> -> vector<48x16xf32>
    %c2_i32 = arith.constant 2 : i32
    %61 = vector.broadcast %c2_i32 : i32 to vector<48x1xi32>
    %62 = arith.cmpi sge, %10, %61 : vector<48x1xi32>
    %cst_27 = arith.constant 0.000000e+00 : f32
    %63 = vector.broadcast %cst_27 : f32 to vector<48x16xf32>
    %64 = vector.shape_cast %62 : vector<48x1xi1> to vector<48x1xi1>
    %65 = vector.broadcast %64 : vector<48x1xi1> to vector<48x16xi1>
    %66 = arith.select %65, %60, %63 : vector<48x16xi1>, vector<48x16xf32>
    %67 = tpu.concatenate %66, %53 in 1 : vector<48x16xf32>, vector<48x16xf32> -> vector<48x32xf32>
    %68 = arith.truncf %67 : vector<48x32xf32> to vector<48x32xbf16>
    %cst_28 = arith.constant dense<0.000000e+00> : vector<48x16xf32>
    %69 = tpu.matmul %68, %54, %cst_28 {dimension_numbers = #tpu.dot_dimension_numbers<[1], [0], [0], [1], [0, 0, 1, 1], [], []>} : vector<48x32xbf16>, vector<32x16xbf16>, vector<48x16xf32> -> vector<48x16xf32>
    %70 = vector.broadcast %56 : vector<1x16xf32> to vector<48x16xf32>
    %71 = arith.addf %69, %70 : vector<48x16xf32>
    %cst_29 = arith.constant 0.000000e+00 : f32
    %72 = vector.broadcast %cst_29 : f32 to vector<48x16xf32>
    %73 = arith.maximumf %71, %72 : vector<48x16xf32>
    %cst_30 = arith.constant 0.000000e+00 : f32
    %74 = vector.broadcast %cst_30 : f32 to vector<2x16xf32>
    %75 = vector.extract_strided_slice %73 {offsets = [0, 0], sizes = [46, 16], strides = [1, 1]} : vector<48x16xf32> to vector<46x16xf32>
    %76 = tpu.concatenate %74, %75 in 0 : vector<2x16xf32>, vector<46x16xf32> -> vector<48x16xf32>
    %cst_31 = arith.constant 0.000000e+00 : f32
    %77 = vector.broadcast %cst_31 : f32 to vector<48x16xf32>
    %78 = vector.shape_cast %62 : vector<48x1xi1> to vector<48x1xi1>
    %79 = vector.broadcast %78 : vector<48x1xi1> to vector<48x16xi1>
    %80 = arith.select %79, %76, %77 : vector<48x16xi1>, vector<48x16xf32>
    %81 = tpu.concatenate %80, %73 in 1 : vector<48x16xf32>, vector<48x16xf32> -> vector<48x32xf32>
    %82 = arith.truncf %81 : vector<48x32xf32> to vector<48x32xbf16>
    %cst_32 = arith.constant dense<0.000000e+00> : vector<48x16xf32>
    %83 = tpu.matmul %82, %55, %cst_32 {dimension_numbers = #tpu.dot_dimension_numbers<[1], [0], [0], [1], [0, 0, 1, 1], [], []>} : vector<48x32xbf16>, vector<32x16xbf16>, vector<48x16xf32> -> vector<48x16xf32>
    %84 = vector.broadcast %57 : vector<1x16xf32> to vector<48x16xf32>
    %85 = arith.addf %83, %84 : vector<48x16xf32>
    %cst_33 = arith.constant 0.000000e+00 : f32
    %86 = vector.broadcast %cst_33 : f32 to vector<48x16xf32>
    %87 = arith.maximumf %85, %86 : vector<48x16xf32>
    %88 = arith.addf %87, %53 : vector<48x16xf32>
    %cst_34 = arith.constant 0.000000e+00 : f32
    %89 = vector.broadcast %cst_34 : f32 to vector<48x16xf32>
    %90 = arith.maximumf %88, %89 : vector<48x16xf32>
    %c144 = arith.constant 144 : index
    %c0_35 = arith.constant 0 : index
    %91 = vector.load %arg2[%c144, %c0_35] : memref<480x16xbf16, #tpu.memory_space<vmem>>, vector<32x16xbf16>
    %c176 = arith.constant 176 : index
    %c0_36 = arith.constant 0 : index
    %92 = vector.load %arg2[%c176, %c0_36] : memref<480x16xbf16, #tpu.memory_space<vmem>>, vector<32x16xbf16>
    %c5 = arith.constant 5 : index
    %c0_37 = arith.constant 0 : index
    %93 = vector.load %arg3[%c5, %c0_37] : memref<18x16xf32, #tpu.memory_space<vmem>>, vector<1x16xf32>
    %c6 = arith.constant 6 : index
    %c0_38 = arith.constant 0 : index
    %94 = vector.load %arg3[%c6, %c0_38] : memref<18x16xf32, #tpu.memory_space<vmem>>, vector<1x16xf32>
    %cst_39 = arith.constant 0.000000e+00 : f32
    %95 = vector.broadcast %cst_39 : f32 to vector<4x16xf32>
    %96 = vector.extract_strided_slice %90 {offsets = [0, 0], sizes = [44, 16], strides = [1, 1]} : vector<48x16xf32> to vector<44x16xf32>
    %97 = tpu.concatenate %95, %96 in 0 : vector<4x16xf32>, vector<44x16xf32> -> vector<48x16xf32>
    %c4_i32 = arith.constant 4 : i32
    %98 = vector.broadcast %c4_i32 : i32 to vector<48x1xi32>
    %99 = arith.cmpi sge, %10, %98 : vector<48x1xi32>
    %cst_40 = arith.constant 0.000000e+00 : f32
    %100 = vector.broadcast %cst_40 : f32 to vector<48x16xf32>
    %101 = vector.shape_cast %99 : vector<48x1xi1> to vector<48x1xi1>
    %102 = vector.broadcast %101 : vector<48x1xi1> to vector<48x16xi1>
    %103 = arith.select %102, %97, %100 : vector<48x16xi1>, vector<48x16xf32>
    %104 = tpu.concatenate %103, %90 in 1 : vector<48x16xf32>, vector<48x16xf32> -> vector<48x32xf32>
    %105 = arith.truncf %104 : vector<48x32xf32> to vector<48x32xbf16>
    %cst_41 = arith.constant dense<0.000000e+00> : vector<48x16xf32>
    %106 = tpu.matmul %105, %91, %cst_41 {dimension_numbers = #tpu.dot_dimension_numbers<[1], [0], [0], [1], [0, 0, 1, 1], [], []>} : vector<48x32xbf16>, vector<32x16xbf16>, vector<48x16xf32> -> vector<48x16xf32>
    %107 = vector.broadcast %93 : vector<1x16xf32> to vector<48x16xf32>
    %108 = arith.addf %106, %107 : vector<48x16xf32>
    %cst_42 = arith.constant 0.000000e+00 : f32
    %109 = vector.broadcast %cst_42 : f32 to vector<48x16xf32>
    %110 = arith.maximumf %108, %109 : vector<48x16xf32>
    %cst_43 = arith.constant 0.000000e+00 : f32
    %111 = vector.broadcast %cst_43 : f32 to vector<4x16xf32>
    %112 = vector.extract_strided_slice %110 {offsets = [0, 0], sizes = [44, 16], strides = [1, 1]} : vector<48x16xf32> to vector<44x16xf32>
    %113 = tpu.concatenate %111, %112 in 0 : vector<4x16xf32>, vector<44x16xf32> -> vector<48x16xf32>
    %cst_44 = arith.constant 0.000000e+00 : f32
    %114 = vector.broadcast %cst_44 : f32 to vector<48x16xf32>
    %115 = vector.shape_cast %99 : vector<48x1xi1> to vector<48x1xi1>
    %116 = vector.broadcast %115 : vector<48x1xi1> to vector<48x16xi1>
    %117 = arith.select %116, %113, %114 : vector<48x16xi1>, vector<48x16xf32>
    %118 = tpu.concatenate %117, %110 in 1 : vector<48x16xf32>, vector<48x16xf32> -> vector<48x32xf32>
    %119 = arith.truncf %118 : vector<48x32xf32> to vector<48x32xbf16>
    %cst_45 = arith.constant dense<0.000000e+00> : vector<48x16xf32>
    %120 = tpu.matmul %119, %92, %cst_45 {dimension_numbers = #tpu.dot_dimension_numbers<[1], [0], [0], [1], [0, 0, 1, 1], [], []>} : vector<48x32xbf16>, vector<32x16xbf16>, vector<48x16xf32> -> vector<48x16xf32>
    %121 = vector.broadcast %94 : vector<1x16xf32> to vector<48x16xf32>
    %122 = arith.addf %120, %121 : vector<48x16xf32>
    %cst_46 = arith.constant 0.000000e+00 : f32
    %123 = vector.broadcast %cst_46 : f32 to vector<48x16xf32>
    %124 = arith.maximumf %122, %123 : vector<48x16xf32>
    %125 = arith.addf %124, %90 : vector<48x16xf32>
    %cst_47 = arith.constant 0.000000e+00 : f32
    %126 = vector.broadcast %cst_47 : f32 to vector<48x16xf32>
    %127 = arith.maximumf %125, %126 : vector<48x16xf32>
    %c208 = arith.constant 208 : index
    %c0_48 = arith.constant 0 : index
    %128 = vector.load %arg2[%c208, %c0_48] : memref<480x16xbf16, #tpu.memory_space<vmem>>, vector<32x16xbf16>
    %c240 = arith.constant 240 : index
    %c0_49 = arith.constant 0 : index
    %129 = vector.load %arg2[%c240, %c0_49] : memref<480x16xbf16, #tpu.memory_space<vmem>>, vector<32x16xbf16>
    %c7 = arith.constant 7 : index
    %c0_50 = arith.constant 0 : index
    %130 = vector.load %arg3[%c7, %c0_50] : memref<18x16xf32, #tpu.memory_space<vmem>>, vector<1x16xf32>
    %c8 = arith.constant 8 : index
    %c0_51 = arith.constant 0 : index
    %131 = vector.load %arg3[%c8, %c0_51] : memref<18x16xf32, #tpu.memory_space<vmem>>, vector<1x16xf32>
    %cst_52 = arith.constant 0.000000e+00 : f32
    %132 = vector.broadcast %cst_52 : f32 to vector<1x16xf32>
    %133 = vector.extract_strided_slice %127 {offsets = [0, 0], sizes = [47, 16], strides = [1, 1]} : vector<48x16xf32> to vector<47x16xf32>
    %134 = tpu.concatenate %132, %133 in 0 : vector<1x16xf32>, vector<47x16xf32> -> vector<48x16xf32>
    %cst_53 = arith.constant 0.000000e+00 : f32
    %135 = vector.broadcast %cst_53 : f32 to vector<48x16xf32>
    %136 = vector.shape_cast %19 : vector<48x1xi1> to vector<48x1xi1>
    %137 = vector.broadcast %136 : vector<48x1xi1> to vector<48x16xi1>
    %138 = arith.select %137, %134, %135 : vector<48x16xi1>, vector<48x16xf32>
    %139 = tpu.concatenate %138, %127 in 1 : vector<48x16xf32>, vector<48x16xf32> -> vector<48x32xf32>
    %140 = arith.truncf %139 : vector<48x32xf32> to vector<48x32xbf16>
    %cst_54 = arith.constant dense<0.000000e+00> : vector<48x16xf32>
    %141 = tpu.matmul %140, %128, %cst_54 {dimension_numbers = #tpu.dot_dimension_numbers<[1], [0], [0], [1], [0, 0, 1, 1], [], []>} : vector<48x32xbf16>, vector<32x16xbf16>, vector<48x16xf32> -> vector<48x16xf32>
    %142 = vector.broadcast %130 : vector<1x16xf32> to vector<48x16xf32>
    %143 = arith.addf %141, %142 : vector<48x16xf32>
    %cst_55 = arith.constant 0.000000e+00 : f32
    %144 = vector.broadcast %cst_55 : f32 to vector<48x16xf32>
    %145 = arith.maximumf %143, %144 : vector<48x16xf32>
    %cst_56 = arith.constant 0.000000e+00 : f32
    %146 = vector.broadcast %cst_56 : f32 to vector<1x16xf32>
    %147 = vector.extract_strided_slice %145 {offsets = [0, 0], sizes = [47, 16], strides = [1, 1]} : vector<48x16xf32> to vector<47x16xf32>
    %148 = tpu.concatenate %146, %147 in 0 : vector<1x16xf32>, vector<47x16xf32> -> vector<48x16xf32>
    %cst_57 = arith.constant 0.000000e+00 : f32
    %149 = vector.broadcast %cst_57 : f32 to vector<48x16xf32>
    %150 = vector.shape_cast %19 : vector<48x1xi1> to vector<48x1xi1>
    %151 = vector.broadcast %150 : vector<48x1xi1> to vector<48x16xi1>
    %152 = arith.select %151, %148, %149 : vector<48x16xi1>, vector<48x16xf32>
    %153 = tpu.concatenate %152, %145 in 1 : vector<48x16xf32>, vector<48x16xf32> -> vector<48x32xf32>
    %154 = arith.truncf %153 : vector<48x32xf32> to vector<48x32xbf16>
    %cst_58 = arith.constant dense<0.000000e+00> : vector<48x16xf32>
    %155 = tpu.matmul %154, %129, %cst_58 {dimension_numbers = #tpu.dot_dimension_numbers<[1], [0], [0], [1], [0, 0, 1, 1], [], []>} : vector<48x32xbf16>, vector<32x16xbf16>, vector<48x16xf32> -> vector<48x16xf32>
    %156 = vector.broadcast %131 : vector<1x16xf32> to vector<48x16xf32>
    %157 = arith.addf %155, %156 : vector<48x16xf32>
    %cst_59 = arith.constant 0.000000e+00 : f32
    %158 = vector.broadcast %cst_59 : f32 to vector<48x16xf32>
    %159 = arith.maximumf %157, %158 : vector<48x16xf32>
    %160 = arith.addf %159, %127 : vector<48x16xf32>
    %cst_60 = arith.constant 0.000000e+00 : f32
    %161 = vector.broadcast %cst_60 : f32 to vector<48x16xf32>
    %162 = arith.maximumf %160, %161 : vector<48x16xf32>
    %c272 = arith.constant 272 : index
    %c0_61 = arith.constant 0 : index
    %163 = vector.load %arg2[%c272, %c0_61] : memref<480x16xbf16, #tpu.memory_space<vmem>>, vector<32x16xbf16>
    %c304 = arith.constant 304 : index
    %c0_62 = arith.constant 0 : index
    %164 = vector.load %arg2[%c304, %c0_62] : memref<480x16xbf16, #tpu.memory_space<vmem>>, vector<32x16xbf16>
    %c9 = arith.constant 9 : index
    %c0_63 = arith.constant 0 : index
    %165 = vector.load %arg3[%c9, %c0_63] : memref<18x16xf32, #tpu.memory_space<vmem>>, vector<1x16xf32>
    %c10 = arith.constant 10 : index
    %c0_64 = arith.constant 0 : index
    %166 = vector.load %arg3[%c10, %c0_64] : memref<18x16xf32, #tpu.memory_space<vmem>>, vector<1x16xf32>
    %cst_65 = arith.constant 0.000000e+00 : f32
    %167 = vector.broadcast %cst_65 : f32 to vector<2x16xf32>
    %168 = vector.extract_strided_slice %162 {offsets = [0, 0], sizes = [46, 16], strides = [1, 1]} : vector<48x16xf32> to vector<46x16xf32>
    %169 = tpu.concatenate %167, %168 in 0 : vector<2x16xf32>, vector<46x16xf32> -> vector<48x16xf32>
    %cst_66 = arith.constant 0.000000e+00 : f32
    %170 = vector.broadcast %cst_66 : f32 to vector<48x16xf32>
    %171 = vector.shape_cast %62 : vector<48x1xi1> to vector<48x1xi1>
    %172 = vector.broadcast %171 : vector<48x1xi1> to vector<48x16xi1>
    %173 = arith.select %172, %169, %170 : vector<48x16xi1>, vector<48x16xf32>
    %174 = tpu.concatenate %173, %162 in 1 : vector<48x16xf32>, vector<48x16xf32> -> vector<48x32xf32>
    %175 = arith.truncf %174 : vector<48x32xf32> to vector<48x32xbf16>
    %cst_67 = arith.constant dense<0.000000e+00> : vector<48x16xf32>
    %176 = tpu.matmul %175, %163, %cst_67 {dimension_numbers = #tpu.dot_dimension_numbers<[1], [0], [0], [1], [0, 0, 1, 1], [], []>} : vector<48x32xbf16>, vector<32x16xbf16>, vector<48x16xf32> -> vector<48x16xf32>
    %177 = vector.broadcast %165 : vector<1x16xf32> to vector<48x16xf32>
    %178 = arith.addf %176, %177 : vector<48x16xf32>
    %cst_68 = arith.constant 0.000000e+00 : f32
    %179 = vector.broadcast %cst_68 : f32 to vector<48x16xf32>
    %180 = arith.maximumf %178, %179 : vector<48x16xf32>
    %cst_69 = arith.constant 0.000000e+00 : f32
    %181 = vector.broadcast %cst_69 : f32 to vector<2x16xf32>
    %182 = vector.extract_strided_slice %180 {offsets = [0, 0], sizes = [46, 16], strides = [1, 1]} : vector<48x16xf32> to vector<46x16xf32>
    %183 = tpu.concatenate %181, %182 in 0 : vector<2x16xf32>, vector<46x16xf32> -> vector<48x16xf32>
    %cst_70 = arith.constant 0.000000e+00 : f32
    %184 = vector.broadcast %cst_70 : f32 to vector<48x16xf32>
    %185 = vector.shape_cast %62 : vector<48x1xi1> to vector<48x1xi1>
    %186 = vector.broadcast %185 : vector<48x1xi1> to vector<48x16xi1>
    %187 = arith.select %186, %183, %184 : vector<48x16xi1>, vector<48x16xf32>
    %188 = tpu.concatenate %187, %180 in 1 : vector<48x16xf32>, vector<48x16xf32> -> vector<48x32xf32>
    %189 = arith.truncf %188 : vector<48x32xf32> to vector<48x32xbf16>
    %cst_71 = arith.constant dense<0.000000e+00> : vector<48x16xf32>
    %190 = tpu.matmul %189, %164, %cst_71 {dimension_numbers = #tpu.dot_dimension_numbers<[1], [0], [0], [1], [0, 0, 1, 1], [], []>} : vector<48x32xbf16>, vector<32x16xbf16>, vector<48x16xf32> -> vector<48x16xf32>
    %191 = vector.broadcast %166 : vector<1x16xf32> to vector<48x16xf32>
    %192 = arith.addf %190, %191 : vector<48x16xf32>
    %cst_72 = arith.constant 0.000000e+00 : f32
    %193 = vector.broadcast %cst_72 : f32 to vector<48x16xf32>
    %194 = arith.maximumf %192, %193 : vector<48x16xf32>
    %195 = arith.addf %194, %162 : vector<48x16xf32>
    %cst_73 = arith.constant 0.000000e+00 : f32
    %196 = vector.broadcast %cst_73 : f32 to vector<48x16xf32>
    %197 = arith.maximumf %195, %196 : vector<48x16xf32>
    %c336 = arith.constant 336 : index
    %c0_74 = arith.constant 0 : index
    %198 = vector.load %arg2[%c336, %c0_74] : memref<480x16xbf16, #tpu.memory_space<vmem>>, vector<32x16xbf16>
    %c368 = arith.constant 368 : index
    %c0_75 = arith.constant 0 : index
    %199 = vector.load %arg2[%c368, %c0_75] : memref<480x16xbf16, #tpu.memory_space<vmem>>, vector<32x16xbf16>
    %c11 = arith.constant 11 : index
    %c0_76 = arith.constant 0 : index
    %200 = vector.load %arg3[%c11, %c0_76] : memref<18x16xf32, #tpu.memory_space<vmem>>, vector<1x16xf32>
    %c12 = arith.constant 12 : index
    %c0_77 = arith.constant 0 : index
    %201 = vector.load %arg3[%c12, %c0_77] : memref<18x16xf32, #tpu.memory_space<vmem>>, vector<1x16xf32>
    %cst_78 = arith.constant 0.000000e+00 : f32
    %202 = vector.broadcast %cst_78 : f32 to vector<4x16xf32>
    %203 = vector.extract_strided_slice %197 {offsets = [0, 0], sizes = [44, 16], strides = [1, 1]} : vector<48x16xf32> to vector<44x16xf32>
    %204 = tpu.concatenate %202, %203 in 0 : vector<4x16xf32>, vector<44x16xf32> -> vector<48x16xf32>
    %cst_79 = arith.constant 0.000000e+00 : f32
    %205 = vector.broadcast %cst_79 : f32 to vector<48x16xf32>
    %206 = vector.shape_cast %99 : vector<48x1xi1> to vector<48x1xi1>
    %207 = vector.broadcast %206 : vector<48x1xi1> to vector<48x16xi1>
    %208 = arith.select %207, %204, %205 : vector<48x16xi1>, vector<48x16xf32>
    %209 = tpu.concatenate %208, %197 in 1 : vector<48x16xf32>, vector<48x16xf32> -> vector<48x32xf32>
    %210 = arith.truncf %209 : vector<48x32xf32> to vector<48x32xbf16>
    %cst_80 = arith.constant dense<0.000000e+00> : vector<48x16xf32>
    %211 = tpu.matmul %210, %198, %cst_80 {dimension_numbers = #tpu.dot_dimension_numbers<[1], [0], [0], [1], [0, 0, 1, 1], [], []>} : vector<48x32xbf16>, vector<32x16xbf16>, vector<48x16xf32> -> vector<48x16xf32>
    %212 = vector.broadcast %200 : vector<1x16xf32> to vector<48x16xf32>
    %213 = arith.addf %211, %212 : vector<48x16xf32>
    %cst_81 = arith.constant 0.000000e+00 : f32
    %214 = vector.broadcast %cst_81 : f32 to vector<48x16xf32>
    %215 = arith.maximumf %213, %214 : vector<48x16xf32>
    %cst_82 = arith.constant 0.000000e+00 : f32
    %216 = vector.broadcast %cst_82 : f32 to vector<4x16xf32>
    %217 = vector.extract_strided_slice %215 {offsets = [0, 0], sizes = [44, 16], strides = [1, 1]} : vector<48x16xf32> to vector<44x16xf32>
    %218 = tpu.concatenate %216, %217 in 0 : vector<4x16xf32>, vector<44x16xf32> -> vector<48x16xf32>
    %cst_83 = arith.constant 0.000000e+00 : f32
    %219 = vector.broadcast %cst_83 : f32 to vector<48x16xf32>
    %220 = vector.shape_cast %99 : vector<48x1xi1> to vector<48x1xi1>
    %221 = vector.broadcast %220 : vector<48x1xi1> to vector<48x16xi1>
    %222 = arith.select %221, %218, %219 : vector<48x16xi1>, vector<48x16xf32>
    %223 = tpu.concatenate %222, %215 in 1 : vector<48x16xf32>, vector<48x16xf32> -> vector<48x32xf32>
    %224 = arith.truncf %223 : vector<48x32xf32> to vector<48x32xbf16>
    %cst_84 = arith.constant dense<0.000000e+00> : vector<48x16xf32>
    %225 = tpu.matmul %224, %199, %cst_84 {dimension_numbers = #tpu.dot_dimension_numbers<[1], [0], [0], [1], [0, 0, 1, 1], [], []>} : vector<48x32xbf16>, vector<32x16xbf16>, vector<48x16xf32> -> vector<48x16xf32>
    %226 = vector.broadcast %201 : vector<1x16xf32> to vector<48x16xf32>
    %227 = arith.addf %225, %226 : vector<48x16xf32>
    %cst_85 = arith.constant 0.000000e+00 : f32
    %228 = vector.broadcast %cst_85 : f32 to vector<48x16xf32>
    %229 = arith.maximumf %227, %228 : vector<48x16xf32>
    %230 = arith.addf %229, %197 : vector<48x16xf32>
    %cst_86 = arith.constant 0.000000e+00 : f32
    %231 = vector.broadcast %cst_86 : f32 to vector<48x16xf32>
    %232 = arith.maximumf %230, %231 : vector<48x16xf32>
    %c400 = arith.constant 400 : index
    %c0_87 = arith.constant 0 : index
    %233 = vector.load %arg2[%c400, %c0_87] : memref<480x16xbf16, #tpu.memory_space<vmem>>, vector<16x16xbf16>
    %c416 = arith.constant 416 : index
    %c0_88 = arith.constant 0 : index
    %234 = vector.load %arg2[%c416, %c0_88] : memref<480x16xbf16, #tpu.memory_space<vmem>>, vector<16x16xbf16>
    %c13 = arith.constant 13 : index
    %c0_89 = arith.constant 0 : index
    %235 = vector.load %arg3[%c13, %c0_89] : memref<18x16xf32, #tpu.memory_space<vmem>>, vector<1x16xf32>
    %c14 = arith.constant 14 : index
    %c0_90 = arith.constant 0 : index
    %236 = vector.load %arg3[%c14, %c0_90] : memref<18x16xf32, #tpu.memory_space<vmem>>, vector<1x16xf32>
    %237 = arith.truncf %232 : vector<48x16xf32> to vector<48x16xbf16>
    %cst_91 = arith.constant dense<0.000000e+00> : vector<48x16xf32>
    %238 = tpu.matmul %237, %233, %cst_91 {dimension_numbers = #tpu.dot_dimension_numbers<[1], [0], [0], [1], [0, 0, 1, 1], [], []>} : vector<48x16xbf16>, vector<16x16xbf16>, vector<48x16xf32> -> vector<48x16xf32>
    %239 = vector.broadcast %235 : vector<1x16xf32> to vector<48x16xf32>
    %240 = arith.addf %238, %239 : vector<48x16xf32>
    %cst_92 = arith.constant 0.000000e+00 : f32
    %241 = vector.broadcast %cst_92 : f32 to vector<48x16xf32>
    %242 = arith.maximumf %240, %241 : vector<48x16xf32>
    %243 = arith.truncf %242 : vector<48x16xf32> to vector<48x16xbf16>
    %cst_93 = arith.constant dense<0.000000e+00> : vector<48x16xf32>
    %244 = tpu.matmul %243, %234, %cst_93 {dimension_numbers = #tpu.dot_dimension_numbers<[1], [0], [0], [1], [0, 0, 1, 1], [], []>} : vector<48x16xbf16>, vector<16x16xbf16>, vector<48x16xf32> -> vector<48x16xf32>
    %245 = vector.broadcast %236 : vector<1x16xf32> to vector<48x16xf32>
    %246 = arith.addf %244, %245 : vector<48x16xf32>
    %cst_94 = arith.constant 0.000000e+00 : f32
    %247 = vector.broadcast %cst_94 : f32 to vector<48x16xf32>
    %248 = arith.maximumf %246, %247 : vector<48x16xf32>
    %c432 = arith.constant 432 : index
    %c0_95 = arith.constant 0 : index
    %249 = vector.load %arg2[%c432, %c0_95] : memref<480x16xbf16, #tpu.memory_space<vmem>>, vector<16x16xbf16>
    %250 = arith.truncf %232 : vector<48x16xf32> to vector<48x16xbf16>
    %cst_96 = arith.constant dense<0.000000e+00> : vector<48x16xf32>
    %251 = tpu.matmul %250, %249, %cst_96 {dimension_numbers = #tpu.dot_dimension_numbers<[1], [0], [0], [1], [0, 0, 1, 1], [], []>} : vector<48x16xbf16>, vector<16x16xbf16>, vector<48x16xf32> -> vector<48x16xf32>
    %c15 = arith.constant 15 : index
    %c0_97 = arith.constant 0 : index
    %252 = vector.load %arg3[%c15, %c0_97] : memref<18x16xf32, #tpu.memory_space<vmem>>, vector<1x16xf32>
    %253 = vector.broadcast %252 : vector<1x16xf32> to vector<48x16xf32>
    %254 = arith.addf %251, %253 : vector<48x16xf32>
    %255 = arith.addf %248, %254 : vector<48x16xf32>
    %cst_98 = arith.constant 0.000000e+00 : f32
    %256 = vector.broadcast %cst_98 : f32 to vector<48x16xf32>
    %257 = arith.maximumf %255, %256 : vector<48x16xf32>
    %c448 = arith.constant 448 : index
    %c0_99 = arith.constant 0 : index
    %258 = vector.load %arg2[%c448, %c0_99] : memref<480x16xbf16, #tpu.memory_space<vmem>>, vector<16x16xbf16>
    %c464 = arith.constant 464 : index
    %c0_100 = arith.constant 0 : index
    %259 = vector.load %arg2[%c464, %c0_100] : memref<480x16xbf16, #tpu.memory_space<vmem>>, vector<16x16xbf16>
    %c16 = arith.constant 16 : index
    %c0_101 = arith.constant 0 : index
    %260 = vector.load %arg3[%c16, %c0_101] : memref<18x16xf32, #tpu.memory_space<vmem>>, vector<1x16xf32>
    %c17 = arith.constant 17 : index
    %c0_102 = arith.constant 0 : index
    %261 = vector.load %arg3[%c17, %c0_102] : memref<18x16xf32, #tpu.memory_space<vmem>>, vector<1x16xf32>
    %262 = arith.truncf %257 : vector<48x16xf32> to vector<48x16xbf16>
    %cst_103 = arith.constant dense<0.000000e+00> : vector<48x16xf32>
    %263 = tpu.matmul %262, %258, %cst_103 {dimension_numbers = #tpu.dot_dimension_numbers<[1], [0], [0], [1], [0, 0, 1, 1], [], []>} : vector<48x16xbf16>, vector<16x16xbf16>, vector<48x16xf32> -> vector<48x16xf32>
    %264 = vector.broadcast %260 : vector<1x16xf32> to vector<48x16xf32>
    %265 = arith.addf %263, %264 : vector<48x16xf32>
    %cst_104 = arith.constant 0.000000e+00 : f32
    %266 = vector.broadcast %cst_104 : f32 to vector<48x16xf32>
    %267 = arith.maximumf %265, %266 : vector<48x16xf32>
    %268 = arith.truncf %267 : vector<48x16xf32> to vector<48x16xbf16>
    %cst_105 = arith.constant dense<0.000000e+00> : vector<48x16xf32>
    %269 = tpu.matmul %268, %259, %cst_105 {dimension_numbers = #tpu.dot_dimension_numbers<[1], [0], [0], [1], [0, 0, 1, 1], [], []>} : vector<48x16xbf16>, vector<16x16xbf16>, vector<48x16xf32> -> vector<48x16xf32>
    %270 = vector.broadcast %261 : vector<1x16xf32> to vector<48x16xf32>
    %271 = arith.addf %269, %270 : vector<48x16xf32>
    %cst_106 = arith.constant 0.000000e+00 : f32
    %272 = vector.broadcast %cst_106 : f32 to vector<48x16xf32>
    %273 = arith.maximumf %271, %272 : vector<48x16xf32>
    %274 = arith.addf %273, %257 : vector<48x16xf32>
    %cst_107 = arith.constant 0.000000e+00 : f32
    %275 = vector.broadcast %cst_107 : f32 to vector<48x16xf32>
    %276 = arith.maximumf %274, %275 : vector<48x16xf32>
    %277 = vector.extract_strided_slice %276 {offsets = [0, 0], sizes = [48, 1], strides = [1, 1]} : vector<48x16xf32> to vector<48x1xf32>
    %278 = vector.extract_strided_slice %276 {offsets = [0, 8], sizes = [48, 1], strides = [1, 1]} : vector<48x16xf32> to vector<48x1xf32>
    %279 = arith.addf %277, %278 : vector<48x1xf32>
    %cst_108 = arith.constant 0.000000e+00 : f32
    %280 = vector.broadcast %cst_108 : f32 to vector<48x1xf32>
    %281 = arith.subf %280, %279 : vector<48x1xf32>
    %282 = math.exp %281 : vector<48x1xf32>
    %cst_109 = arith.constant 1.000000e+00 : f32
    %283 = vector.broadcast %cst_109 : f32 to vector<48x1xf32>
    %284 = arith.addf %283, %282 : vector<48x1xf32>
    %285 = tpu.reciprocal %284 {approx = true} : vector<48x1xf32> -> vector<48x1xf32>
    %286 = vector.broadcast %285 : vector<48x1xf32> to vector<48x256xf32>
    %287 = arith.mulf %0, %286 : vector<48x256xf32>
    %288 = vector.extract_strided_slice %287 {offsets = [0, 0], sizes = [24, 256], strides = [1, 1]} : vector<48x256xf32> to vector<24x256xf32>
    %cst_110 = arith.constant dense<0xFF800000> : vector<256xf32>
    %289 = vector.multi_reduction <maximumf>, %288, %cst_110 [0] : vector<24x256xf32> to vector<256xf32>
    %290 = vector.shape_cast %289 : vector<256xf32> to vector<1x256xf32>
    %cst_111 = arith.constant dense<0.000000e+00> : vector<256xf32>
    %291 = vector.multi_reduction <add>, %288, %cst_111 [0] : vector<24x256xf32> to vector<256xf32>
    %292 = vector.shape_cast %291 : vector<256xf32> to vector<1x256xf32>
    %cst_112 = arith.constant 2.400000e+01 : f32
    %293 = vector.broadcast %cst_112 : f32 to vector<1x256xf32>
    %294 = arith.divf %292, %293 : vector<1x256xf32>
    %295 = vector.extract_strided_slice %287 {offsets = [24, 0], sizes = [24, 256], strides = [1, 1]} : vector<48x256xf32> to vector<24x256xf32>
    %cst_113 = arith.constant dense<0xFF800000> : vector<256xf32>
    %296 = vector.multi_reduction <maximumf>, %295, %cst_113 [0] : vector<24x256xf32> to vector<256xf32>
    %297 = vector.shape_cast %296 : vector<256xf32> to vector<1x256xf32>
    %cst_114 = arith.constant dense<0.000000e+00> : vector<256xf32>
    %298 = vector.multi_reduction <add>, %295, %cst_114 [0] : vector<24x256xf32> to vector<256xf32>
    %299 = vector.shape_cast %298 : vector<256xf32> to vector<1x256xf32>
    %cst_115 = arith.constant 2.400000e+01 : f32
    %300 = vector.broadcast %cst_115 : f32 to vector<1x256xf32>
    %301 = arith.divf %299, %300 : vector<1x256xf32>
    %302 = tpu.concatenate %290, %297 in 1 : vector<1x256xf32>, vector<1x256xf32> -> vector<1x512xf32>
    %303 = tpu.concatenate %294, %301 in 1 : vector<1x256xf32>, vector<1x256xf32> -> vector<1x512xf32>
    %304 = tpu.concatenate %302, %303 in 0 : vector<1x512xf32>, vector<1x512xf32> -> vector<2x512xf32>
    %305 = tpu.iota {dimensions = array<i32: 1>} : vector<1x512xi32>
    %c15_i32 = arith.constant 15 : i32
    %306 = vector.broadcast %c15_i32 : i32 to vector<1x512xi32>
    %307 = arith.andi %305, %306 : vector<1x512xi32>
    %c4_i32_116 = arith.constant 4 : i32
    %308 = vector.broadcast %c4_i32_116 : i32 to vector<1x512xi32>
    %309 = arith.shrsi %305, %308 : vector<1x512xi32>
    %c15_i32_117 = arith.constant 15 : i32
    %310 = vector.broadcast %c15_i32_117 : i32 to vector<1x512xi32>
    %311 = arith.andi %309, %310 : vector<1x512xi32>
    %cst_118 = arith.constant 0.000000e+00 : f32
    %312 = vector.broadcast %cst_118 : f32 to vector<2x3xf32>
    %313 = vector.extract_strided_slice %304 {offsets = [0, 0], sizes = [2, 509], strides = [1, 1]} : vector<2x512xf32> to vector<2x509xf32>
    %314 = tpu.concatenate %312, %313 in 1 : vector<2x3xf32>, vector<2x509xf32> -> vector<2x512xf32>
    %c-3_i32 = arith.constant -3 : i32
    %315 = vector.broadcast %c-3_i32 : i32 to vector<1x512xi32>
    %316 = arith.addi %307, %315 : vector<1x512xi32>
    %c0_i32 = arith.constant 0 : i32
    %317 = vector.broadcast %c0_i32 : i32 to vector<1x512xi32>
    %318 = arith.cmpi sge, %316, %317 : vector<1x512xi32>
    %c-3_i32_119 = arith.constant -3 : i32
    %319 = vector.broadcast %c-3_i32_119 : i32 to vector<1x512xi32>
    %320 = arith.addi %307, %319 : vector<1x512xi32>
    %c16_i32 = arith.constant 16 : i32
    %321 = vector.broadcast %c16_i32 : i32 to vector<1x512xi32>
    %322 = arith.cmpi slt, %320, %321 : vector<1x512xi32>
    %323 = arith.andi %318, %322 : vector<1x512xi1>
    %cst_120 = arith.constant 0.000000e+00 : f32
    %324 = vector.broadcast %cst_120 : f32 to vector<2x512xf32>
    %325 = vector.shape_cast %323 : vector<1x512xi1> to vector<1x512xi1>
    %326 = vector.broadcast %325 : vector<1x512xi1> to vector<2x512xi1>
    %327 = arith.select %326, %314, %324 : vector<2x512xi1>, vector<2x512xf32>
    %cst_121 = arith.constant 0.000000e+00 : f32
    %328 = vector.broadcast %cst_121 : f32 to vector<2x2xf32>
    %329 = vector.extract_strided_slice %304 {offsets = [0, 0], sizes = [2, 510], strides = [1, 1]} : vector<2x512xf32> to vector<2x510xf32>
    %330 = tpu.concatenate %328, %329 in 1 : vector<2x2xf32>, vector<2x510xf32> -> vector<2x512xf32>
    %c-2_i32 = arith.constant -2 : i32
    %331 = vector.broadcast %c-2_i32 : i32 to vector<1x512xi32>
    %332 = arith.addi %307, %331 : vector<1x512xi32>
    %c0_i32_122 = arith.constant 0 : i32
    %333 = vector.broadcast %c0_i32_122 : i32 to vector<1x512xi32>
    %334 = arith.cmpi sge, %332, %333 : vector<1x512xi32>
    %c-2_i32_123 = arith.constant -2 : i32
    %335 = vector.broadcast %c-2_i32_123 : i32 to vector<1x512xi32>
    %336 = arith.addi %307, %335 : vector<1x512xi32>
    %c16_i32_124 = arith.constant 16 : i32
    %337 = vector.broadcast %c16_i32_124 : i32 to vector<1x512xi32>
    %338 = arith.cmpi slt, %336, %337 : vector<1x512xi32>
    %339 = arith.andi %334, %338 : vector<1x512xi1>
    %cst_125 = arith.constant 0.000000e+00 : f32
    %340 = vector.broadcast %cst_125 : f32 to vector<2x512xf32>
    %341 = vector.shape_cast %339 : vector<1x512xi1> to vector<1x512xi1>
    %342 = vector.broadcast %341 : vector<1x512xi1> to vector<2x512xi1>
    %343 = arith.select %342, %330, %340 : vector<2x512xi1>, vector<2x512xf32>
    %cst_126 = arith.constant 0.000000e+00 : f32
    %344 = vector.broadcast %cst_126 : f32 to vector<2x1xf32>
    %345 = vector.extract_strided_slice %304 {offsets = [0, 0], sizes = [2, 511], strides = [1, 1]} : vector<2x512xf32> to vector<2x511xf32>
    %346 = tpu.concatenate %344, %345 in 1 : vector<2x1xf32>, vector<2x511xf32> -> vector<2x512xf32>
    %c-1_i32 = arith.constant -1 : i32
    %347 = vector.broadcast %c-1_i32 : i32 to vector<1x512xi32>
    %348 = arith.addi %307, %347 : vector<1x512xi32>
    %c0_i32_127 = arith.constant 0 : i32
    %349 = vector.broadcast %c0_i32_127 : i32 to vector<1x512xi32>
    %350 = arith.cmpi sge, %348, %349 : vector<1x512xi32>
    %c-1_i32_128 = arith.constant -1 : i32
    %351 = vector.broadcast %c-1_i32_128 : i32 to vector<1x512xi32>
    %352 = arith.addi %307, %351 : vector<1x512xi32>
    %c16_i32_129 = arith.constant 16 : i32
    %353 = vector.broadcast %c16_i32_129 : i32 to vector<1x512xi32>
    %354 = arith.cmpi slt, %352, %353 : vector<1x512xi32>
    %355 = arith.andi %350, %354 : vector<1x512xi1>
    %cst_130 = arith.constant 0.000000e+00 : f32
    %356 = vector.broadcast %cst_130 : f32 to vector<2x512xf32>
    %357 = vector.shape_cast %355 : vector<1x512xi1> to vector<1x512xi1>
    %358 = vector.broadcast %357 : vector<1x512xi1> to vector<2x512xi1>
    %359 = arith.select %358, %346, %356 : vector<2x512xi1>, vector<2x512xf32>
    %cst_131 = arith.constant 0.000000e+00 : f32
    %360 = vector.broadcast %cst_131 : f32 to vector<2x1xf32>
    %361 = vector.extract_strided_slice %304 {offsets = [0, 1], sizes = [2, 511], strides = [1, 1]} : vector<2x512xf32> to vector<2x511xf32>
    %362 = tpu.concatenate %361, %360 in 1 : vector<2x511xf32>, vector<2x1xf32> -> vector<2x512xf32>
    %c1_i32_132 = arith.constant 1 : i32
    %363 = vector.broadcast %c1_i32_132 : i32 to vector<1x512xi32>
    %364 = arith.addi %307, %363 : vector<1x512xi32>
    %c0_i32_133 = arith.constant 0 : i32
    %365 = vector.broadcast %c0_i32_133 : i32 to vector<1x512xi32>
    %366 = arith.cmpi sge, %364, %365 : vector<1x512xi32>
    %c1_i32_134 = arith.constant 1 : i32
    %367 = vector.broadcast %c1_i32_134 : i32 to vector<1x512xi32>
    %368 = arith.addi %307, %367 : vector<1x512xi32>
    %c16_i32_135 = arith.constant 16 : i32
    %369 = vector.broadcast %c16_i32_135 : i32 to vector<1x512xi32>
    %370 = arith.cmpi slt, %368, %369 : vector<1x512xi32>
    %371 = arith.andi %366, %370 : vector<1x512xi1>
    %cst_136 = arith.constant 0.000000e+00 : f32
    %372 = vector.broadcast %cst_136 : f32 to vector<2x512xf32>
    %373 = vector.shape_cast %371 : vector<1x512xi1> to vector<1x512xi1>
    %374 = vector.broadcast %373 : vector<1x512xi1> to vector<2x512xi1>
    %375 = arith.select %374, %362, %372 : vector<2x512xi1>, vector<2x512xf32>
    %cst_137 = arith.constant 0.000000e+00 : f32
    %376 = vector.broadcast %cst_137 : f32 to vector<2x2xf32>
    %377 = vector.extract_strided_slice %304 {offsets = [0, 2], sizes = [2, 510], strides = [1, 1]} : vector<2x512xf32> to vector<2x510xf32>
    %378 = tpu.concatenate %377, %376 in 1 : vector<2x510xf32>, vector<2x2xf32> -> vector<2x512xf32>
    %c2_i32_138 = arith.constant 2 : i32
    %379 = vector.broadcast %c2_i32_138 : i32 to vector<1x512xi32>
    %380 = arith.addi %307, %379 : vector<1x512xi32>
    %c0_i32_139 = arith.constant 0 : i32
    %381 = vector.broadcast %c0_i32_139 : i32 to vector<1x512xi32>
    %382 = arith.cmpi sge, %380, %381 : vector<1x512xi32>
    %c2_i32_140 = arith.constant 2 : i32
    %383 = vector.broadcast %c2_i32_140 : i32 to vector<1x512xi32>
    %384 = arith.addi %307, %383 : vector<1x512xi32>
    %c16_i32_141 = arith.constant 16 : i32
    %385 = vector.broadcast %c16_i32_141 : i32 to vector<1x512xi32>
    %386 = arith.cmpi slt, %384, %385 : vector<1x512xi32>
    %387 = arith.andi %382, %386 : vector<1x512xi1>
    %cst_142 = arith.constant 0.000000e+00 : f32
    %388 = vector.broadcast %cst_142 : f32 to vector<2x512xf32>
    %389 = vector.shape_cast %387 : vector<1x512xi1> to vector<1x512xi1>
    %390 = vector.broadcast %389 : vector<1x512xi1> to vector<2x512xi1>
    %391 = arith.select %390, %378, %388 : vector<2x512xi1>, vector<2x512xf32>
    %cst_143 = arith.constant 0.000000e+00 : f32
    %392 = vector.broadcast %cst_143 : f32 to vector<2x3xf32>
    %393 = vector.extract_strided_slice %304 {offsets = [0, 3], sizes = [2, 509], strides = [1, 1]} : vector<2x512xf32> to vector<2x509xf32>
    %394 = tpu.concatenate %393, %392 in 1 : vector<2x509xf32>, vector<2x3xf32> -> vector<2x512xf32>
    %c3_i32 = arith.constant 3 : i32
    %395 = vector.broadcast %c3_i32 : i32 to vector<1x512xi32>
    %396 = arith.addi %307, %395 : vector<1x512xi32>
    %c0_i32_144 = arith.constant 0 : i32
    %397 = vector.broadcast %c0_i32_144 : i32 to vector<1x512xi32>
    %398 = arith.cmpi sge, %396, %397 : vector<1x512xi32>
    %c3_i32_145 = arith.constant 3 : i32
    %399 = vector.broadcast %c3_i32_145 : i32 to vector<1x512xi32>
    %400 = arith.addi %307, %399 : vector<1x512xi32>
    %c16_i32_146 = arith.constant 16 : i32
    %401 = vector.broadcast %c16_i32_146 : i32 to vector<1x512xi32>
    %402 = arith.cmpi slt, %400, %401 : vector<1x512xi32>
    %403 = arith.andi %398, %402 : vector<1x512xi1>
    %cst_147 = arith.constant 0.000000e+00 : f32
    %404 = vector.broadcast %cst_147 : f32 to vector<2x512xf32>
    %405 = vector.shape_cast %403 : vector<1x512xi1> to vector<1x512xi1>
    %406 = vector.broadcast %405 : vector<1x512xi1> to vector<2x512xi1>
    %407 = arith.select %406, %394, %404 : vector<2x512xi1>, vector<2x512xf32>
    %408 = tpu.concatenate %327, %343, %359, %304, %375, %391, %407 in 0 : vector<2x512xf32>, vector<2x512xf32>, vector<2x512xf32>, vector<2x512xf32>, vector<2x512xf32>, vector<2x512xf32>, vector<2x512xf32> -> vector<14x512xf32>
    %cst_148 = arith.constant 0.000000e+00 : f32
    %409 = vector.broadcast %cst_148 : f32 to vector<14x48xf32>
    %410 = vector.extract_strided_slice %408 {offsets = [0, 0], sizes = [14, 464], strides = [1, 1]} : vector<14x512xf32> to vector<14x464xf32>
    %411 = tpu.concatenate %409, %410 in 1 : vector<14x48xf32>, vector<14x464xf32> -> vector<14x512xf32>
    %c-3_i32_149 = arith.constant -3 : i32
    %412 = vector.broadcast %c-3_i32_149 : i32 to vector<1x512xi32>
    %413 = arith.addi %311, %412 : vector<1x512xi32>
    %c0_i32_150 = arith.constant 0 : i32
    %414 = vector.broadcast %c0_i32_150 : i32 to vector<1x512xi32>
    %415 = arith.cmpi sge, %413, %414 : vector<1x512xi32>
    %c-3_i32_151 = arith.constant -3 : i32
    %416 = vector.broadcast %c-3_i32_151 : i32 to vector<1x512xi32>
    %417 = arith.addi %311, %416 : vector<1x512xi32>
    %c16_i32_152 = arith.constant 16 : i32
    %418 = vector.broadcast %c16_i32_152 : i32 to vector<1x512xi32>
    %419 = arith.cmpi slt, %417, %418 : vector<1x512xi32>
    %420 = arith.andi %415, %419 : vector<1x512xi1>
    %cst_153 = arith.constant 0.000000e+00 : f32
    %421 = vector.broadcast %cst_153 : f32 to vector<14x512xf32>
    %422 = vector.shape_cast %420 : vector<1x512xi1> to vector<1x512xi1>
    %423 = vector.broadcast %422 : vector<1x512xi1> to vector<14x512xi1>
    %424 = arith.select %423, %411, %421 : vector<14x512xi1>, vector<14x512xf32>
    %cst_154 = arith.constant 0.000000e+00 : f32
    %425 = vector.broadcast %cst_154 : f32 to vector<14x32xf32>
    %426 = vector.extract_strided_slice %408 {offsets = [0, 0], sizes = [14, 480], strides = [1, 1]} : vector<14x512xf32> to vector<14x480xf32>
    %427 = tpu.concatenate %425, %426 in 1 : vector<14x32xf32>, vector<14x480xf32> -> vector<14x512xf32>
    %c-2_i32_155 = arith.constant -2 : i32
    %428 = vector.broadcast %c-2_i32_155 : i32 to vector<1x512xi32>
    %429 = arith.addi %311, %428 : vector<1x512xi32>
    %c0_i32_156 = arith.constant 0 : i32
    %430 = vector.broadcast %c0_i32_156 : i32 to vector<1x512xi32>
    %431 = arith.cmpi sge, %429, %430 : vector<1x512xi32>
    %c-2_i32_157 = arith.constant -2 : i32
    %432 = vector.broadcast %c-2_i32_157 : i32 to vector<1x512xi32>
    %433 = arith.addi %311, %432 : vector<1x512xi32>
    %c16_i32_158 = arith.constant 16 : i32
    %434 = vector.broadcast %c16_i32_158 : i32 to vector<1x512xi32>
    %435 = arith.cmpi slt, %433, %434 : vector<1x512xi32>
    %436 = arith.andi %431, %435 : vector<1x512xi1>
    %cst_159 = arith.constant 0.000000e+00 : f32
    %437 = vector.broadcast %cst_159 : f32 to vector<14x512xf32>
    %438 = vector.shape_cast %436 : vector<1x512xi1> to vector<1x512xi1>
    %439 = vector.broadcast %438 : vector<1x512xi1> to vector<14x512xi1>
    %440 = arith.select %439, %427, %437 : vector<14x512xi1>, vector<14x512xf32>
    %cst_160 = arith.constant 0.000000e+00 : f32
    %441 = vector.broadcast %cst_160 : f32 to vector<14x16xf32>
    %442 = vector.extract_strided_slice %408 {offsets = [0, 0], sizes = [14, 496], strides = [1, 1]} : vector<14x512xf32> to vector<14x496xf32>
    %443 = tpu.concatenate %441, %442 in 1 : vector<14x16xf32>, vector<14x496xf32> -> vector<14x512xf32>
    %c-1_i32_161 = arith.constant -1 : i32
    %444 = vector.broadcast %c-1_i32_161 : i32 to vector<1x512xi32>
    %445 = arith.addi %311, %444 : vector<1x512xi32>
    %c0_i32_162 = arith.constant 0 : i32
    %446 = vector.broadcast %c0_i32_162 : i32 to vector<1x512xi32>
    %447 = arith.cmpi sge, %445, %446 : vector<1x512xi32>
    %c-1_i32_163 = arith.constant -1 : i32
    %448 = vector.broadcast %c-1_i32_163 : i32 to vector<1x512xi32>
    %449 = arith.addi %311, %448 : vector<1x512xi32>
    %c16_i32_164 = arith.constant 16 : i32
    %450 = vector.broadcast %c16_i32_164 : i32 to vector<1x512xi32>
    %451 = arith.cmpi slt, %449, %450 : vector<1x512xi32>
    %452 = arith.andi %447, %451 : vector<1x512xi1>
    %cst_165 = arith.constant 0.000000e+00 : f32
    %453 = vector.broadcast %cst_165 : f32 to vector<14x512xf32>
    %454 = vector.shape_cast %452 : vector<1x512xi1> to vector<1x512xi1>
    %455 = vector.broadcast %454 : vector<1x512xi1> to vector<14x512xi1>
    %456 = arith.select %455, %443, %453 : vector<14x512xi1>, vector<14x512xf32>
    %cst_166 = arith.constant 0.000000e+00 : f32
    %457 = vector.broadcast %cst_166 : f32 to vector<14x16xf32>
    %458 = vector.extract_strided_slice %408 {offsets = [0, 16], sizes = [14, 496], strides = [1, 1]} : vector<14x512xf32> to vector<14x496xf32>
    %459 = tpu.concatenate %458, %457 in 1 : vector<14x496xf32>, vector<14x16xf32> -> vector<14x512xf32>
    %c1_i32_167 = arith.constant 1 : i32
    %460 = vector.broadcast %c1_i32_167 : i32 to vector<1x512xi32>
    %461 = arith.addi %311, %460 : vector<1x512xi32>
    %c0_i32_168 = arith.constant 0 : i32
    %462 = vector.broadcast %c0_i32_168 : i32 to vector<1x512xi32>
    %463 = arith.cmpi sge, %461, %462 : vector<1x512xi32>
    %c1_i32_169 = arith.constant 1 : i32
    %464 = vector.broadcast %c1_i32_169 : i32 to vector<1x512xi32>
    %465 = arith.addi %311, %464 : vector<1x512xi32>
    %c16_i32_170 = arith.constant 16 : i32
    %466 = vector.broadcast %c16_i32_170 : i32 to vector<1x512xi32>
    %467 = arith.cmpi slt, %465, %466 : vector<1x512xi32>
    %468 = arith.andi %463, %467 : vector<1x512xi1>
    %cst_171 = arith.constant 0.000000e+00 : f32
    %469 = vector.broadcast %cst_171 : f32 to vector<14x512xf32>
    %470 = vector.shape_cast %468 : vector<1x512xi1> to vector<1x512xi1>
    %471 = vector.broadcast %470 : vector<1x512xi1> to vector<14x512xi1>
    %472 = arith.select %471, %459, %469 : vector<14x512xi1>, vector<14x512xf32>
    %cst_172 = arith.constant 0.000000e+00 : f32
    %473 = vector.broadcast %cst_172 : f32 to vector<14x32xf32>
    %474 = vector.extract_strided_slice %408 {offsets = [0, 32], sizes = [14, 480], strides = [1, 1]} : vector<14x512xf32> to vector<14x480xf32>
    %475 = tpu.concatenate %474, %473 in 1 : vector<14x480xf32>, vector<14x32xf32> -> vector<14x512xf32>
    %c2_i32_173 = arith.constant 2 : i32
    %476 = vector.broadcast %c2_i32_173 : i32 to vector<1x512xi32>
    %477 = arith.addi %311, %476 : vector<1x512xi32>
    %c0_i32_174 = arith.constant 0 : i32
    %478 = vector.broadcast %c0_i32_174 : i32 to vector<1x512xi32>
    %479 = arith.cmpi sge, %477, %478 : vector<1x512xi32>
    %c2_i32_175 = arith.constant 2 : i32
    %480 = vector.broadcast %c2_i32_175 : i32 to vector<1x512xi32>
    %481 = arith.addi %311, %480 : vector<1x512xi32>
    %c16_i32_176 = arith.constant 16 : i32
    %482 = vector.broadcast %c16_i32_176 : i32 to vector<1x512xi32>
    %483 = arith.cmpi slt, %481, %482 : vector<1x512xi32>
    %484 = arith.andi %479, %483 : vector<1x512xi1>
    %cst_177 = arith.constant 0.000000e+00 : f32
    %485 = vector.broadcast %cst_177 : f32 to vector<14x512xf32>
    %486 = vector.shape_cast %484 : vector<1x512xi1> to vector<1x512xi1>
    %487 = vector.broadcast %486 : vector<1x512xi1> to vector<14x512xi1>
    %488 = arith.select %487, %475, %485 : vector<14x512xi1>, vector<14x512xf32>
    %cst_178 = arith.constant 0.000000e+00 : f32
    %489 = vector.broadcast %cst_178 : f32 to vector<14x48xf32>
    %490 = vector.extract_strided_slice %408 {offsets = [0, 48], sizes = [14, 464], strides = [1, 1]} : vector<14x512xf32> to vector<14x464xf32>
    %491 = tpu.concatenate %490, %489 in 1 : vector<14x464xf32>, vector<14x48xf32> -> vector<14x512xf32>
    %c3_i32_179 = arith.constant 3 : i32
    %492 = vector.broadcast %c3_i32_179 : i32 to vector<1x512xi32>
    %493 = arith.addi %311, %492 : vector<1x512xi32>
    %c0_i32_180 = arith.constant 0 : i32
    %494 = vector.broadcast %c0_i32_180 : i32 to vector<1x512xi32>
    %495 = arith.cmpi sge, %493, %494 : vector<1x512xi32>
    %c3_i32_181 = arith.constant 3 : i32
    %496 = vector.broadcast %c3_i32_181 : i32 to vector<1x512xi32>
    %497 = arith.addi %311, %496 : vector<1x512xi32>
    %c16_i32_182 = arith.constant 16 : i32
    %498 = vector.broadcast %c16_i32_182 : i32 to vector<1x512xi32>
    %499 = arith.cmpi slt, %497, %498 : vector<1x512xi32>
    %500 = arith.andi %495, %499 : vector<1x512xi1>
    %cst_183 = arith.constant 0.000000e+00 : f32
    %501 = vector.broadcast %cst_183 : f32 to vector<14x512xf32>
    %502 = vector.shape_cast %500 : vector<1x512xi1> to vector<1x512xi1>
    %503 = vector.broadcast %502 : vector<1x512xi1> to vector<14x512xi1>
    %504 = arith.select %503, %491, %501 : vector<14x512xi1>, vector<14x512xf32>
    %505 = tpu.concatenate %424, %440, %456, %408, %472, %488, %504 in 0 : vector<14x512xf32>, vector<14x512xf32>, vector<14x512xf32>, vector<14x512xf32>, vector<14x512xf32>, vector<14x512xf32>, vector<14x512xf32> -> vector<98x512xf32>
    %c0_184 = arith.constant 0 : index
    %c0_185 = arith.constant 0 : index
    %506 = vector.load %arg4[%c0_184, %c0_185] : memref<1x98xf32, #tpu.memory_space<vmem>>, vector<1x98xf32>
    %cst_186 = arith.constant dense<0.000000e+00> : vector<1x512xf32>
    %507 = tpu.matmul %506, %505, %cst_186 {dimension_numbers = #tpu.dot_dimension_numbers<[1], [0], [0], [1], [0, 0, 1, 1], [], []>} : vector<1x98xf32>, vector<98x512xf32>, vector<1x512xf32> -> vector<1x512xf32>
    %cst_187 = arith.constant 0.000000e+00 : f32
    %508 = vector.broadcast %cst_187 : f32 to vector<1x512xf32>
    %509 = arith.subf %508, %507 : vector<1x512xf32>
    %510 = math.exp %509 : vector<1x512xf32>
    %cst_188 = arith.constant 1.000000e+00 : f32
    %511 = vector.broadcast %cst_188 : f32 to vector<1x512xf32>
    %512 = arith.addf %511, %510 : vector<1x512xf32>
    %513 = tpu.reciprocal %512 {approx = true} : vector<1x512xf32> -> vector<1x512xf32>
    %514 = vector.extract_strided_slice %287 {offsets = [0, 0], sizes = [24, 256], strides = [1, 1]} : vector<48x256xf32> to vector<24x256xf32>
    %515 = vector.extract_strided_slice %513 {offsets = [0, 0], sizes = [1, 256], strides = [1, 1]} : vector<1x512xf32> to vector<1x256xf32>
    %516 = vector.broadcast %515 : vector<1x256xf32> to vector<24x256xf32>
    %517 = arith.mulf %514, %516 : vector<24x256xf32>
    %c0_189 = arith.constant 0 : index
    %c0_190 = arith.constant 0 : index
    %518 = vector.load %arg5[%c0_189, %c0_190] : memref<48x256xf32, #tpu.memory_space<vmem>>, vector<24x256xf32>
    tpu.vector_store %arg5[%c0_189, %c0_190], %517 {strides = array<i32>} : memref<48x256xf32, #tpu.memory_space<vmem>>, vector<24x256xf32>,
    %519 = vector.extract_strided_slice %287 {offsets = [24, 0], sizes = [24, 256], strides = [1, 1]} : vector<48x256xf32> to vector<24x256xf32>
    %520 = vector.extract_strided_slice %513 {offsets = [0, 256], sizes = [1, 256], strides = [1, 1]} : vector<1x512xf32> to vector<1x256xf32>
    %521 = vector.broadcast %520 : vector<1x256xf32> to vector<24x256xf32>
    %522 = arith.mulf %519, %521 : vector<24x256xf32>
    %c24 = arith.constant 24 : index
    %c0_191 = arith.constant 0 : index
    %523 = vector.load %arg5[%c24, %c0_191] : memref<48x256xf32, #tpu.memory_space<vmem>>, vector<24x256xf32>
    tpu.vector_store %arg5[%c24, %c0_191], %522 {strides = array<i32>} : memref<48x256xf32, #tpu.memory_space<vmem>>, vector<24x256xf32>,
    return
  }
  func.func @transform_0(%arg0: i32) -> (i32, i32) {
    %c0_i32 = arith.constant 0 : i32
    %c0_i32_0 = arith.constant 0 : i32
    return %arg0, %c0_i32 : i32, i32
  }
  func.func @transform_1(%arg0: i32) -> (i32, i32) {
    %c0_i32 = arith.constant 0 : i32
    %c0_i32_0 = arith.constant 0 : i32
    %c0_i32_1 = arith.constant 0 : i32
    return %c0_i32, %c0_i32_0 : i32, i32
  }
  func.func @transform_2(%arg0: i32) -> (i32, i32) {
    %c0_i32 = arith.constant 0 : i32
    %c0_i32_0 = arith.constant 0 : i32
    %c0_i32_1 = arith.constant 0 : i32
    return %c0_i32, %c0_i32_0 : i32, i32
  }
  func.func @transform_3(%arg0: i32) -> (i32, i32) {
    %c0_i32 = arith.constant 0 : i32
    %c0_i32_0 = arith.constant 0 : i32
    %c0_i32_1 = arith.constant 0 : i32
    return %c0_i32, %c0_i32_0 : i32, i32
  }
  func.func @transform_4(%arg0: i32) -> (i32, i32) {
    %c0_i32 = arith.constant 0 : i32
    %c0_i32_0 = arith.constant 0 : i32
    return %arg0, %c0_i32 : i32, i32
  }
}

</mosaic_0001>

<bundles_post_ra>
// kernel: _lambda_.1
= control target key start
LH: loop header
LB: loop body
LE: loop exit
PB: predicated region body
PF: predicated region fallthrough
CT: control target
= control target key end

     0   :  { %v4844_v3 = vmov 0   ;;  %v94_v25 = vlaneseq  ;;  %v4845_v27 = vmov 1   ;;  %v4846_v30 = vmov 0.0   ;;  %s4848_s17 = smov 16   ;;  %s4849_s8 = smov 120   ;;  %s7048_s0 = inlined_call_operand.vmem [shape: f32[48,256], index: 0, kind: input, shape index: {}]   ;;  %s7049_s1 = inlined_call_operand.vmem [shape: bf16[480,16], index: 1, kind: input, shape index: {}]   ;;  %s7050_s2 = inlined_call_operand.vmem [shape: f32[18,16], index: 2, kind: input, shape index: {}]   ;;  %s7051_s3 = inlined_call_operand.vmem [shape: f32[1,98], index: 3, kind: input, shape index: {}]   ;;  %s7052_s4 = inlined_call_operand.vmem [shape: f32[48,256], index: 4, kind: output, shape index: {}]  }
   0x1   :  { %v18_v0 = vld [vmem:[%s7048_s0] sm:$0xff]  ;;  %v19_v1 = vld [vmem:[%s7048_s0 + $0x8] sm:$0xff]  ;;  %v20_v2 = vld [vmem:[%s7048_s0 + $0x10] sm:$0xff]  ;;  %4441 = vset.pattern.permute.xlu1 %v4844_v3  ;;  %4440 = vset.pattern.permute.xlu0 %v4844_v3  ;;  %vm73_vm2 = vcmask 7168   ;;  %vm80_vm3 = vcmask 64512   ;;  %vm4847_vm4 = vmmov 0  }
   0x2   :  { %v48_v4 = vadd.f32 %v19_v1, %v18_v0  ;;  %v30_v5 = vmax.f32 %v18_v0, %v19_v1  ;;  %v21_v6 = vld [vmem:[%s7048_s0 + $0x18] sm:$0xff]  ;;  %v22_v9 = vld [vmem:[%s7048_s0 + $0x20] sm:$0xff]  ;;  %v23_v10 = vld [vmem:[%s7048_s0 + $0x28] sm:$0xff]  ;;  %v4926_v26 = vshrl.u32 %v94_v25, 7  ;;  %4090 = vmatprep.subr.bf16.mxu0 %v4846_v30  ;;  %4106 = vmatprep.subr.bf16.mxu1 %v4846_v30  ;;  %vm87_vm5 = vcmask 72704   ;;  %s4851_s6 = smov 2  }
   0x3   :  { %v51_v7 = vadd.f32 %v21_v6, %v20_v2  ;;  %v33_v8 = vmax.f32 %v20_v2, %v21_v6  ;;  %v24_v11 = vld [vmem:[%s7048_s0 + $0x30] sm:$0xff]  ;;  %v25_v12 = vld [vmem:[%s7048_s0 + $0x38] sm:$0xff]  ;;  %v54_v13 = vadd.f32 %v23_v10, %v22_v9  ;;  %v36_v15 = vmax.f32 %v22_v9, %v23_v10  ;;  %v26_v17 = vld [vmem:[%s7048_s0 + $0x40] sm:$0xff]  ;;  %4094 = vmatprep.mubr.msk.bf16.mxu0 %vm4847_vm4, %v4846_v30  ;;  %s4852_s7 = smov 125   ;;  %s4855_s9 = smov 3  }
   0x4   :  { %49 = vadd.xlane.f32.xlu0 %v48_v4  ;;  %31 = vmax.xlane.f32.xlu1 %v30_v5  ;;  %v57_v14 = vadd.f32 %v25_v12, %v24_v11  ;;  %v39_v16 = vmax.f32 %v24_v11, %v25_v12  ;;  %v27_v18 = vld [vmem:[%s7048_s0 + $0x48] sm:$0xff]  ;;  %v28_v19 = vld [vmem:[%s7048_s0 + $0x50] sm:$0xff]  ;;  %v29_v20 = vld [vmem:[%s7048_s0 + $0x58] sm:$0xff]  ;;  %vm133_vm0 = vcmp.ge.s32.totalorder %v4926_v26, 1  ;;  %vm548_vm1 = vcmp.ge.s32.totalorder %v4926_v26, 2  ;;  %s4856_s10 = smov 32  }
   0x5   :  { %v60_v21 = vadd.f32 %v27_v18, %v26_v17  ;;  %v63_v22 = vadd.f32 %v29_v20, %v28_v19  ;;  %v42_v23 = vmax.f32 %v26_v17, %v27_v18  ;;  %v45_v24 = vmax.f32 %v28_v19, %v29_v20  ;;  %v4762_v31 = vld [vmem:[%s7049_s1] sm:$0xff]   ;;  %v4763_v32 = vld [vmem:[%s7049_s1 + $0x8] sm:$0xff]   ;;  %4110 = vmatprep.mubr.msk.bf16.mxu1 %vm4847_vm4, %v4846_v30  ;;  %s4857_s11 = smov 48   ;;  %s4858_s12 = smov 96  }
   0x6   :  { %v136_v28 = vsel %vm133_vm0, 1, %v4844_v3  ;;  %v551_v29 = vsel %vm548_vm1, 1, %v4844_v3  ;;  %4091 = vmatpush3.bf16.msra.mxu0 %v4762_v31  ;;  %vm114_vm6 = vcmask 1040384   ;;  %vm7053_vm9 = vcmask 130048   ;;  %s4859_s13 = smov 112   ;;  %s4860_s14 = smov 80  }
   0x7   :  { %4092 = vmatprep.subr.bf16.mxu0 %v4846_v30  ;;  %vm7054_vm10 = vcmask 261120   ;;  %vm7061_vm12 = vcmask 1041408   ;;  %vm879_vm0 = vcmp.ge.s32.totalorder %v4926_v26, 4  ;;  %vm7059_vm1 = vcmask 1043456  }
   0x8   :  { %52 = vadd.xlane.f32.xlu0 %v51_v7  ;;  %34 = vmax.xlane.f32.xlu1 %v33_v8 }
   0xa   :  { %4093 = vmatpush3.bf16.msra.mxu0 %v4763_v32 }
   0xb   :  { %4122 = vmatprep.subr.bf16.mxu0 %v4846_v30 }
   0xc   :  { %55 = vadd.xlane.f32.xlu0 %v54_v13  ;;  %58 = vadd.xlane.f32.xlu1 %v57_v14 }
  0x10   :  { %37 = vmax.xlane.f32.xlu0 %v36_v15  ;;  %40 = vmax.xlane.f32.xlu1 %v39_v16 }
  0x14   :  { %61 = vadd.xlane.f32.xlu0 %v60_v21  ;;  %64 = vadd.xlane.f32.xlu1 %v63_v22 }
  0x18   :  { %43 = vmax.xlane.f32.xlu0 %v42_v23  ;;  %46 = vmax.xlane.f32.xlu1 %v45_v24 }
  0x29   :  { %143 = vperm.xlu1 %4441, %v4845_v27  }
  0x2d   :  { %146 = vperm.xlu1 %4441, %v4845_v27  }
  0x2e   :  { %140 = vperm.xlu0 %4440, %v136_v28  }
  0x32   :  { %555 = vperm.xlu0 %4440, %v551_v29  }
  0x36   :  { %561 = vperm.xlu0 %4440, %v4845_v27  }
  0x91   :  { %v50_v33 = vpop.xlane.xlu0 %49  ;;  %v32_v34 = vpop.xlane.xlu1 %31 }
  0x92   :  { %v67_v35 = vmul.f32 0.00390625, %v50_v33  ;;  %v74_v36 = vsel %vm73_vm2, %v32_v34, 0.0 }
  0x94   :  { %v81_v37 = vsel %vm80_vm3, %v74_v36, %v67_v35 }
  0x95   :  { %v53_v38 = vpop.xlane.xlu0 %52  ;;  %v35_v39 = vpop.xlane.xlu1 %34  ;;  %v4953_v42 = vsel %vm87_vm5, %v81_v37, 0.0 }
  0x96   :  { %v68_v40 = vmul.f32 0.00390625, %v53_v38  ;;  %v75_v41 = vsel %vm73_vm2, %v35_v39, 0.0  ;;  %v115_v47 = vrot.slane %v4953_v42, 7  ;;  %v4764_v38 = vld [vmem:[%s7049_s1 + $0x20] sm:$0xff]  }
  0x98   :  { %v82_v43 = vsel %vm80_vm3, %v75_v41, %v68_v40  ;;  %v132_v31 = vsel %vm114_vm6, 0.0, %v115_v47 }
  0x99   :  { %v4957_v44 = vsel %vm87_vm5, %v82_v43, 0.0  ;;  %v56_v45 = vpop.xlane.xlu0 %55  ;;  %v59_v46 = vpop.xlane.xlu1 %58 }
  0x9a   :  { %v116_v48 = vrot.slane %v4957_v44, 7  ;;  %v421_v49 = vpack.c.bf16 %v4957_v44, %v4953_v42  ;;  %v4442_v50 = vpack.i.bf16 %v4957_v44, %v4953_v42  ;;  %v69_v52 = vmul.f32 0.00390625, %v56_v45  ;;  %v4765_v42 = vld [vmem:[%s7049_s1 + $0x10] sm:$0xff]   ;;  %v4766_v44 = vld [vmem:[%s7049_s1 + $0x18] sm:$0xff]  }
  0x9b   :  { %v70_v53 = vmul.f32 0.00390625, %v59_v46  ;;  %4107 = vmatpush3.bf16.msra.mxu1 %v4765_v42 }
  0x9c   :  { %v117_v51 = vsel %vm114_vm6, %v115_v47, %v116_v48  ;;  %4443 = vrot.lane.b32.xlu1 %v4442_v50, %s4848_s17  ;;  %4108 = vmatprep.subr.bf16.mxu1 %v4846_v30 }
  0x9d   :  { %v38_v54 = vpop.xlane.xlu0 %37  ;;  %v41_v55 = vpop.xlane.xlu1 %40 }
  0x9e   :  { %v76_v56 = vsel %vm73_vm2, %v38_v54, 0.0  ;;  %v77_v57 = vsel %vm73_vm2, %v41_v55, 0.0 }
  0x9f   :  { %v83_v58 = vsel %vm80_vm3, %v76_v56, %v69_v52  ;;  %v84_v59 = vsel %vm80_vm3, %v77_v57, %v70_v53  ;;  %4109 = vmatpush3.bf16.msra.mxu1 %v4766_v44 }
  0xa0   :  { %v4972_v60 = vsel %vm87_vm5, %v83_v58, 0.0  ;;  %v4975_v61 = vsel %vm87_vm5, %v84_v59, 0.0  ;;  %4136 = vmatprep.subr.bf16.mxu1 %v4846_v30 }
  0xa1   :  { %v118_v62 = vrot.slane %v4972_v60, 7  ;;  %v120_v63 = vrot.slane %v4975_v61, 7  ;;  %v422_v0 = vpack.c.bf16 %v4975_v61, %v4972_v60  ;;  %v62_v1 = vpop.xlane.xlu0 %61  ;;  %v65_v2 = vpop.xlane.xlu1 %64  ;;  %v4447_v4 = vpack.i.bf16 %v4975_v61, %v4972_v60 }
  0xa2   :  { %v71_v5 = vmul.f32 0.00390625, %v62_v1  ;;  %v72_v6 = vmul.f32 0.00390625, %v65_v2 }
  0xa3   :  { %4448 = vrot.lane.b32.xlu1 %v4447_v4, %s4848_s17  ;;  %v119_v7 = vsel %vm114_vm6, %v116_v48, %v118_v62  ;;  %v121_v8 = vsel %vm114_vm6, %v118_v62, %v120_v63 }
  0xa5   :  { %v44_v9 = vpop.xlane.xlu0 %43  ;;  %v47_v10 = vpop.xlane.xlu1 %46 }
  0xa6   :  { %v78_v11 = vsel %vm73_vm2, %v44_v9, 0.0  ;;  %v79_v12 = vsel %vm73_vm2, %v47_v10, 0.0 }
  0xa7   :  { %v85_v13 = vsel %vm80_vm3, %v78_v11, %v71_v5  ;;  %v86_v14 = vsel %vm80_vm3, %v79_v12, %v72_v6 }
  0xa8   :  { %v92_v15 = vsel %vm87_vm5, %v85_v13, 0.0  ;;  %v93_v16 = vsel %vm87_vm5, %v86_v14, 0.0 }
  0xa9   :  { %v122_v17 = vrot.slane %v92_v15, 7  ;;  %v124_v18 = vrot.slane %v93_v16, 7  ;;  %v423_v19 = vpack.c.bf16 %v93_v16, %v92_v15  ;;  %v4452_v20 = vpack.i.bf16 %v93_v16, %v92_v15  ;;  %v4995_v23 = vpop.permute.xlu1 %143 }
  0xaa   :  { %vm149_vm7 = vcmp.eq.s32.totalorder %v4995_v23, 1  ;;  %v4780_v23 = vld [vmem:[%s7049_s1 + $0x90] sm:$0xff]  }
  0xab   :  { %v123_v21 = vsel %vm114_vm6, %v120_v63, %v122_v17  ;;  %4453 = vrot.lane.b32.xlu1 %v4452_v20, %s4848_s17  ;;  %v125_v22 = vsel %vm114_vm6, %v122_v17, %v124_v18  ;;  %v152_v35 = vsel %vm149_vm7, %v117_v51, 0.0 }
  0xac   :  { %v155_v54 = vsel %vm149_vm7, %v123_v21, 0.0 }
  0xad   :  { %v4997_v24 = vpop.permute.xlu0 %140  ;;  %v4999_v28 = vpop.permute.xlu1 %146 }
  0xae   :  { %vm148_vm8 = vcmp.eq.s32.totalorder %v4997_v24, 1  ;;  %vm150_vm11 = vcmp.eq.s32.totalorder %v4999_v28, 1  ;;  %v3937_v28 = vld [vmem:[%s7050_s2 + $0x8] ss:$0 sm:$0xff] }
  0xaf   :  { %v151_v34 = vsel %vm148_vm8, %v132_v31, 0.0  ;;  %v153_v45 = vsel %vm150_vm11, %v119_v7, 0.0  ;;  %v154_v46 = vsel %vm148_vm8, %v121_v8, 0.0  ;;  %v156_v55 = vsel %vm150_vm11, %v125_v22, 0.0 }
 0x10e   :  { %v4444_v29 = vpop.permute.xlu1 %4443 }
 0x10f   :  { %v4446_v32 = vunpack.i.h.bf16 %v4444_v29  ;;  %v4445_v33 = vunpack.i.l.bf16 %v4444_v29 }
 0x111   :  { %v177_v36 = vsel %vm7053_vm9, %v152_v35, %v4446_v32  ;;  %v176_v37 = vsel %vm7053_vm9, %v151_v34, %v4445_v33 }
 0x112   :  { %v182_v39 = vpack.c.bf16 %v177_v36, %v176_v37 }
 0x114   :  { %4095 = vmatmul.mubr.msk.bf16.vlgmr.msra.gmra.mrb[0].mxu0 %vm7054_vm10, %v182_v39 }
 0x115   :  { %v4449_v40 = vpop.permute.xlu1 %4448  ;;  %4098 = vmatprep.mubr.msk.bf16.mxu0 %vm4847_vm4, %v4846_v30  ;;  %4123 = vmatpush3.bf16.msra.mxu0 %v4764_v38 }
 0x116   :  { %v4451_v41 = vunpack.i.h.bf16 %v4449_v40  ;;  %v4450_v43 = vunpack.i.l.bf16 %v4449_v40  ;;  %4152 = vmatprep.subr.bf16.mxu0 %v4846_v30 }
 0x118   :  { %v179_v47 = vsel %vm7053_vm9, %v154_v46, %v4451_v41  ;;  %v178_v48 = vsel %vm7053_vm9, %v153_v45, %v4450_v43 }
 0x119   :  { %v183_v50 = vpack.c.bf16 %v179_v47, %v178_v48 }
 0x11c   :  { %4099 = vmatmul.mubr.msk.bf16.gmra.mrb[4].mxu0 %vm7054_vm10, %v183_v50 }
 0x11d   :  { %v4454_v51 = vpop.permute.xlu1 %4453  ;;  %4102 = vmatprep.mubr.msk.bf16.mxu0 %vm4847_vm4, %v4846_v30 }
 0x11e   :  { %v4456_v52 = vunpack.i.h.bf16 %v4454_v51  ;;  %v4455_v53 = vunpack.i.l.bf16 %v4454_v51 }
 0x120   :  { %v181_v56 = vsel %vm7053_vm9, %v156_v55, %v4456_v52  ;;  %v180_v57 = vsel %vm7053_vm9, %v155_v54, %v4455_v53 }
 0x121   :  { %v184_v58 = vpack.c.bf16 %v181_v56, %v180_v57 }
 0x124   :  { %4103 = vmatmul.mubr.msk.bf16.gmra.mrb[8].mxu0 %vm7054_vm10, %v184_v58 }
 0x125   :  { %4124 = vmatprep.mubr.msk.bf16.mxu0 %vm4847_vm4, %v4846_v30 }
 0x12c   :  { %4125 = vmatmul.mubr.msk.bf16.vlgmr.msra.gmra.mrb[12].mxu0 %vm7053_vm9, %v421_v49  ;;  %v3890_v49 = vld [vmem:[%s7050_s2] ss:$0 sm:$0xff] }
 0x12d   :  { %4128 = vmatprep.mubr.msk.bf16.mxu0 %vm4847_vm4, %v4846_v30 }
 0x134   :  { %4129 = vmatmul.mubr.msk.bf16.gmra.mrb[16].mxu0 %vm7053_vm9, %v422_v0 }
 0x135   :  { %4132 = vmatprep.mubr.msk.bf16.mxu0 %vm4847_vm4, %v4846_v30 }
 0x13c   :  { %4133 = vmatmul.mubr.msk.bf16.gmra.mrb[20].mxu0 %vm7053_vm9, %v423_v19 }
 0x13d   :  { %4156 = vmatprep.mubr.msk.bf16.mxu0 %vm4847_vm4, %v4846_v30 }
 0x1e7   :  { %v245_v59 = vpop.f32.mrb[0].mxu0 }
 0x1e8   :  { %v246_v60 = vadd.f32 %v3890_v49, %v245_v59  ;;  %v4096_v61 = vpop.f32.mrb[1].mxu0 }
 0x1e9   :  { %v248_v62 = vpop.f32.mrb[2].mxu0 }
 0x1ea   :  { %v268_v63 = vmax.f32 %v246_v60, 0.0  ;;  %v249_v0 = vadd.f32 %v3890_v49, %v248_v62  ;;  %v4097_v1 = vpop.f32.mrb[3].mxu0 }
 0x1ec   :  { %v269_v2 = vmax.f32 %v249_v0, 0.0  ;;  %v280_v4 = vrot.slane %v268_v63, 7 }
 0x1ee   :  { %v4457_v5 = vpack.i.bf16 %v269_v2, %v268_v63  ;;  %v281_v6 = vrot.slane %v269_v2, 7  ;;  %v297_v56 = vsel %vm114_vm6, 0.0, %v280_v4 }
 0x1ef   :  { %v253_v7 = vpop.f32.mrb[4].mxu0  ;;  %v298_v44 = vsel %vm148_vm8, %v297_v56, 0.0 }
 0x1f0   :  { %v282_v8 = vsel %vm114_vm6, %v280_v4, %v281_v6  ;;  %v254_v9 = vadd.f32 %v3890_v49, %v253_v7  ;;  %4458 = vrot.lane.b32.xlu1 %v4457_v5, %s4848_s17  ;;  %v4100_v10 = vpop.f32.mrb[5].mxu0 }
 0x1f1   :  { %v256_v11 = vpop.f32.mrb[6].mxu0 }
 0x1f2   :  { %v270_v12 = vmax.f32 %v254_v9, 0.0  ;;  %v257_v13 = vadd.f32 %v3890_v49, %v256_v11  ;;  %v4101_v14 = vpop.f32.mrb[7].mxu0 }
 0x1f4   :  { %v283_v15 = vrot.slane %v270_v12, 7  ;;  %v271_v16 = vmax.f32 %v257_v13, 0.0 }
 0x1f6   :  { %v284_v17 = vsel %vm114_vm6, %v281_v6, %v283_v15  ;;  %v4462_v18 = vpack.i.bf16 %v271_v16, %v270_v12  ;;  %v285_v19 = vrot.slane %v271_v16, 7  ;;  %v4768_v16 = vld [vmem:[%s7049_s1 + $0x30] sm:$0xff]  }
 0x1f7   :  { %v261_v20 = vpop.f32.mrb[8].mxu0  ;;  %v300_v1 = vsel %vm150_vm11, %v284_v17, 0.0  ;;  %v3896_v17 = vld [vmem:[%s7050_s2 + $0x1] ss:$0 sm:$0xff] }
 0x1f8   :  { %v286_v21 = vsel %vm114_vm6, %v283_v15, %v285_v19  ;;  %v262_v22 = vadd.f32 %v3890_v49, %v261_v20  ;;  %4463 = vrot.lane.b32.xlu1 %v4462_v18, %s4848_s17  ;;  %v4104_v29 = vpop.f32.mrb[9].mxu0  ;;  %v4767_v15 = vld [vmem:[%s7049_s1 + $0x28] sm:$0xff]   ;;  %v3902_v18 = vld [vmem:[%s7050_s2 + $0x2] ss:$0 sm:$0xff] }
 0x1f9   :  { %v264_v31 = vpop.f32.mrb[10].mxu0  ;;  %v301_v2 = vsel %vm148_vm8, %v286_v21, 0.0 }
 0x1fa   :  { %v272_v32 = vmax.f32 %v262_v22, 0.0  ;;  %v265_v33 = vadd.f32 %v3890_v49, %v264_v31  ;;  %v4105_v34 = vpop.f32.mrb[11].mxu0  ;;  %v299_v49 = vsel %vm149_vm7, %v282_v8, 0.0 }
 0x1fc   :  { %v287_v35 = vrot.slane %v272_v32, 7  ;;  %v273_v36 = vmax.f32 %v265_v33, 0.0 }
 0x1fe   :  { %v288_v37 = vsel %vm114_vm6, %v285_v19, %v287_v35  ;;  %v4467_v38 = vpack.i.bf16 %v273_v36, %v272_v32  ;;  %v289_v39 = vrot.slane %v273_v36, 7 }
 0x1ff   :  { %v478_v40 = vpop.f32.mrb[12].mxu0  ;;  %v302_v10 = vsel %vm149_vm7, %v288_v37, 0.0 }
 0x200   :  { %v290_v41 = vsel %vm114_vm6, %v287_v35, %v289_v39  ;;  %4468 = vrot.lane.b32.xlu1 %v4467_v38, %s4848_s17  ;;  %v4126_v43 = vpop.f32.mrb[13].mxu0  ;;  %v479_v29 = vadd.f32 %v3902_v18, %v478_v40 }
 0x201   :  { %v481_v45 = vpop.f32.mrb[14].mxu0  ;;  %v303_v11 = vsel %vm150_vm11, %v290_v41, 0.0 }
 0x202   :  { %v4127_v46 = vpop.f32.mrb[15].mxu0  ;;  %v482_v34 = vadd.f32 %v3902_v18, %v481_v45 }
 0x204   :  { %558 = vperm.xlu1 %4441, %v4845_v27  }
 0x207   :  { %v5071_v47 = vpop.f32.mrb[16].mxu0 }
 0x208   :  { %v4130_v48 = vpop.f32.mrb[17].mxu0 }
 0x209   :  { %v5073_v50 = vpop.f32.mrb[18].mxu0 }
 0x20a   :  { %v4131_v51 = vpop.f32.mrb[19].mxu0  ;;  %v490_v45 = vadd.f32 %v3902_v18, %v5073_v50 }
 0x20b   :  { %v487_v51 = vadd.f32 %v3902_v18, %v5071_v47 }
 0x20f   :  { %v5075_v52 = vpop.f32.mrb[20].mxu0 }
 0x210   :  { %v4134_v53 = vpop.f32.mrb[21].mxu0 }
 0x211   :  { %v5077_v54 = vpop.f32.mrb[22].mxu0 }
 0x212   :  { %v4135_v55 = vpop.f32.mrb[23].mxu0 }
 0x262   :  { %v4459_v57 = vpop.permute.xlu1 %4458 }
 0x263   :  { %v4461_v58 = vunpack.i.h.bf16 %v4459_v57  ;;  %v4460_v42 = vunpack.i.l.bf16 %v4459_v57 }
 0x265   :  { %v322_v59 = vsel %vm7053_vm9, %v298_v44, %v4460_v42  ;;  %v323_v60 = vsel %vm7053_vm9, %v299_v49, %v4461_v58 }
 0x266   :  { %v328_v61 = vpack.c.bf16 %v323_v60, %v322_v59 }
 0x268   :  { %4111 = vmatmul.mubr.msk.bf16.vlgmr.msra.gmra.mrb[0].mxu1 %vm7054_vm10, %v328_v61 }
 0x269   :  { %4114 = vmatprep.mubr.msk.bf16.mxu1 %vm4847_vm4, %v4846_v30  ;;  %4137 = vmatpush3.bf16.msra.mxu1 %v4767_v15 }
 0x26a   :  { %v4464_v62 = vpop.permute.xlu1 %4463  ;;  %4138 = vmatprep.subr.bf16.mxu1 %v4846_v30 }
 0x26b   :  { %v4466_v63 = vunpack.i.h.bf16 %v4464_v62  ;;  %v4465_v0 = vunpack.i.l.bf16 %v4464_v62  ;;  %v495_v62 = vadd.f32 %v3902_v18, %v5075_v52 }
 0x26d   :  { %v324_v4 = vsel %vm7053_vm9, %v300_v1, %v4465_v0  ;;  %v325_v5 = vsel %vm7053_vm9, %v301_v2, %v4466_v63  ;;  %4139 = vmatpush3.bf16.msra.mxu1 %v4768_v16  ;;  %v498_v2 = vadd.f32 %v3902_v18, %v5077_v54  ;;  %v5150_v54 = vpop.permute.xlu0 %555 }
 0x26e   :  { %v329_v6 = vpack.c.bf16 %v325_v5, %v324_v4  ;;  %4168 = vmatprep.subr.bf16.mxu1 %v4846_v30  ;;  %vm563_vm13 = vcmp.eq.s32.totalorder %v5150_v54, 1 }
 0x270   :  { %4115 = vmatmul.mubr.msk.bf16.gmra.mrb[4].mxu1 %vm7054_vm10, %v329_v6 }
 0x271   :  { %4118 = vmatprep.mubr.msk.bf16.mxu1 %vm4847_vm4, %v4846_v30 }
 0x272   :  { %v4469_v7 = vpop.permute.xlu1 %4468 }
 0x273   :  { %v4471_v8 = vunpack.i.h.bf16 %v4469_v7  ;;  %v4470_v9 = vunpack.i.l.bf16 %v4469_v7 }
 0x275   :  { %v326_v12 = vsel %vm7053_vm9, %v302_v10, %v4470_v9  ;;  %v327_v13 = vsel %vm7053_vm9, %v303_v11, %v4471_v8 }
 0x276   :  { %v330_v14 = vpack.c.bf16 %v327_v13, %v326_v12 }
 0x278   :  { %4119 = vmatmul.mubr.msk.bf16.gmra.mrb[8].mxu1 %vm7054_vm10, %v330_v14 }
 0x279   :  { %4140 = vmatprep.mubr.msk.bf16.mxu1 %vm4847_vm4, %v4846_v30 }
 0x283   :  { %v5148_v11 = vpop.permute.xlu1 %558 }
 0x284   :  { %vm564_vm14 = vcmp.eq.s32.totalorder %v5148_v11, 1  ;;  %v4784_v11 = vld [vmem:[%s7049_s1 + $0xb0] sm:$0xff]  }
 0x33b   :  { %v390_v19 = vpop.f32.mrb[0].mxu1 }
 0x33c   :  { %v391_v20 = vadd.f32 %v3896_v17, %v390_v19  ;;  %v4112_v21 = vpop.f32.mrb[1].mxu1 }
 0x33d   :  { %v393_v22 = vpop.f32.mrb[2].mxu1 }
 0x33e   :  { %v413_v31 = vmax.f32 %v391_v20, 0.0  ;;  %v394_v32 = vadd.f32 %v3896_v17, %v393_v22  ;;  %v4113_v33 = vpop.f32.mrb[3].mxu1 }
 0x340   :  { %v501_v35 = vadd.f32 %v479_v29, %v413_v31  ;;  %v414_v36 = vmax.f32 %v394_v32, 0.0  ;;  %v5164_v29 = vpop.permute.xlu0 %561 }
 0x341   :  { %vm565_vm15 = vcmp.eq.s32.totalorder %v5164_v29, 1  ;;  %v3949_v29 = vld [vmem:[%s7050_s2 + $0xa] ss:$0 sm:$0xff] }
 0x342   :  { %v502_v37 = vadd.f32 %v482_v34, %v414_v36  ;;  %v5121_v39 = vmax.f32 %v501_v35, 0.0 }
 0x343   :  { %v398_v38 = vpop.f32.mrb[4].mxu1 }
 0x344   :  { %v5123_v41 = vmax.f32 %v502_v37, 0.0  ;;  %v399_v43 = vadd.f32 %v3896_v17, %v398_v38  ;;  %v4116_v46 = vpop.f32.mrb[5].mxu1  ;;  %v530_v9 = vrot.slane %v5121_v39, 6 }
 0x345   :  { %v401_v48 = vpop.f32.mrb[6].mxu1 }
 0x346   :  { %v415_v53 = vmax.f32 %v399_v43, 0.0  ;;  %v402_v55 = vadd.f32 %v3896_v17, %v401_v48  ;;  %v4117_v40 = vpop.f32.mrb[7].mxu1  ;;  %v4472_v56 = vpack.i.bf16 %v5123_v41, %v5121_v39  ;;  %v531_v10 = vrot.slane %v5123_v41, 6 }
 0x347   :  { %v547_v12 = vsel %vm7061_vm12, 0.0, %v530_v9 }
 0x348   :  { %v503_v57 = vadd.f32 %v487_v51, %v415_v53  ;;  %v416_v58 = vmax.f32 %v402_v55, 0.0  ;;  %4473 = vrot.lane.b32.xlu1 %v4472_v56, %s4848_s17  ;;  %v532_v13 = vsel %vm7061_vm12, %v530_v9, %v531_v10 }
 0x349   :  { %v567_v18 = vsel %vm564_vm14, %v532_v13, 0.0 }
 0x34a   :  { %v504_v42 = vadd.f32 %v490_v45, %v416_v58  ;;  %v5130_v49 = vmax.f32 %v503_v57, 0.0 }
 0x34b   :  { %v406_v44 = vpop.f32.mrb[8].mxu1 }
 0x34c   :  { %v5132_v59 = vmax.f32 %v504_v42, 0.0  ;;  %v407_v60 = vadd.f32 %v3896_v17, %v406_v44  ;;  %v4120_v47 = vpop.f32.mrb[9].mxu1  ;;  %v533_v19 = vrot.slane %v5130_v49, 6 }
 0x34d   :  { %v409_v61 = vpop.f32.mrb[10].mxu1 }
 0x34e   :  { %v417_v63 = vmax.f32 %v407_v60, 0.0  ;;  %v410_v0 = vadd.f32 %v3896_v17, %v409_v61  ;;  %v4121_v1 = vpop.f32.mrb[11].mxu1  ;;  %v4477_v50 = vpack.i.bf16 %v5132_v59, %v5130_v49  ;;  %v566_v17 = vsel %vm563_vm13, %v547_v12, 0.0  ;;  %v4769_v61 = vld [vmem:[%s7049_s1 + $0x38] sm:$0xff]  }
 0x34f   :  { %v535_v20 = vrot.slane %v5132_v59, 6  ;;  %v534_v32 = vsel %vm7061_vm12, %v531_v10, %v533_v19  ;;  %4153 = vmatpush3.bf16.msra.mxu0 %v4769_v61 }
 0x350   :  { %v505_v4 = vadd.f32 %v495_v62, %v417_v63  ;;  %v418_v5 = vmax.f32 %v410_v0, 0.0  ;;  %4478 = vrot.lane.b32.xlu0 %v4477_v50, %s4848_s17  ;;  %v568_v37 = vsel %vm565_vm15, %v534_v32, 0.0  ;;  %v4770_v62 = vld [vmem:[%s7049_s1 + $0x40] sm:$0xff]   ;;  %4154 = vmatprep.subr.bf16.mxu0 %v4846_v30 }
 0x351   :  { %v536_v33 = vsel %vm7061_vm12, %v533_v19, %v535_v20  ;;  %v3907_v63 = vld [vmem:[%s7050_s2 + $0x3] ss:$0 sm:$0xff] }
 0x352   :  { %v506_v6 = vadd.f32 %v498_v2, %v418_v5  ;;  %v5139_v7 = vmax.f32 %v505_v4, 0.0  ;;  %v569_v38 = vsel %vm563_vm13, %v536_v33, 0.0 }
 0x353   :  { %4155 = vmatpush3.bf16.msra.mxu0 %v4770_v62 }
 0x354   :  { %v5141_v8 = vmax.f32 %v506_v6, 0.0  ;;  %v537_v43 = vrot.slane %v5139_v7, 6  ;;  %4184 = vmatprep.subr.bf16.mxu0 %v4846_v30 }
 0x356   :  { %v4482_v52 = vpack.i.bf16 %v5141_v8, %v5139_v7  ;;  %v539_v46 = vrot.slane %v5141_v8, 6  ;;  %v538_v55 = vsel %vm7061_vm12, %v535_v20, %v537_v43 }
 0x357   :  { %v570_v58 = vsel %vm564_vm14, %v538_v55, 0.0 }
 0x358   :  { %4483 = vrot.lane.b32.xlu1 %v4482_v52, %s4848_s17  ;;  %v540_v40 = vsel %vm7061_vm12, %v537_v43, %v539_v46  ;;  %v882_v43 = vsel %vm879_vm0, 1, %v4844_v3 }
 0x359   :  { %v571_v42 = vsel %vm565_vm15, %v540_v40, 0.0 }
 0x3ba   :  { %v4474_v14 = vpop.permute.xlu1 %4473 }
 0x3bb   :  { %v4476_v15 = vunpack.i.h.bf16 %v4474_v14  ;;  %v4475_v16 = vunpack.i.l.bf16 %v4474_v14 }
 0x3bd   :  { %v590_v21 = vsel %vm7053_vm9, %v566_v17, %v4475_v16  ;;  %v591_v22 = vsel %vm7053_vm9, %v567_v18, %v4476_v15 }
 0x3be   :  { %v596_v31 = vpack.c.bf16 %v591_v22, %v590_v21 }
 0x3c0   :  { %4141 = vmatmul.mubr.msk.bf16.vlgmr.msra.gmra.mrb[12].mxu1 %vm7054_vm10, %v596_v31 }
 0x3c1   :  { %4144 = vmatprep.mubr.msk.bf16.mxu1 %vm4847_vm4, %v4846_v30 }
 0x3c2   :  { %v4479_v34 = vpop.permute.xlu0 %4478 }
 0x3c3   :  { %v4481_v35 = vunpack.i.h.bf16 %v4479_v34  ;;  %v4480_v36 = vunpack.i.l.bf16 %v4479_v34 }
 0x3c5   :  { %v592_v48 = vsel %vm7053_vm9, %v568_v37, %v4480_v36  ;;  %v593_v51 = vsel %vm7053_vm9, %v569_v38, %v4481_v35 }
 0x3c6   :  { %v597_v53 = vpack.c.bf16 %v593_v51, %v592_v48 }
 0x3c8   :  { %4145 = vmatmul.mubr.msk.bf16.gmra.mrb[16].mxu1 %vm7054_vm10, %v597_v53 }
 0x3c9   :  { %4148 = vmatprep.mubr.msk.bf16.mxu1 %vm4847_vm4, %v4846_v30 }
 0x3ca   :  { %v4484_v56 = vpop.permute.xlu1 %4483 }
 0x3cb   :  { %v4486_v45 = vunpack.i.h.bf16 %v4484_v56  ;;  %v4485_v57 = vunpack.i.l.bf16 %v4484_v56 }
 0x3cd   :  { %v594_v44 = vsel %vm7053_vm9, %v570_v58, %v4485_v57  ;;  %v595_v60 = vsel %vm7053_vm9, %v571_v42, %v4486_v45 }
 0x3ce   :  { %v598_v47 = vpack.c.bf16 %v595_v60, %v594_v44 }
 0x3d0   :  { %4149 = vmatmul.mubr.msk.bf16.gmra.mrb[20].mxu1 %vm7054_vm10, %v598_v47 }
 0x3d1   :  { %4172 = vmatprep.mubr.msk.bf16.mxu1 %vm4847_vm4, %v4846_v30 }
 0x493   :  { %v658_v0 = vpop.f32.mrb[12].mxu1 }
 0x494   :  { %v659_v1 = vadd.f32 %v3907_v63, %v658_v0  ;;  %v4142_v50 = vpop.f32.mrb[13].mxu1 }
 0x495   :  { %v661_v2 = vpop.f32.mrb[14].mxu1 }
 0x496   :  { %v681_v4 = vmax.f32 %v659_v1, 0.0  ;;  %v662_v5 = vadd.f32 %v3907_v63, %v661_v2  ;;  %v4143_v6 = vpop.f32.mrb[15].mxu1 }
 0x498   :  { %v682_v52 = vmax.f32 %v662_v5, 0.0  ;;  %v693_v9 = vrot.slane %v681_v4, 6 }
 0x49a   :  { %v4487_v10 = vpack.i.bf16 %v682_v52, %v681_v4  ;;  %v694_v12 = vrot.slane %v682_v52, 6  ;;  %v710_v3 = vsel %vm7061_vm12, 0.0, %v693_v9 }
 0x49b   :  { %v666_v13 = vpop.f32.mrb[16].mxu1  ;;  %v711_v60 = vsel %vm563_vm13, %v710_v3, 0.0 }
 0x49c   :  { %v695_v14 = vsel %vm7061_vm12, %v693_v9, %v694_v12  ;;  %v667_v15 = vadd.f32 %v3907_v63, %v666_v13  ;;  %4488 = vrot.lane.b32.xlu0 %v4487_v10, %s4848_s17  ;;  %v4146_v16 = vpop.f32.mrb[17].mxu1 }
 0x49d   :  { %v669_v17 = vpop.f32.mrb[18].mxu1  ;;  %v712_v47 = vsel %vm564_vm14, %v695_v14, 0.0 }
 0x49e   :  { %v683_v18 = vmax.f32 %v667_v15, 0.0  ;;  %v670_v19 = vadd.f32 %v3907_v63, %v669_v17  ;;  %v4147_v20 = vpop.f32.mrb[19].mxu1  ;;  %v4771_v17 = vld [vmem:[%s7049_s1 + $0x48] sm:$0xff]  }
 0x49f   :  { %4169 = vmatpush3.bf16.msra.mxu1 %v4771_v17 }
 0x4a0   :  { %v696_v21 = vrot.slane %v683_v18, 6  ;;  %v684_v22 = vmax.f32 %v670_v19, 0.0  ;;  %4170 = vmatprep.subr.bf16.mxu1 %v4846_v30  ;;  %v3913_v19 = vld [vmem:[%s7050_s2 + $0x4] ss:$0 sm:$0xff] }
 0x4a2   :  { %v697_v31 = vsel %vm7061_vm12, %v694_v12, %v696_v21  ;;  %v4492_v32 = vpack.i.bf16 %v684_v22, %v683_v18  ;;  %v698_v33 = vrot.slane %v684_v22, 6  ;;  %v4772_v18 = vld [vmem:[%s7049_s1 + $0x50] sm:$0xff]  }
 0x4a3   :  { %v674_v34 = vpop.f32.mrb[20].mxu1  ;;  %v713_v50 = vsel %vm565_vm15, %v697_v31, 0.0  ;;  %4171 = vmatpush3.bf16.msra.mxu1 %v4772_v18 }
 0x4a4   :  { %v699_v35 = vsel %vm7061_vm12, %v696_v21, %v698_v33  ;;  %v675_v36 = vadd.f32 %v3907_v63, %v674_v34  ;;  %4493 = vrot.lane.b32.xlu1 %v4492_v32, %s4848_s17  ;;  %v4150_v37 = vpop.f32.mrb[21].mxu1  ;;  %4200 = vmatprep.subr.bf16.mxu1 %v4846_v30 }
 0x4a5   :  { %v677_v38 = vpop.f32.mrb[22].mxu1  ;;  %v714_v2 = vsel %vm563_vm13, %v699_v35, 0.0 }
 0x4a6   :  { %v685_v46 = vmax.f32 %v675_v36, 0.0  ;;  %v678_v48 = vadd.f32 %v3907_v63, %v677_v38  ;;  %v4151_v51 = vpop.f32.mrb[23].mxu1 }
 0x4a8   :  { %v700_v53 = vrot.slane %v685_v46, 6  ;;  %v686_v55 = vmax.f32 %v678_v48, 0.0  ;;  %886 = vperm.xlu1 %4441, %v882_v43  }
 0x4aa   :  { %v701_v40 = vsel %vm7061_vm12, %v698_v33, %v700_v53  ;;  %v4497_v56 = vpack.i.bf16 %v686_v55, %v685_v46  ;;  %v702_v45 = vrot.slane %v686_v55, 6 }
 0x4ab   :  { %v715_v12 = vsel %vm564_vm14, %v701_v40, 0.0 }
 0x4ac   :  { %v703_v57 = vsel %vm7061_vm12, %v700_v53, %v702_v45  ;;  %892 = vperm.xlu1 %4441, %v4845_v27   ;;  %4498 = vrot.lane.b32.xlu0 %v4497_v56, %s4848_s17 }
 0x4ad   :  { %v716_v13 = vsel %vm565_vm15, %v703_v57, 0.0 }
 0x4b0   :  { %889 = vperm.xlu0 %4440, %v4845_v27  }
 0x50e   :  { %v4489_v58 = vpop.permute.xlu0 %4488 }
 0x50f   :  { %v4491_v42 = vunpack.i.h.bf16 %v4489_v58  ;;  %v4490_v44 = vunpack.i.l.bf16 %v4489_v58 }
 0x511   :  { %v736_v61 = vsel %vm7053_vm9, %v712_v47, %v4491_v42  ;;  %v735_v62 = vsel %vm7053_vm9, %v711_v60, %v4490_v44 }
 0x512   :  { %v741_v63 = vpack.c.bf16 %v736_v61, %v735_v62 }
 0x514   :  { %4157 = vmatmul.mubr.msk.bf16.vlgmr.msra.gmra.mrb[24].mxu0 %vm7054_vm10, %v741_v63 }
 0x515   :  { %4160 = vmatprep.mubr.msk.bf16.mxu0 %vm4847_vm4, %v4846_v30 }
 0x516   :  { %v4494_v27 = vpop.permute.xlu1 %4493 }
 0x517   :  { %v4496_v0 = vunpack.i.h.bf16 %v4494_v27  ;;  %v4495_v1 = vunpack.i.l.bf16 %v4494_v27 }
 0x519   :  { %v738_v4 = vsel %vm7053_vm9, %v714_v2, %v4496_v0  ;;  %v737_v5 = vsel %vm7053_vm9, %v713_v50, %v4495_v1 }
 0x51a   :  { %v742_v6 = vpack.c.bf16 %v738_v4, %v737_v5 }
 0x51c   :  { %4161 = vmatmul.mubr.msk.bf16.gmra.mrb[28].mxu0 %vm7054_vm10, %v742_v6 }
 0x51d   :  { %4164 = vmatprep.mubr.msk.bf16.mxu0 %vm4847_vm4, %v4846_v30 }
 0x51e   :  { %v4499_v52 = vpop.permute.xlu0 %4498 }
 0x51f   :  { %v4501_v9 = vunpack.i.h.bf16 %v4499_v52  ;;  %v4500_v10 = vunpack.i.l.bf16 %v4499_v52 }
 0x521   :  { %v739_v14 = vsel %vm7053_vm9, %v715_v12, %v4500_v10  ;;  %v740_v15 = vsel %vm7053_vm9, %v716_v13, %v4501_v9 }
 0x522   :  { %v743_v16 = vpack.c.bf16 %v740_v15, %v739_v14 }
 0x524   :  { %4165 = vmatmul.mubr.msk.bf16.gmra.mrb[32].mxu0 %vm7054_vm10, %v743_v16 }
 0x525   :  { %4188 = vmatprep.mubr.msk.bf16.mxu0 %vm4847_vm4, %v4846_v30 }
 0x52f   :  { %v5285_v6 = vpop.permute.xlu0 %889 }
 0x530   :  { %vm895_vm5 = vcmp.eq.s32.totalorder %v5285_v6, 1  ;;  %v3961_v6 = vld [vmem:[%s7050_s2 + $0xc] ss:$0 sm:$0xff] }
 0x5e7   :  { %v803_v20 = vpop.f32.mrb[24].mxu0 }
 0x5e8   :  { %v804_v21 = vadd.f32 %v3913_v19, %v803_v20  ;;  %v4158_v22 = vpop.f32.mrb[25].mxu0 }
 0x5e9   :  { %v806_v31 = vpop.f32.mrb[26].mxu0 }
 0x5ea   :  { %v826_v32 = vmax.f32 %v804_v21, 0.0  ;;  %v807_v33 = vadd.f32 %v3913_v19, %v806_v31  ;;  %v4159_v34 = vpop.f32.mrb[27].mxu0 }
 0x5ec   :  { %v832_v35 = vadd.f32 %v826_v32, %v5121_v39  ;;  %v827_v36 = vmax.f32 %v807_v33, 0.0 }
 0x5ee   :  { %v833_v37 = vadd.f32 %v827_v36, %v5123_v41  ;;  %v5258_v43 = vmax.f32 %v832_v35, 0.0 }
 0x5ef   :  { %v811_v38 = vpop.f32.mrb[28].mxu0 }
 0x5f0   :  { %v5260_v46 = vmax.f32 %v833_v37, 0.0  ;;  %v812_v48 = vadd.f32 %v3913_v19, %v811_v38  ;;  %v4162_v51 = vpop.f32.mrb[29].mxu0  ;;  %v861_v4 = vrot.slane %v5258_v43, 4 }
 0x5f1   :  { %v814_v53 = vpop.f32.mrb[30].mxu0 }
 0x5f2   :  { %v828_v55 = vmax.f32 %v812_v48, 0.0  ;;  %v815_v40 = vadd.f32 %v3913_v19, %v814_v53  ;;  %v4163_v56 = vpop.f32.mrb[31].mxu0  ;;  %v4502_v45 = vpack.i.bf16 %v5260_v46, %v5258_v43  ;;  %v862_v5 = vrot.slane %v5260_v46, 4 }
 0x5f4   :  { %v834_v57 = vadd.f32 %v828_v55, %v5130_v49  ;;  %v829_v39 = vmax.f32 %v815_v40, 0.0  ;;  %4503 = vrot.lane.b32.xlu0 %v4502_v45, %s4848_s17  ;;  %v863_v52 = vsel %vm7059_vm1, %v861_v4, %v862_v5 }
 0x5f5   :  { %v898_v14 = vsel %vm895_vm5, %v863_v52, 0.0 }
 0x5f6   :  { %v835_v41 = vadd.f32 %v829_v39, %v5132_v59  ;;  %v5267_v58 = vmax.f32 %v834_v57, 0.0 }
 0x5f7   :  { %v819_v3 = vpop.f32.mrb[32].mxu0 }
 0x5f8   :  { %v5269_v42 = vmax.f32 %v835_v41, 0.0  ;;  %v820_v44 = vadd.f32 %v3913_v19, %v819_v3  ;;  %v4166_v60 = vpop.f32.mrb[33].mxu0  ;;  %v864_v15 = vrot.slane %v5267_v58, 4 }
 0x5f9   :  { %v822_v47 = vpop.f32.mrb[34].mxu0  ;;  %v4773_v60 = vld [vmem:[%s7049_s1 + $0x58] sm:$0xff]  }
 0x5fa   :  { %v830_v61 = vmax.f32 %v820_v44, 0.0  ;;  %v823_v62 = vadd.f32 %v3913_v19, %v822_v47  ;;  %v4167_v63 = vpop.f32.mrb[35].mxu0  ;;  %v4507_v27 = vpack.i.bf16 %v5269_v42, %v5267_v58  ;;  %v866_v16 = vrot.slane %v5269_v42, 4  ;;  %4185 = vmatpush3.bf16.msra.mxu0 %v4773_v60  ;;  %v4774_v47 = vld [vmem:[%s7049_s1 + $0x60] sm:$0xff]  }
 0x5fb   :  { %v865_v21 = vsel %vm7059_vm1, %v862_v5, %v864_v15  ;;  %4186 = vmatprep.subr.bf16.mxu0 %v4846_v30 }
 0x5fc   :  { %v836_v49 = vadd.f32 %v830_v61, %v5139_v7  ;;  %v831_v0 = vmax.f32 %v823_v62, 0.0  ;;  %4508 = vrot.lane.b32.xlu1 %v4507_v27, %s4848_s17  ;;  %v5287_v7 = vpop.permute.xlu1 %886  ;;  %v867_v22 = vsel %vm7059_vm1, %v864_v15, %v866_v16  ;;  %v3919_v61 = vld [vmem:[%s7050_s2 + $0x5] ss:$0 sm:$0xff] }
 0x5fd   :  { %vm894_vm3 = vcmp.eq.s32.totalorder %v5287_v7, 1 }
 0x5fe   :  { %v837_v59 = vadd.f32 %v831_v0, %v5141_v8  ;;  %v5276_v1 = vmax.f32 %v836_v49, 0.0  ;;  %v878_v8 = vsel %vm7059_vm1, 0.0, %v861_v4  ;;  %v900_v35 = vsel %vm894_vm3, %v867_v22, 0.0  ;;  %4187 = vmatpush3.bf16.msra.mxu0 %v4774_v47 }
 0x5ff   :  { %v897_v13 = vsel %vm894_vm3, %v878_v8, 0.0  ;;  %4216 = vmatprep.subr.bf16.mxu0 %v4846_v30 }
 0x600   :  { %v5278_v50 = vmax.f32 %v837_v59, 0.0  ;;  %v5301_v19 = vpop.permute.xlu1 %892  ;;  %v868_v36 = vrot.slane %v5276_v1, 4 }
 0x601   :  { %vm896_vm0 = vcmp.eq.s32.totalorder %v5301_v19, 1 }
 0x602   :  { %v4512_v2 = vpack.i.bf16 %v5278_v50, %v5276_v1  ;;  %v899_v34 = vsel %vm896_vm0, %v865_v21, 0.0  ;;  %v870_v37 = vrot.slane %v5278_v50, 4  ;;  %v869_v53 = vsel %vm7059_vm1, %v866_v16, %v868_v36 }
 0x603   :  { %v901_v57 = vsel %vm895_vm5, %v869_v53, 0.0 }
 0x604   :  { %4513 = vrot.lane.b32.xlu0 %v4512_v2, %s4848_s17  ;;  %v871_v55 = vsel %vm7059_vm1, %v868_v36, %v870_v37 }
 0x605   :  { %v902_v39 = vsel %vm896_vm0, %v871_v55, 0.0 }
 0x666   :  { %v4504_v9 = vpop.permute.xlu0 %4503 }
 0x667   :  { %v4506_v10 = vunpack.i.h.bf16 %v4504_v9  ;;  %v4505_v12 = vunpack.i.l.bf16 %v4504_v9 }
 0x669   :  { %v921_v17 = vsel %vm7053_vm9, %v897_v13, %v4505_v12  ;;  %v922_v18 = vsel %vm7053_vm9, %v898_v14, %v4506_v10 }
 0x66a   :  { %v927_v20 = vpack.c.bf16 %v922_v18, %v921_v17 }
 0x66c   :  { %4173 = vmatmul.mubr.msk.bf16.vlgmr.msra.gmra.mrb[24].mxu1 %vm7054_vm10, %v927_v20 }
 0x66d   :  { %4176 = vmatprep.mubr.msk.bf16.mxu1 %vm4847_vm4, %v4846_v30 }
 0x66e   :  { %v4509_v31 = vpop.permute.xlu1 %4508 }
 0x66f   :  { %v4511_v32 = vunpack.i.h.bf16 %v4509_v31  ;;  %v4510_v33 = vunpack.i.l.bf16 %v4509_v31 }
 0x671   :  { %v923_v38 = vsel %vm7053_vm9, %v899_v34, %v4510_v33  ;;  %v924_v48 = vsel %vm7053_vm9, %v900_v35, %v4511_v32 }
 0x672   :  { %v928_v51 = vpack.c.bf16 %v924_v48, %v923_v38 }
 0x674   :  { %4177 = vmatmul.mubr.msk.bf16.gmra.mrb[28].mxu1 %vm7054_vm10, %v928_v51 }
 0x675   :  { %4180 = vmatprep.mubr.msk.bf16.mxu1 %vm4847_vm4, %v4846_v30 }
 0x676   :  { %v4514_v40 = vpop.permute.xlu0 %4513 }
 0x677   :  { %v4516_v56 = vunpack.i.h.bf16 %v4514_v40  ;;  %v4515_v45 = vunpack.i.l.bf16 %v4514_v40 }
 0x679   :  { %v925_v41 = vsel %vm7053_vm9, %v901_v57, %v4515_v45  ;;  %v926_v3 = vsel %vm7053_vm9, %v902_v39, %v4516_v56 }
 0x67a   :  { %v929_v44 = vpack.c.bf16 %v926_v3, %v925_v41 }
 0x67c   :  { %4181 = vmatmul.mubr.msk.bf16.gmra.mrb[32].mxu1 %vm7054_vm10, %v929_v44 }
 0x67d   :  { %4204 = vmatprep.mubr.msk.bf16.mxu1 %vm4847_vm4, %v4846_v30 }
 0x73f   :  { %v989_v62 = vpop.f32.mrb[24].mxu1 }
 0x740   :  { %v990_v63 = vadd.f32 %v3919_v61, %v989_v62  ;;  %v4174_v27 = vpop.f32.mrb[25].mxu1 }
 0x741   :  { %v992_v49 = vpop.f32.mrb[26].mxu1 }
 0x742   :  { %v1012_v0 = vmax.f32 %v990_v63, 0.0  ;;  %v993_v59 = vadd.f32 %v3919_v61, %v992_v49  ;;  %v4175_v2 = vpop.f32.mrb[27].mxu1 }
 0x744   :  { %v1013_v4 = vmax.f32 %v993_v59, 0.0  ;;  %v1024_v5 = vrot.slane %v1012_v0, 4 }
 0x746   :  { %v4517_v8 = vpack.i.bf16 %v1013_v4, %v1012_v0  ;;  %v1025_v52 = vrot.slane %v1013_v4, 4  ;;  %v1041_v57 = vsel %vm7059_vm1, 0.0, %v1024_v5 }
 0x747   :  { %v997_v9 = vpop.f32.mrb[28].mxu1  ;;  %v1042_v44 = vsel %vm894_vm3, %v1041_v57, 0.0 }
 0x748   :  { %v1026_v10 = vsel %vm7059_vm1, %v1024_v5, %v1025_v52  ;;  %v998_v12 = vadd.f32 %v3919_v61, %v997_v9  ;;  %4518 = vrot.lane.b32.xlu1 %v4517_v8, %s4848_s17  ;;  %v4178_v13 = vpop.f32.mrb[29].mxu1 }
 0x749   :  { %v1000_v14 = vpop.f32.mrb[30].mxu1  ;;  %v1043_v60 = vsel %vm895_vm5, %v1026_v10, 0.0 }
 0x74a   :  { %v1014_v15 = vmax.f32 %v998_v12, 0.0  ;;  %v1001_v16 = vadd.f32 %v3919_v61, %v1000_v14  ;;  %v4179_v17 = vpop.f32.mrb[31].mxu1 }
 0x74b   :  { %v4776_v17 = vld [vmem:[%s7049_s1 + $0x70] sm:$0xff]  }
 0x74c   :  { %v1027_v18 = vrot.slane %v1014_v15, 4  ;;  %v1015_v20 = vmax.f32 %v1001_v16, 0.0  ;;  %v4775_v16 = vld [vmem:[%s7049_s1 + $0x68] sm:$0xff]  }
 0x74d   :  { %4201 = vmatpush3.bf16.msra.mxu1 %v4775_v16 }
 0x74e   :  { %v1028_v21 = vsel %vm7059_vm1, %v1025_v52, %v1027_v18  ;;  %v4522_v22 = vpack.i.bf16 %v1015_v20, %v1014_v15  ;;  %v1029_v31 = vrot.slane %v1015_v20, 4  ;;  %4202 = vmatprep.subr.bf16.mxu1 %v4846_v30 }
 0x74f   :  { %v1005_v32 = vpop.f32.mrb[32].mxu1  ;;  %v1044_v0 = vsel %vm896_vm0, %v1028_v21, 0.0 }
 0x750   :  { %v1030_v33 = vsel %vm7059_vm1, %v1027_v18, %v1029_v31  ;;  %v1006_v34 = vadd.f32 %v3919_v61, %v1005_v32  ;;  %4523 = vrot.lane.b32.xlu0 %v4522_v22, %s4848_s17  ;;  %v4182_v35 = vpop.f32.mrb[33].mxu1  ;;  %v3925_v18 = vld [vmem:[%s7050_s2 + $0x6] ss:$0 sm:$0xff] }
 0x751   :  { %v1008_v36 = vpop.f32.mrb[34].mxu1  ;;  %v1045_v59 = vsel %vm894_vm3, %v1030_v33, 0.0  ;;  %4203 = vmatpush3.bf16.msra.mxu1 %v4776_v17 }
 0x752   :  { %v1016_v37 = vmax.f32 %v1006_v34, 0.0  ;;  %v1009_v38 = vadd.f32 %v3919_v61, %v1008_v36  ;;  %v4183_v48 = vpop.f32.mrb[35].mxu1  ;;  %4232 = vmatprep.subr.bf16.mxu1 %v4846_v30 }
 0x754   :  { %v1031_v51 = vrot.slane %v1016_v37, 4  ;;  %v1017_v53 = vmax.f32 %v1009_v38, 0.0 }
 0x756   :  { %v1032_v55 = vsel %vm7059_vm1, %v1029_v31, %v1031_v51  ;;  %v4527_v40 = vpack.i.bf16 %v1017_v53, %v1016_v37  ;;  %v1033_v56 = vrot.slane %v1017_v53, 4 }
 0x757   :  { %v1046_v10 = vsel %vm895_vm5, %v1032_v55, 0.0 }
 0x758   :  { %v1034_v45 = vsel %vm7059_vm1, %v1031_v51, %v1033_v56  ;;  %4528 = vrot.lane.b32.xlu1 %v4527_v40, %s4848_s17 }
 0x759   :  { %v1047_v12 = vsel %vm896_vm0, %v1034_v45, 0.0 }
 0x7ba   :  { %v4519_v39 = vpop.permute.xlu1 %4518 }
 0x7bb   :  { %v4521_v41 = vunpack.i.h.bf16 %v4519_v39  ;;  %v4520_v3 = vunpack.i.l.bf16 %v4519_v39 }
 0x7bd   :  { %v1067_v47 = vsel %vm7053_vm9, %v1043_v60, %v4521_v41  ;;  %v1066_v61 = vsel %vm7053_vm9, %v1042_v44, %v4520_v3 }
 0x7be   :  { %v1072_v62 = vpack.c.bf16 %v1067_v47, %v1066_v61 }
 0x7c0   :  { %4189 = vmatmul.mubr.msk.bf16.vlgmr.msra.gmra.mrb[36].mxu0 %vm7054_vm10, %v1072_v62 }
 0x7c1   :  { %4192 = vmatprep.mubr.msk.bf16.mxu0 %vm4847_vm4, %v4846_v30 }
 0x7c2   :  { %v4524_v63 = vpop.permute.xlu0 %4523 }
 0x7c3   :  { %v4526_v27 = vunpack.i.h.bf16 %v4524_v63  ;;  %v4525_v49 = vunpack.i.l.bf16 %v4524_v63 }
 0x7c5   :  { %v1069_v2 = vsel %vm7053_vm9, %v1045_v59, %v4526_v27  ;;  %v1068_v4 = vsel %vm7053_vm9, %v1044_v0, %v4525_v49 }
 0x7c6   :  { %v1073_v5 = vpack.c.bf16 %v1069_v2, %v1068_v4 }
 0x7c8   :  { %4193 = vmatmul.mubr.msk.bf16.gmra.mrb[40].mxu0 %vm7054_vm10, %v1073_v5 }
 0x7c9   :  { %4196 = vmatprep.mubr.msk.bf16.mxu0 %vm4847_vm4, %v4846_v30 }
 0x7ca   :  { %v4529_v8 = vpop.permute.xlu1 %4528 }
 0x7cb   :  { %v4531_v52 = vunpack.i.h.bf16 %v4529_v8  ;;  %v4530_v9 = vunpack.i.l.bf16 %v4529_v8 }
 0x7cd   :  { %v1070_v13 = vsel %vm7053_vm9, %v1046_v10, %v4530_v9  ;;  %v1071_v14 = vsel %vm7053_vm9, %v1047_v12, %v4531_v52 }
 0x7ce   :  { %v1074_v15 = vpack.c.bf16 %v1071_v14, %v1070_v13 }
 0x7d0   :  { %4197 = vmatmul.mubr.msk.bf16.gmra.mrb[44].mxu0 %vm7054_vm10, %v1074_v15 }
 0x7d1   :  { %4220 = vmatprep.mubr.msk.bf16.mxu0 %vm4847_vm4, %v4846_v30 }
 0x893   :  { %v1134_v20 = vpop.f32.mrb[36].mxu0 }
 0x894   :  { %v1135_v21 = vadd.f32 %v3925_v18, %v1134_v20  ;;  %v4190_v22 = vpop.f32.mrb[37].mxu0 }
 0x895   :  { %v1137_v31 = vpop.f32.mrb[38].mxu0 }
 0x896   :  { %v1157_v32 = vmax.f32 %v1135_v21, 0.0  ;;  %v1138_v33 = vadd.f32 %v3925_v18, %v1137_v31  ;;  %v4191_v34 = vpop.f32.mrb[39].mxu0 }
 0x898   :  { %v1163_v35 = vadd.f32 %v1157_v32, %v5258_v43  ;;  %v1158_v36 = vmax.f32 %v1138_v33, 0.0 }
 0x89a   :  { %v1164_v37 = vadd.f32 %v1158_v36, %v5260_v46  ;;  %v5391_v48 = vmax.f32 %v1163_v35, 0.0 }
 0x89b   :  { %v1142_v38 = vpop.f32.mrb[40].mxu0 }
 0x89c   :  { %v5393_v51 = vmax.f32 %v1164_v37, 0.0  ;;  %v1143_v53 = vadd.f32 %v3925_v18, %v1142_v38  ;;  %v4194_v55 = vpop.f32.mrb[41].mxu0  ;;  %v1191_v8 = vrot.slane %v5391_v48, 7 }
 0x89d   :  { %v1145_v40 = vpop.f32.mrb[42].mxu0 }
 0x89e   :  { %v1159_v56 = vmax.f32 %v1143_v53, 0.0  ;;  %v1146_v45 = vadd.f32 %v3925_v18, %v1145_v40  ;;  %v4195_v57 = vpop.f32.mrb[43].mxu0  ;;  %v4532_v39 = vpack.i.bf16 %v5393_v51, %v5391_v48  ;;  %v1192_v52 = vrot.slane %v5393_v51, 7 }
 0x8a0   :  { %v1165_v41 = vadd.f32 %v1159_v56, %v5267_v58  ;;  %v1160_v43 = vmax.f32 %v1146_v45, 0.0  ;;  %4533 = vrot.lane.b32.xlu0 %v4532_v39, %s4848_s17  ;;  %v1193_v9 = vsel %vm114_vm6, %v1191_v8, %v1192_v52 }
 0x8a1   :  { %v1210_v14 = vsel %vm149_vm7, %v1193_v9, 0.0 }
 0x8a2   :  { %v1166_v46 = vadd.f32 %v1160_v43, %v5269_v42  ;;  %v5400_v44 = vmax.f32 %v1165_v41, 0.0 }
 0x8a3   :  { %v1150_v3 = vpop.f32.mrb[44].mxu0 }
 0x8a4   :  { %v5402_v60 = vmax.f32 %v1166_v46, 0.0  ;;  %v1151_v47 = vadd.f32 %v3925_v18, %v1150_v3  ;;  %v4198_v61 = vpop.f32.mrb[45].mxu0  ;;  %v1194_v15 = vrot.slane %v5400_v44, 7 }
 0x8a5   :  { %v1153_v62 = vpop.f32.mrb[46].mxu0  ;;  %v4777_v61 = vld [vmem:[%s7049_s1 + $0x78] sm:$0xff]  }
 0x8a6   :  { %v1161_v63 = vmax.f32 %v1151_v47, 0.0  ;;  %v1154_v27 = vadd.f32 %v3925_v18, %v1153_v62  ;;  %v4199_v49 = vpop.f32.mrb[47].mxu0  ;;  %v4537_v0 = vpack.i.bf16 %v5402_v60, %v5400_v44  ;;  %v1196_v16 = vrot.slane %v5402_v60, 7  ;;  %4217 = vmatpush3.bf16.msra.mxu0 %v4777_v61  ;;  %v4778_v62 = vld [vmem:[%s7049_s1 + $0x80] sm:$0xff]  }
 0x8a7   :  { %v1195_v21 = vsel %vm114_vm6, %v1192_v52, %v1194_v15  ;;  %4218 = vmatprep.subr.bf16.mxu0 %v4846_v30 }
 0x8a8   :  { %v1167_v58 = vadd.f32 %v1161_v63, %v5276_v1  ;;  %v1162_v59 = vmax.f32 %v1154_v27, 0.0  ;;  %4538 = vrot.lane.b32.xlu1 %v4537_v0, %s4848_s17  ;;  %v1208_v1 = vsel %vm114_vm6, 0.0, %v1191_v8  ;;  %v1197_v22 = vsel %vm114_vm6, %v1194_v15, %v1196_v16  ;;  %v3931_v63 = vld [vmem:[%s7050_s2 + $0x7] ss:$0 sm:$0xff] }
 0x8a9   :  { %v1209_v13 = vsel %vm148_vm8, %v1208_v1, 0.0  ;;  %v1211_v34 = vsel %vm150_vm11, %v1195_v21, 0.0  ;;  %v1212_v35 = vsel %vm148_vm8, %v1197_v22, 0.0 }
 0x8aa   :  { %v1168_v42 = vadd.f32 %v1162_v59, %v5278_v50  ;;  %v5409_v2 = vmax.f32 %v1167_v58, 0.0  ;;  %4219 = vmatpush3.bf16.msra.mxu0 %v4778_v62 }
 0x8ab   :  { %4248 = vmatprep.subr.bf16.mxu0 %v4846_v30 }
 0x8ac   :  { %v5411_v4 = vmax.f32 %v1168_v42, 0.0  ;;  %v1198_v36 = vrot.slane %v5409_v2, 7 }
 0x8ae   :  { %v4542_v5 = vpack.i.bf16 %v5411_v4, %v5409_v2  ;;  %v1200_v37 = vrot.slane %v5411_v4, 7  ;;  %v1199_v40 = vsel %vm114_vm6, %v1196_v16, %v1198_v36 }
 0x8af   :  { %v1213_v41 = vsel %vm149_vm7, %v1199_v40, 0.0 }
 0x8b0   :  { %4543 = vrot.lane.b32.xlu0 %v4542_v5, %s4848_s17  ;;  %v1201_v56 = vsel %vm114_vm6, %v1198_v36, %v1200_v37 }
 0x8b1   :  { %v1214_v43 = vsel %vm150_vm11, %v1201_v56, 0.0 }
 0x912   :  { %v4534_v10 = vpop.permute.xlu0 %4533 }
 0x913   :  { %v4536_v12 = vunpack.i.h.bf16 %v4534_v10  ;;  %v4535_v50 = vunpack.i.l.bf16 %v4534_v10 }
 0x915   :  { %v1233_v17 = vsel %vm7053_vm9, %v1209_v13, %v4535_v50  ;;  %v1234_v18 = vsel %vm7053_vm9, %v1210_v14, %v4536_v12 }
 0x916   :  { %v1239_v20 = vpack.c.bf16 %v1234_v18, %v1233_v17 }
 0x918   :  { %4205 = vmatmul.mubr.msk.bf16.vlgmr.msra.gmra.mrb[36].mxu1 %vm7054_vm10, %v1239_v20 }
 0x919   :  { %4208 = vmatprep.mubr.msk.bf16.mxu1 %vm4847_vm4, %v4846_v30 }
 0x91a   :  { %v4539_v31 = vpop.permute.xlu1 %4538 }
 0x91b   :  { %v4541_v32 = vunpack.i.h.bf16 %v4539_v31  ;;  %v4540_v33 = vunpack.i.l.bf16 %v4539_v31 }
 0x91d   :  { %v1235_v38 = vsel %vm7053_vm9, %v1211_v34, %v4540_v33  ;;  %v1236_v53 = vsel %vm7053_vm9, %v1212_v35, %v4541_v32 }
 0x91e   :  { %v1240_v55 = vpack.c.bf16 %v1236_v53, %v1235_v38 }
 0x920   :  { %4209 = vmatmul.mubr.msk.bf16.gmra.mrb[40].mxu1 %vm7054_vm10, %v1240_v55 }
 0x921   :  { %4212 = vmatprep.mubr.msk.bf16.mxu1 %vm4847_vm4, %v4846_v30 }
 0x922   :  { %v4544_v45 = vpop.permute.xlu0 %4543 }
 0x923   :  { %v4546_v57 = vunpack.i.h.bf16 %v4544_v45  ;;  %v4545_v39 = vunpack.i.l.bf16 %v4544_v45 }
 0x925   :  { %v1237_v46 = vsel %vm7053_vm9, %v1213_v41, %v4545_v39  ;;  %v1238_v3 = vsel %vm7053_vm9, %v1214_v43, %v4546_v57 }
 0x926   :  { %v1241_v47 = vpack.c.bf16 %v1238_v3, %v1237_v46 }
 0x928   :  { %4213 = vmatmul.mubr.msk.bf16.gmra.mrb[44].mxu1 %vm7054_vm10, %v1241_v47 }
 0x929   :  { %4236 = vmatprep.mubr.msk.bf16.mxu1 %vm4847_vm4, %v4846_v30 }
 0x9eb   :  { %v1301_v27 = vpop.f32.mrb[36].mxu1 }
 0x9ec   :  { %v1302_v49 = vadd.f32 %v3931_v63, %v1301_v27  ;;  %v4206_v0 = vpop.f32.mrb[37].mxu1 }
 0x9ed   :  { %v1304_v58 = vpop.f32.mrb[38].mxu1 }
 0x9ee   :  { %v1324_v59 = vmax.f32 %v1302_v49, 0.0  ;;  %v1305_v42 = vadd.f32 %v3931_v63, %v1304_v58  ;;  %v4207_v5 = vpop.f32.mrb[39].mxu1 }
 0x9f0   :  { %v1325_v8 = vmax.f32 %v1305_v42, 0.0  ;;  %v1336_v52 = vrot.slane %v1324_v59, 7 }
 0x9f2   :  { %v4547_v1 = vpack.i.bf16 %v1325_v8, %v1324_v59  ;;  %v1337_v9 = vrot.slane %v1325_v8, 7  ;;  %v1353_v41 = vsel %vm114_vm6, 0.0, %v1336_v52 }
 0x9f3   :  { %v1309_v10 = vpop.f32.mrb[40].mxu1  ;;  %v1354_v47 = vsel %vm148_vm8, %v1353_v41, 0.0 }
 0x9f4   :  { %v1338_v12 = vsel %vm114_vm6, %v1336_v52, %v1337_v9  ;;  %v1310_v50 = vadd.f32 %v3931_v63, %v1309_v10  ;;  %4548 = vrot.lane.b32.xlu1 %v4547_v1, %s4848_s17  ;;  %v4210_v13 = vpop.f32.mrb[41].mxu1 }
 0x9f5   :  { %v1312_v14 = vpop.f32.mrb[42].mxu1  ;;  %v1355_v61 = vsel %vm149_vm7, %v1338_v12, 0.0 }
 0x9f6   :  { %v1326_v15 = vmax.f32 %v1310_v50, 0.0  ;;  %v1313_v16 = vadd.f32 %v3931_v63, %v1312_v14  ;;  %v4211_v17 = vpop.f32.mrb[43].mxu1 }
 0x9f8   :  { %v1339_v18 = vrot.slane %v1326_v15, 7  ;;  %v1327_v20 = vmax.f32 %v1313_v16, 0.0 }
 0x9fa   :  { %v1340_v21 = vsel %vm114_vm6, %v1337_v9, %v1339_v18  ;;  %v4552_v22 = vpack.i.bf16 %v1327_v20, %v1326_v15  ;;  %v1341_v31 = vrot.slane %v1327_v20, 7  ;;  %v4779_v15 = vld [vmem:[%s7049_s1 + $0x88] sm:$0xff]  }
 0x9fb   :  { %v1317_v32 = vpop.f32.mrb[44].mxu1  ;;  %v1356_v59 = vsel %vm150_vm11, %v1340_v21, 0.0  ;;  %4233 = vmatpush3.bf16.msra.mxu1 %v4779_v15 }
 0x9fc   :  { %v1342_v33 = vsel %vm114_vm6, %v1339_v18, %v1341_v31  ;;  %v1318_v34 = vadd.f32 %v3931_v63, %v1317_v32  ;;  %4553 = vrot.lane.b32.xlu0 %v4552_v22, %s4848_s17  ;;  %v4214_v35 = vpop.f32.mrb[45].mxu1  ;;  %4234 = vmatprep.subr.bf16.mxu1 %v4846_v30 }
 0x9fd   :  { %v1320_v36 = vpop.f32.mrb[46].mxu1  ;;  %v1357_v42 = vsel %vm148_vm8, %v1342_v33, 0.0  ;;  %vm2773_vm8 = vcmask 23552  }
 0x9fe   :  { %v1328_v37 = vmax.f32 %v1318_v34, 0.0  ;;  %v1321_v38 = vadd.f32 %v3931_v63, %v1320_v36  ;;  %v4215_v53 = vpop.f32.mrb[47].mxu1 }
 0x9ff   :  { %4235 = vmatpush3.bf16.msra.mxu1 %v4780_v23 }
 0xa00   :  { %v1343_v55 = vrot.slane %v1328_v37, 7  ;;  %v1329_v40 = vmax.f32 %v1321_v38, 0.0  ;;  %4264 = vmatprep.subr.bf16.mxu1 %v4846_v30 }
 0xa02   :  { %v1344_v56 = vsel %vm114_vm6, %v1341_v31, %v1343_v55  ;;  %v4557_v45 = vpack.i.bf16 %v1329_v40, %v1328_v37  ;;  %v1345_v57 = vrot.slane %v1329_v40, 7 }
 0xa03   :  { %v1358_v12 = vsel %vm149_vm7, %v1344_v56, 0.0 }
 0xa04   :  { %v1346_v39 = vsel %vm114_vm6, %v1343_v55, %v1345_v57  ;;  %4558 = vrot.lane.b32.xlu1 %v4557_v45, %s4848_s17 }
 0xa05   :  { %v1359_v24 = vsel %vm150_vm11, %v1346_v39, 0.0 }
 0xa66   :  { %v4549_v43 = vpop.permute.xlu1 %4548 }
 0xa67   :  { %v4551_v46 = vunpack.i.h.bf16 %v4549_v43  ;;  %v4550_v3 = vunpack.i.l.bf16 %v4549_v43 }
 0xa69   :  { %v1379_v62 = vsel %vm7053_vm9, %v1355_v61, %v4551_v46  ;;  %v1378_v63 = vsel %vm7053_vm9, %v1354_v47, %v4550_v3 }
 0xa6a   :  { %v1384_v27 = vpack.c.bf16 %v1379_v62, %v1378_v63 }
 0xa6c   :  { %4221 = vmatmul.mubr.msk.bf16.vlgmr.msra.gmra.mrb[48].mxu0 %vm7054_vm10, %v1384_v27 }
 0xa6d   :  { %4224 = vmatprep.mubr.msk.bf16.mxu0 %vm4847_vm4, %v4846_v30 }
 0xa6e   :  { %v4554_v49 = vpop.permute.xlu0 %4553 }
 0xa6f   :  { %v4556_v0 = vunpack.i.h.bf16 %v4554_v49  ;;  %v4555_v58 = vunpack.i.l.bf16 %v4554_v49 }
 0xa71   :  { %v1381_v5 = vsel %vm7053_vm9, %v1357_v42, %v4556_v0  ;;  %v1380_v8 = vsel %vm7053_vm9, %v1356_v59, %v4555_v58 }
 0xa72   :  { %v1385_v52 = vpack.c.bf16 %v1381_v5, %v1380_v8 }
 0xa74   :  { %4225 = vmatmul.mubr.msk.bf16.gmra.mrb[52].mxu0 %vm7054_vm10, %v1385_v52 }
 0xa75   :  { %4228 = vmatprep.mubr.msk.bf16.mxu0 %vm4847_vm4, %v4846_v30 }
 0xa76   :  { %v4559_v1 = vpop.permute.xlu1 %4558 }
 0xa77   :  { %v4561_v9 = vunpack.i.h.bf16 %v4559_v1  ;;  %v4560_v10 = vunpack.i.l.bf16 %v4559_v1 }
 0xa79   :  { %v1382_v50 = vsel %vm7053_vm9, %v1358_v12, %v4560_v10  ;;  %v1383_v13 = vsel %vm7053_vm9, %v1359_v24, %v4561_v9 }
 0xa7a   :  { %v1386_v14 = vpack.c.bf16 %v1383_v13, %v1382_v50 }
 0xa7c   :  { %4229 = vmatmul.mubr.msk.bf16.gmra.mrb[56].mxu0 %vm7054_vm10, %v1386_v14 }
 0xa7d   :  { %4252 = vmatprep.mubr.msk.bf16.mxu0 %vm4847_vm4, %v4846_v30 }
 0xb3f   :  { %v1446_v16 = vpop.f32.mrb[48].mxu0 }
 0xb40   :  { %v1447_v17 = vadd.f32 %v3937_v28, %v1446_v16  ;;  %v4222_v18 = vpop.f32.mrb[49].mxu0 }
 0xb41   :  { %v1449_v20 = vpop.f32.mrb[50].mxu0 }
 0xb42   :  { %v1469_v21 = vmax.f32 %v1447_v17, 0.0  ;;  %v1450_v22 = vadd.f32 %v3937_v28, %v1449_v20  ;;  %v4223_v31 = vpop.f32.mrb[51].mxu0 }
 0xb44   :  { %v1475_v32 = vadd.f32 %v1469_v21, %v5391_v48  ;;  %v1470_v33 = vmax.f32 %v1450_v22, 0.0 }
 0xb46   :  { %v1476_v34 = vadd.f32 %v1470_v33, %v5393_v51  ;;  %v5515_v36 = vmax.f32 %v1475_v32, 0.0 }
 0xb47   :  { %v1454_v35 = vpop.f32.mrb[52].mxu0 }
 0xb48   :  { %v5517_v37 = vmax.f32 %v1476_v34, 0.0  ;;  %v1455_v38 = vadd.f32 %v3937_v28, %v1454_v35  ;;  %v4226_v53 = vpop.f32.mrb[53].mxu0  ;;  %v1503_v5 = vrot.slane %v5515_v36, 6 }
 0xb49   :  { %v1457_v55 = vpop.f32.mrb[54].mxu0 }
 0xb4a   :  { %v1471_v40 = vmax.f32 %v1455_v38, 0.0  ;;  %v1458_v56 = vadd.f32 %v3937_v28, %v1457_v55  ;;  %v4227_v45 = vpop.f32.mrb[55].mxu0  ;;  %v4562_v57 = vpack.i.bf16 %v5517_v37, %v5515_v36  ;;  %v1504_v8 = vrot.slane %v5517_v37, 6 }
 0xb4c   :  { %v1477_v39 = vadd.f32 %v1471_v40, %v5400_v44  ;;  %v1472_v48 = vmax.f32 %v1458_v56, 0.0  ;;  %4563 = vrot.lane.b32.xlu0 %v4562_v57, %s4848_s17  ;;  %v1505_v52 = vsel %vm7061_vm12, %v1503_v5, %v1504_v8 }
 0xb4d   :  { %v1522_v12 = vsel %vm564_vm14, %v1505_v52, 0.0 }
 0xb4e   :  { %v1478_v51 = vadd.f32 %v1472_v48, %v5402_v60  ;;  %v5524_v43 = vmax.f32 %v1477_v39, 0.0 }
 0xb4f   :  { %v1462_v41 = vpop.f32.mrb[56].mxu0 }
 0xb50   :  { %v5526_v46 = vmax.f32 %v1478_v51, 0.0  ;;  %v1463_v3 = vadd.f32 %v3937_v28, %v1462_v41  ;;  %v4230_v47 = vpop.f32.mrb[57].mxu0  ;;  %v1506_v24 = vrot.slane %v5524_v43, 6  ;;  %v4781_v51 = vld [vmem:[%s7049_s1 + $0x98] sm:$0xff]   ;;  %v4782_v41 = vld [vmem:[%s7049_s1 + $0xa0] sm:$0xff]  }
 0xb51   :  { %v1465_v61 = vpop.f32.mrb[58].mxu0  ;;  %4249 = vmatpush3.bf16.msra.mxu0 %v4781_v51 }
 0xb52   :  { %v1473_v62 = vmax.f32 %v1463_v3, 0.0  ;;  %v1466_v63 = vadd.f32 %v3937_v28, %v1465_v61  ;;  %v4231_v27 = vpop.f32.mrb[59].mxu0  ;;  %v4567_v49 = vpack.i.bf16 %v5526_v46, %v5524_v43  ;;  %v1508_v50 = vrot.slane %v5526_v46, 6  ;;  %4250 = vmatprep.subr.bf16.mxu0 %v4846_v30  ;;  %v3943_v3 = vld [vmem:[%s7050_s2 + $0x9] ss:$0 sm:$0xff] }
 0xb53   :  { %v1507_v23 = vsel %vm7061_vm12, %v1504_v8, %v1506_v24 }
 0xb54   :  { %v1479_v44 = vadd.f32 %v1473_v62, %v5409_v2  ;;  %v1474_v0 = vmax.f32 %v1466_v63, 0.0  ;;  %4568 = vrot.lane.b32.xlu1 %v4567_v49, %s4848_s17  ;;  %v1520_v2 = vsel %vm7061_vm12, 0.0, %v1503_v5  ;;  %v1509_v28 = vsel %vm7061_vm12, %v1506_v24, %v1508_v50 }
 0xb55   :  { %v1521_v10 = vsel %vm563_vm13, %v1520_v2, 0.0  ;;  %v1523_v20 = vsel %vm565_vm15, %v1507_v23, 0.0  ;;  %v1524_v21 = vsel %vm563_vm13, %v1509_v28, 0.0  ;;  %4251 = vmatpush3.bf16.msra.mxu0 %v4782_v41 }
 0xb56   :  { %v1480_v60 = vadd.f32 %v1474_v0, %v5411_v4  ;;  %v5533_v58 = vmax.f32 %v1479_v44, 0.0  ;;  %4280 = vmatprep.subr.bf16.mxu0 %v4846_v30 }
 0xb58   :  { %v5535_v59 = vmax.f32 %v1480_v60, 0.0  ;;  %v1510_v22 = vrot.slane %v5533_v58, 6 }
 0xb5a   :  { %v4572_v42 = vpack.i.bf16 %v5535_v59, %v5533_v58  ;;  %v1512_v31 = vrot.slane %v5535_v59, 6  ;;  %v1511_v35 = vsel %vm7061_vm12, %v1508_v50, %v1510_v22 }
 0xb5b   :  { %v1525_v56 = vsel %vm564_vm14, %v1511_v35, 0.0 }
 0xb5c   :  { %4573 = vrot.lane.b32.xlu0 %v4572_v42, %s4848_s17  ;;  %v1513_v38 = vsel %vm7061_vm12, %v1510_v22, %v1512_v31 }
 0xb5d   :  { %v1526_v45 = vsel %vm565_vm15, %v1513_v38, 0.0 }
 0xbbe   :  { %v4564_v1 = vpop.permute.xlu0 %4563 }
 0xbbf   :  { %v4566_v9 = vunpack.i.h.bf16 %v4564_v1  ;;  %v4565_v4 = vunpack.i.l.bf16 %v4564_v1 }
 0xbc1   :  { %v1545_v13 = vsel %vm7053_vm9, %v1521_v10, %v4565_v4  ;;  %v1546_v14 = vsel %vm7053_vm9, %v1522_v12, %v4566_v9 }
 0xbc2   :  { %v1551_v15 = vpack.c.bf16 %v1546_v14, %v1545_v13 }
 0xbc4   :  { %4237 = vmatmul.mubr.msk.bf16.vlgmr.msra.gmra.mrb[48].mxu1 %vm7054_vm10, %v1551_v15 }
 0xbc5   :  { %4240 = vmatprep.mubr.msk.bf16.mxu1 %vm4847_vm4, %v4846_v30 }
 0xbc6   :  { %v4569_v16 = vpop.permute.xlu1 %4568 }
 0xbc7   :  { %v4571_v17 = vunpack.i.h.bf16 %v4569_v16  ;;  %v4570_v18 = vunpack.i.l.bf16 %v4569_v16 }
 0xbc9   :  { %v1547_v32 = vsel %vm7053_vm9, %v1523_v20, %v4570_v18  ;;  %v1548_v33 = vsel %vm7053_vm9, %v1524_v21, %v4571_v17 }
 0xbca   :  { %v1552_v34 = vpack.c.bf16 %v1548_v33, %v1547_v32 }
 0xbcc   :  { %4241 = vmatmul.mubr.msk.bf16.gmra.mrb[52].mxu1 %vm7054_vm10, %v1552_v34 }
 0xbcd   :  { %4244 = vmatprep.mubr.msk.bf16.mxu1 %vm4847_vm4, %v4846_v30 }
 0xbce   :  { %v4574_v53 = vpop.permute.xlu0 %4573 }
 0xbcf   :  { %v4576_v55 = vunpack.i.h.bf16 %v4574_v53  ;;  %v4575_v40 = vunpack.i.l.bf16 %v4574_v53 }
 0xbd1   :  { %v1549_v57 = vsel %vm7053_vm9, %v1525_v56, %v4575_v40  ;;  %v1550_v39 = vsel %vm7053_vm9, %v1526_v45, %v4576_v55 }
 0xbd2   :  { %v1553_v48 = vpack.c.bf16 %v1550_v39, %v1549_v57 }
 0xbd4   :  { %4245 = vmatmul.mubr.msk.bf16.gmra.mrb[56].mxu1 %vm7054_vm10, %v1553_v48 }
 0xbd5   :  { %4268 = vmatprep.mubr.msk.bf16.mxu1 %vm4847_vm4, %v4846_v30 }
 0xc97   :  { %v1613_v47 = vpop.f32.mrb[48].mxu1 }
 0xc98   :  { %v1614_v61 = vadd.f32 %v3943_v3, %v1613_v47  ;;  %v4238_v62 = vpop.f32.mrb[49].mxu1 }
 0xc99   :  { %v1616_v63 = vpop.f32.mrb[50].mxu1 }
 0xc9a   :  { %v1636_v27 = vmax.f32 %v1614_v61, 0.0  ;;  %v1617_v49 = vadd.f32 %v3943_v3, %v1616_v63  ;;  %v4239_v44 = vpop.f32.mrb[51].mxu1 }
 0xc9c   :  { %v1637_v0 = vmax.f32 %v1617_v49, 0.0  ;;  %v1648_v60 = vrot.slane %v1636_v27, 6 }
 0xc9e   :  { %v4577_v42 = vpack.i.bf16 %v1637_v0, %v1636_v27  ;;  %v1649_v5 = vrot.slane %v1637_v0, 6  ;;  %v1665_v53 = vsel %vm7061_vm12, 0.0, %v1648_v60 }
 0xc9f   :  { %v1621_v8 = vpop.f32.mrb[52].mxu1  ;;  %v1666_v45 = vsel %vm563_vm13, %v1665_v53, 0.0 }
 0xca0   :  { %v1650_v2 = vsel %vm7061_vm12, %v1648_v60, %v1649_v5  ;;  %v1622_v52 = vadd.f32 %v3943_v3, %v1621_v8  ;;  %4578 = vrot.lane.b32.xlu1 %v4577_v42, %s4848_s17  ;;  %v4242_v1 = vpop.f32.mrb[53].mxu1 }
 0xca1   :  { %v1624_v9 = vpop.f32.mrb[54].mxu1  ;;  %v1667_v57 = vsel %vm564_vm14, %v1650_v2, 0.0 }
 0xca2   :  { %v1638_v4 = vmax.f32 %v1622_v52, 0.0  ;;  %v1625_v10 = vadd.f32 %v3943_v3, %v1624_v9  ;;  %v4243_v12 = vpop.f32.mrb[55].mxu1  ;;  %v4783_v52 = vld [vmem:[%s7049_s1 + $0xa8] sm:$0xff]  }
 0xca3   :  { %4265 = vmatpush3.bf16.msra.mxu1 %v4783_v52 }
 0xca4   :  { %v1651_v24 = vrot.slane %v1638_v4, 6  ;;  %v1639_v50 = vmax.f32 %v1625_v10, 0.0  ;;  %4266 = vmatprep.subr.bf16.mxu1 %v4846_v30 }
 0xca6   :  { %v1652_v13 = vsel %vm7061_vm12, %v1649_v5, %v1651_v24  ;;  %v4582_v14 = vpack.i.bf16 %v1639_v50, %v1638_v4  ;;  %v1653_v15 = vrot.slane %v1639_v50, 6 }
 0xca7   :  { %v1629_v23 = vpop.f32.mrb[56].mxu1  ;;  %v1668_v61 = vsel %vm565_vm15, %v1652_v13, 0.0  ;;  %4267 = vmatpush3.bf16.msra.mxu1 %v4784_v11 }
 0xca8   :  { %v1654_v28 = vsel %vm7061_vm12, %v1651_v24, %v1653_v15  ;;  %v1630_v16 = vadd.f32 %v3943_v3, %v1629_v23  ;;  %4583 = vrot.lane.b32.xlu0 %v4582_v14, %s4848_s17  ;;  %v4246_v17 = vpop.f32.mrb[57].mxu1  ;;  %4296 = vmatprep.subr.bf16.mxu1 %v4846_v30 }
 0xca9   :  { %v1632_v18 = vpop.f32.mrb[58].mxu1  ;;  %v1669_v62 = vsel %vm563_vm13, %v1654_v28, 0.0 }
 0xcaa   :  { %v1640_v20 = vmax.f32 %v1630_v16, 0.0  ;;  %v1633_v21 = vadd.f32 %v3943_v3, %v1632_v18  ;;  %v4247_v22 = vpop.f32.mrb[59].mxu1 }
 0xcac   :  { %v1655_v31 = vrot.slane %v1640_v20, 6  ;;  %v1641_v32 = vmax.f32 %v1633_v21, 0.0 }
 0xcae   :  { %v1656_v33 = vsel %vm7061_vm12, %v1653_v15, %v1655_v31  ;;  %v4587_v34 = vpack.i.bf16 %v1641_v32, %v1640_v20  ;;  %v1657_v35 = vrot.slane %v1641_v32, 6 }
 0xcaf   :  { %v1670_v42 = vsel %vm564_vm14, %v1656_v33, 0.0 }
 0xcb0   :  { %v1658_v38 = vsel %vm7061_vm12, %v1655_v31, %v1657_v35  ;;  %4588 = vrot.lane.b32.xlu1 %v4587_v34, %s4848_s17 }
 0xcb1   :  { %v1671_v54 = vsel %vm565_vm15, %v1658_v38, 0.0 }
 0xd12   :  { %v4579_v55 = vpop.permute.xlu1 %4578 }
 0xd13   :  { %v4581_v40 = vunpack.i.h.bf16 %v4579_v55  ;;  %v4580_v56 = vunpack.i.l.bf16 %v4579_v55 }
 0xd15   :  { %v1691_v39 = vsel %vm7053_vm9, %v1667_v57, %v4581_v40  ;;  %v1690_v48 = vsel %vm7053_vm9, %v1666_v45, %v4580_v56 }
 0xd16   :  { %v1696_v51 = vpack.c.bf16 %v1691_v39, %v1690_v48 }
 0xd18   :  { %4253 = vmatmul.mubr.msk.bf16.vlgmr.msra.gmra.mrb[60].mxu0 %vm7054_vm10, %v1696_v51 }
 0xd19   :  { %4256 = vmatprep.mubr.msk.bf16.mxu0 %vm4847_vm4, %v4846_v30 }
 0xd1a   :  { %v4584_v41 = vpop.permute.xlu0 %4583 }
 0xd1b   :  { %v4586_v3 = vunpack.i.h.bf16 %v4584_v41  ;;  %v4585_v47 = vunpack.i.l.bf16 %v4584_v41 }
 0xd1d   :  { %v1693_v63 = vsel %vm7053_vm9, %v1669_v62, %v4586_v3  ;;  %v1692_v27 = vsel %vm7053_vm9, %v1668_v61, %v4585_v47 }
 0xd1e   :  { %v1697_v49 = vpack.c.bf16 %v1693_v63, %v1692_v27 }
 0xd20   :  { %4257 = vmatmul.mubr.msk.bf16.gmra.mrb[64].mxu0 %vm7054_vm10, %v1697_v49 }
 0xd21   :  { %4260 = vmatprep.mubr.msk.bf16.mxu0 %vm4847_vm4, %v4846_v30 }
 0xd22   :  { %v4589_v44 = vpop.permute.xlu1 %4588 }
 0xd23   :  { %v4591_v0 = vunpack.i.h.bf16 %v4589_v44  ;;  %v4590_v60 = vunpack.i.l.bf16 %v4589_v44 }
 0xd25   :  { %v1694_v5 = vsel %vm7053_vm9, %v1670_v42, %v4590_v60  ;;  %v1695_v8 = vsel %vm7053_vm9, %v1671_v54, %v4591_v0 }
 0xd26   :  { %v1698_v2 = vpack.c.bf16 %v1695_v8, %v1694_v5 }
 0xd28   :  { %4261 = vmatmul.mubr.msk.bf16.gmra.mrb[68].mxu0 %vm7054_vm10, %v1698_v2 }
 0xd29   :  { %4284 = vmatprep.mubr.msk.bf16.mxu0 %vm4847_vm4, %v4846_v30 }
 0xdeb   :  { %v1758_v1 = vpop.f32.mrb[60].mxu0 }
 0xdec   :  { %v1759_v9 = vadd.f32 %v3949_v29, %v1758_v1  ;;  %v4254_v4 = vpop.f32.mrb[61].mxu0 }
 0xded   :  { %v1761_v10 = vpop.f32.mrb[62].mxu0 }
 0xdee   :  { %v1781_v12 = vmax.f32 %v1759_v9, 0.0  ;;  %v1762_v24 = vadd.f32 %v3949_v29, %v1761_v10  ;;  %v4255_v50 = vpop.f32.mrb[63].mxu0 }
 0xdf0   :  { %v1787_v13 = vadd.f32 %v1781_v12, %v5515_v36  ;;  %v1782_v14 = vmax.f32 %v1762_v24, 0.0 }
 0xdf2   :  { %v1788_v15 = vadd.f32 %v1782_v14, %v5517_v37  ;;  %v5639_v28 = vmax.f32 %v1787_v13, 0.0 }
 0xdf3   :  { %v1766_v23 = vpop.f32.mrb[64].mxu0 }
 0xdf4   :  { %v5641_v16 = vmax.f32 %v1788_v15, 0.0  ;;  %v1767_v17 = vadd.f32 %v3949_v29, %v1766_v23  ;;  %v4258_v18 = vpop.f32.mrb[65].mxu0  ;;  %v1815_v47 = vrot.slane %v5639_v28, 4 }
 0xdf5   :  { %v1769_v20 = vpop.f32.mrb[66].mxu0 }
 0xdf6   :  { %v1783_v21 = vmax.f32 %v1767_v17, 0.0  ;;  %v1770_v22 = vadd.f32 %v3949_v29, %v1769_v20  ;;  %v4259_v31 = vpop.f32.mrb[67].mxu0  ;;  %v4592_v32 = vpack.i.bf16 %v5641_v16, %v5639_v28  ;;  %v1816_v61 = vrot.slane %v5641_v16, 4 }
 0xdf8   :  { %v1789_v33 = vadd.f32 %v1783_v21, %v5524_v43  ;;  %v1784_v36 = vmax.f32 %v1770_v22, 0.0  ;;  %4593 = vrot.lane.b32.xlu0 %v4592_v32, %s4848_s17  ;;  %v1817_v62 = vsel %vm7059_vm1, %v1815_v47, %v1816_v61  ;;  %v4785_v32 = vld [vmem:[%s7049_s1 + $0xb8] sm:$0xff]  }
 0xdf9   :  { %v1834_v44 = vsel %vm895_vm5, %v1817_v62, 0.0  ;;  %4281 = vmatpush3.bf16.msra.mxu0 %v4785_v32 }
 0xdfa   :  { %v1790_v37 = vadd.f32 %v1784_v36, %v5526_v46  ;;  %v5648_v35 = vmax.f32 %v1789_v33, 0.0  ;;  %v4786_v33 = vld [vmem:[%s7049_s1 + $0xc0] sm:$0xff]   ;;  %4282 = vmatprep.subr.bf16.mxu0 %v4846_v30  ;;  %v3955_v36 = vld [vmem:[%s7050_s2 + $0xb] ss:$0 sm:$0xff] }
 0xdfb   :  { %v1774_v34 = vpop.f32.mrb[68].mxu0 }
 0xdfc   :  { %v5650_v38 = vmax.f32 %v1790_v37, 0.0  ;;  %v1775_v53 = vadd.f32 %v3949_v29, %v1774_v34  ;;  %v4262_v55 = vpop.f32.mrb[69].mxu0  ;;  %v1818_v0 = vrot.slane %v5648_v35, 4 }
 0xdfd   :  { %v1777_v40 = vpop.f32.mrb[70].mxu0  ;;  %4283 = vmatpush3.bf16.msra.mxu0 %v4786_v33 }
 0xdfe   :  { %v1785_v56 = vmax.f32 %v1775_v53, 0.0  ;;  %v1778_v45 = vadd.f32 %v3949_v29, %v1777_v40  ;;  %v4263_v57 = vpop.f32.mrb[71].mxu0  ;;  %v4597_v39 = vpack.i.bf16 %v5650_v38, %v5648_v35  ;;  %v1820_v60 = vrot.slane %v5650_v38, 4  ;;  %4310 = vmatprep.subr.bf16.mxu0 %v4846_v30 }
 0xdff   :  { %v1819_v8 = vsel %vm7059_vm1, %v1816_v61, %v1818_v0 }
 0xe00   :  { %v1791_v43 = vadd.f32 %v1785_v56, %v5533_v58  ;;  %v1786_v48 = vmax.f32 %v1778_v45, 0.0  ;;  %4598 = vrot.lane.b32.xlu1 %v4597_v39, %s4848_s17  ;;  %v1832_v58 = vsel %vm7059_vm1, 0.0, %v1815_v47  ;;  %v1821_v2 = vsel %vm7059_vm1, %v1818_v0, %v1820_v60 }
 0xe01   :  { %v1833_v49 = vsel %vm894_vm3, %v1832_v58, 0.0  ;;  %v1835_v1 = vsel %vm896_vm0, %v1819_v8, 0.0  ;;  %v1836_v9 = vsel %vm894_vm3, %v1821_v2, 0.0  ;;  %v4787_v2 = vld [vmem:[%s7049_s1 + $0xc8] sm:$0xff]  }
 0xe02   :  { %v1792_v46 = vadd.f32 %v1786_v48, %v5535_v59  ;;  %v5657_v51 = vmax.f32 %v1791_v43, 0.0 }
 0xe04   :  { %v5659_v41 = vmax.f32 %v1792_v46, 0.0  ;;  %v1822_v4 = vrot.slane %v5657_v51, 4 }
 0xe06   :  { %v4602_v3 = vpack.i.bf16 %v5659_v41, %v5657_v51  ;;  %v1824_v10 = vrot.slane %v5659_v41, 4  ;;  %v1823_v13 = vsel %vm7059_vm1, %v1820_v60, %v1822_v4 }
 0xe07   :  { %v1837_v18 = vsel %vm895_vm5, %v1823_v13, 0.0 }
 0xe08   :  { %4603 = vrot.lane.b32.xlu0 %v4602_v3, %s4848_s17  ;;  %v1825_v14 = vsel %vm7059_vm1, %v1822_v4, %v1824_v10 }
 0xe09   :  { %v1838_v20 = vsel %vm896_vm0, %v1825_v14, 0.0 }
 0xe6a   :  { %v4594_v63 = vpop.permute.xlu0 %4593 }
 0xe6b   :  { %v4596_v27 = vunpack.i.h.bf16 %v4594_v63  ;;  %v4595_v59 = vunpack.i.l.bf16 %v4594_v63 }
 0xe6d   :  { %v1857_v42 = vsel %vm7053_vm9, %v1833_v49, %v4595_v59  ;;  %v1858_v54 = vsel %vm7053_vm9, %v1834_v44, %v4596_v27 }
 0xe6e   :  { %v1863_v5 = vpack.c.bf16 %v1858_v54, %v1857_v42 }
 0xe70   :  { %4269 = vmatmul.mubr.msk.bf16.vlgmr.msra.gmra.mrb[60].mxu1 %vm7054_vm10, %v1863_v5 }
 0xe71   :  { %4272 = vmatprep.mubr.msk.bf16.mxu1 %vm4847_vm4, %v4846_v30  ;;  %4297 = vmatpush3.bf16.msra.mxu1 %v4787_v2 }
 0xe72   :  { %v4599_v52 = vpop.permute.xlu1 %4598  ;;  %4324 = vmatprep.subr.bf16.mxu1 %v4846_v30 }
 0xe73   :  { %v4601_v11 = vunpack.i.h.bf16 %v4599_v52  ;;  %v4600_v29 = vunpack.i.l.bf16 %v4599_v52 }
 0xe75   :  { %v1859_v12 = vsel %vm7053_vm9, %v1835_v1, %v4600_v29  ;;  %v1860_v24 = vsel %vm7053_vm9, %v1836_v9, %v4601_v11 }
 0xe76   :  { %v1864_v50 = vpack.c.bf16 %v1860_v24, %v1859_v12 }
 0xe78   :  { %4273 = vmatmul.mubr.msk.bf16.gmra.mrb[64].mxu1 %vm7054_vm10, %v1864_v50 }
 0xe79   :  { %4276 = vmatprep.mubr.msk.bf16.mxu1 %vm4847_vm4, %v4846_v30 }
 0xe7a   :  { %v4604_v15 = vpop.permute.xlu0 %4603 }
 0xe7b   :  { %v4606_v23 = vunpack.i.h.bf16 %v4604_v15  ;;  %v4605_v17 = vunpack.i.l.bf16 %v4604_v15 }
 0xe7d   :  { %v1861_v21 = vsel %vm7053_vm9, %v1837_v18, %v4605_v17  ;;  %v1862_v22 = vsel %vm7053_vm9, %v1838_v20, %v4606_v23 }
 0xe7e   :  { %v1865_v31 = vpack.c.bf16 %v1862_v22, %v1861_v21 }
 0xe80   :  { %4277 = vmatmul.mubr.msk.bf16.gmra.mrb[68].mxu1 %vm7054_vm10, %v1865_v31 }
 0xe81   :  { %4298 = vmatprep.mubr.msk.bf16.mxu1 %vm4847_vm4, %v4846_v30 }
 0xf43   :  { %v1925_v37 = vpop.f32.mrb[60].mxu1 }
 0xf44   :  { %v1926_v34 = vadd.f32 %v3955_v36, %v1925_v37  ;;  %v4270_v53 = vpop.f32.mrb[61].mxu1 }
 0xf45   :  { %v1928_v55 = vpop.f32.mrb[62].mxu1 }
 0xf46   :  { %v1948_v40 = vmax.f32 %v1926_v34, 0.0  ;;  %v1929_v56 = vadd.f32 %v3955_v36, %v1928_v55  ;;  %v4271_v45 = vpop.f32.mrb[63].mxu1 }
 0xf48   :  { %v1949_v57 = vmax.f32 %v1929_v56, 0.0  ;;  %v1960_v39 = vrot.slane %v1948_v40, 4 }
 0xf4a   :  { %v4607_v43 = vpack.i.bf16 %v1949_v57, %v1948_v40  ;;  %v1961_v48 = vrot.slane %v1949_v57, 4  ;;  %v1977_v13 = vsel %vm7059_vm1, 0.0, %v1960_v39 }
 0xf4b   :  { %v1933_v46 = vpop.f32.mrb[64].mxu1  ;;  %v1978_v17 = vsel %vm894_vm3, %v1977_v13, 0.0 }
 0xf4c   :  { %v1962_v3 = vsel %vm7059_vm1, %v1960_v39, %v1961_v48  ;;  %v1934_v47 = vadd.f32 %v3955_v36, %v1933_v46  ;;  %4608 = vrot.lane.b32.xlu1 %v4607_v43, %s4848_s17  ;;  %v4274_v61 = vpop.f32.mrb[65].mxu1  ;;  %v4789_v46 = vld [vmem:[%s7049_s1 + $0xd0] sm:$0xff]  }
 0xf4d   :  { %v1936_v58 = vpop.f32.mrb[66].mxu1  ;;  %v1979_v18 = vsel %vm895_vm5, %v1962_v3, 0.0 }
 0xf4e   :  { %v1950_v62 = vmax.f32 %v1934_v47, 0.0  ;;  %v1937_v63 = vadd.f32 %v3955_v36, %v1936_v58  ;;  %v4275_v27 = vpop.f32.mrb[67].mxu1 }
 0xf50   :  { %v1963_v59 = vrot.slane %v1950_v62, 4  ;;  %v1951_v49 = vmax.f32 %v1937_v63, 0.0 }
 0xf52   :  { %v1964_v44 = vsel %vm7059_vm1, %v1961_v48, %v1963_v59  ;;  %v4612_v0 = vpack.i.bf16 %v1951_v49, %v1950_v62  ;;  %v1965_v60 = vrot.slane %v1951_v49, 4 }
 0xf53   :  { %v1941_v42 = vpop.f32.mrb[68].mxu1 }
 0xf54   :  { %v1966_v54 = vsel %vm7059_vm1, %v1963_v59, %v1965_v60  ;;  %v1942_v5 = vadd.f32 %v3955_v36, %v1941_v42  ;;  %4613 = vrot.lane.b32.xlu0 %v4612_v0, %s4848_s17  ;;  %v4278_v8 = vpop.f32.mrb[69].mxu1 }
 0xf55   :  { %v1944_v52 = vpop.f32.mrb[70].mxu1  ;;  %v1981_v37 = vsel %vm894_vm3, %v1966_v54, 0.0  ;;  %v4788_v8 = vld [vmem:[%s7049_s1 + $0xd8] sm:$0xff]   ;;  %vm7060_vm3 = vcmask 1045504  }
 0xf56   :  { %v1952_v11 = vmax.f32 %v1942_v5, 0.0  ;;  %v1945_v29 = vadd.f32 %v3955_v36, %v1944_v52  ;;  %v4279_v1 = vpop.f32.mrb[71].mxu1  ;;  %v1980_v36 = vsel %vm896_vm0, %v1964_v44, 0.0 }
 0xf58   :  { %v1967_v9 = vrot.slane %v1952_v11, 4  ;;  %v1953_v4 = vmax.f32 %v1945_v29, 0.0 }
 0xf5a   :  { %v1968_v10 = vsel %vm7059_vm1, %v1965_v60, %v1967_v9  ;;  %v4617_v12 = vpack.i.bf16 %v1953_v4, %v1952_v11  ;;  %v1969_v24 = vrot.slane %v1953_v4, 4 }
 0xf5b   :  { %v1982_v57 = vsel %vm895_vm5, %v1968_v10, 0.0 }
 0xf5c   :  { %v1970_v50 = vsel %vm7059_vm1, %v1967_v9, %v1969_v24  ;;  %4618 = vrot.lane.b32.xlu1 %v4617_v12, %s4848_s17 }
 0xf5d   :  { %v1983_v7 = vsel %vm896_vm0, %v1970_v50, 0.0 }
 0xfbe   :  { %v4609_v14 = vpop.permute.xlu1 %4608 }
 0xfbf   :  { %v4611_v15 = vunpack.i.h.bf16 %v4609_v14  ;;  %v4610_v23 = vunpack.i.l.bf16 %v4609_v14 }
 0xfc1   :  { %v2003_v20 = vsel %vm7053_vm9, %v1979_v18, %v4611_v15  ;;  %v2002_v21 = vsel %vm7053_vm9, %v1978_v17, %v4610_v23 }
 0xfc2   :  { %v2008_v22 = vpack.c.bf16 %v2003_v20, %v2002_v21 }
 0xfc4   :  { %4285 = vmatmul.mubr.msk.bf16.vlgmr.msra.gmra.mrb[72].mxu0 %vm7054_vm10, %v2008_v22 }
 0xfc5   :  { %4288 = vmatprep.mubr.msk.bf16.mxu0 %vm4847_vm4, %v4846_v30  ;;  %4311 = vmatpush3.bf16.msra.mxu0 %v4789_v46 }
 0xfc6   :  { %v4614_v31 = vpop.permute.xlu0 %4613  ;;  %4338 = vmatprep.subr.bf16.mxu0 %v4846_v30 }
 0xfc7   :  { %v4616_v32 = vunpack.i.h.bf16 %v4614_v31  ;;  %v4615_v33 = vunpack.i.l.bf16 %v4614_v31 }
 0xfc9   :  { %v2005_v34 = vsel %vm7053_vm9, %v1981_v37, %v4616_v32  ;;  %v2004_v53 = vsel %vm7053_vm9, %v1980_v36, %v4615_v33 }
 0xfca   :  { %v2009_v55 = vpack.c.bf16 %v2005_v34, %v2004_v53  ;;  %v4790_v53 = vld [vmem:[%s7049_s1 + $0xe0] sm:$0xff]  }
 0xfcc   :  { %4289 = vmatmul.mubr.msk.bf16.gmra.mrb[76].mxu0 %vm7054_vm10, %v2009_v55 }
 0xfcd   :  { %4292 = vmatprep.mubr.msk.bf16.mxu0 %vm4847_vm4, %v4846_v30 }
 0xfce   :  { %v4619_v40 = vpop.permute.xlu1 %4618 }
 0xfcf   :  { %v4621_v56 = vunpack.i.h.bf16 %v4619_v40  ;;  %v4620_v45 = vunpack.i.l.bf16 %v4619_v40 }
 0xfd1   :  { %v2006_v39 = vsel %vm7053_vm9, %v1982_v57, %v4620_v45  ;;  %v2007_v43 = vsel %vm7053_vm9, %v1983_v7, %v4621_v56 }
 0xfd2   :  { %v2010_v48 = vpack.c.bf16 %v2007_v43, %v2006_v39 }
 0xfd4   :  { %4293 = vmatmul.mubr.msk.bf16.gmra.mrb[80].mxu0 %vm7054_vm10, %v2010_v48 }
 0xfd5   :  { %4312 = vmatprep.mubr.msk.bf16.mxu0 %vm4847_vm4, %v4846_v30 }
0x1097   :  { %v2070_v19 = vpop.f32.mrb[72].mxu0 }
0x1098   :  { %v2071_v3 = vadd.f32 %v3961_v6, %v2070_v19  ;;  %v4286_v47 = vpop.f32.mrb[73].mxu0 }
0x1099   :  { %v2073_v61 = vpop.f32.mrb[74].mxu0 }
0x109a   :  { %v2093_v58 = vmax.f32 %v2071_v3, 0.0  ;;  %v2074_v62 = vadd.f32 %v3961_v6, %v2073_v61  ;;  %v4287_v63 = vpop.f32.mrb[75].mxu0 }
0x109c   :  { %v2099_v27 = vadd.f32 %v2093_v58, %v5639_v28  ;;  %v2094_v59 = vmax.f32 %v2074_v62, 0.0 }
0x109e   :  { %v2100_v49 = vadd.f32 %v2094_v59, %v5641_v16  ;;  %v2105_v0 = vmax.f32 %v2099_v27, 0.0 }
0x109f   :  { %v2078_v44 = vpop.f32.mrb[76].mxu0 }
0x10a0   :  { %v2106_v60 = vmax.f32 %v2100_v49, 0.0  ;;  %v2079_v42 = vadd.f32 %v3961_v6, %v2078_v44  ;;  %v4290_v54 = vpop.f32.mrb[77].mxu0 }
0x10a1   :  { %v2081_v5 = vpop.f32.mrb[78].mxu0 }
0x10a2   :  { %v2117_v2 = vpack.c.bf16 %v2106_v60, %v2105_v0  ;;  %v2095_v52 = vmax.f32 %v2079_v42, 0.0  ;;  %v2082_v11 = vadd.f32 %v3961_v6, %v2081_v5  ;;  %v4291_v29 = vpop.f32.mrb[79].mxu0 }
0x10a3   :  { %v4791_v29 = vld [vmem:[%s7049_s1 + $0xe8] sm:$0xff]  }
0x10a4   :  { %v2101_v1 = vadd.f32 %v2095_v52, %v5648_v35  ;;  %v2096_v28 = vmax.f32 %v2082_v11, 0.0  ;;  %4299 = vmatmul.mubr.msk.bf16.vlgmr.msra.gmra.mrb[72].mxu1 %vm7053_vm9, %v2117_v2 }
0x10a5   :  { %4302 = vmatprep.mubr.msk.bf16.mxu1 %vm4847_vm4, %v4846_v30  ;;  %4325 = vmatpush3.bf16.msra.mxu1 %v4788_v8 }
0x10a6   :  { %v2102_v16 = vadd.f32 %v2096_v28, %v5650_v38  ;;  %4352 = vmatprep.subr.bf16.mxu1 %v4846_v30  ;;  %v2107_v4 = vmax.f32 %v2101_v1, 0.0  ;;  %v3972_v1 = vld [vmem:[%s7050_s2 + $0xe] ss:$0 sm:$0xff]  ;;  %v3977_v28 = vld [vmem:[%s7050_s2 + $0xf] ss:$0 sm:$0xff] }
0x10a7   :  { %v2086_v9 = vpop.f32.mrb[80].mxu0 }
0x10a8   :  { %v2108_v10 = vmax.f32 %v2102_v16, 0.0  ;;  %v2087_v12 = vadd.f32 %v3961_v6, %v2086_v9  ;;  %v4294_v24 = vpop.f32.mrb[81].mxu0 }
0x10a9   :  { %v2089_v50 = vpop.f32.mrb[82].mxu0 }
0x10aa   :  { %v2118_v13 = vpack.c.bf16 %v2108_v10, %v2107_v4  ;;  %v2097_v14 = vmax.f32 %v2087_v12, 0.0  ;;  %v2090_v35 = vadd.f32 %v3961_v6, %v2089_v50  ;;  %v4295_v15 = vpop.f32.mrb[83].mxu0 }
0x10ac   :  { %v2103_v23 = vadd.f32 %v2097_v14, %v5657_v51  ;;  %v2098_v17 = vmax.f32 %v2090_v35, 0.0  ;;  %4303 = vmatmul.mubr.msk.bf16.gmra.mrb[76].mxu1 %vm7053_vm9, %v2118_v13  ;;  %v3967_v51 = vld [vmem:[%s7050_s2 + $0xd] ss:$0 sm:$0xff] }
0x10ad   :  { %4306 = vmatprep.mubr.msk.bf16.mxu1 %vm4847_vm4, %v4846_v30 }
0x10ae   :  { %v2104_v38 = vadd.f32 %v2098_v17, %v5659_v41  ;;  %v2109_v18 = vmax.f32 %v2103_v23, 0.0 }
0x10b0   :  { %v2110_v20 = vmax.f32 %v2104_v38, 0.0 }
0x10b2   :  { %v2119_v21 = vpack.c.bf16 %v2110_v20, %v2109_v18 }
0x10b4   :  { %4307 = vmatmul.mubr.msk.bf16.gmra.mrb[80].mxu1 %vm7053_vm9, %v2119_v21 }
0x10b5   :  { %4326 = vmatprep.mubr.msk.bf16.mxu1 %vm4847_vm4, %v4846_v30 }
0x10bc   :  { %4327 = vmatmul.mubr.msk.bf16.vlgmr.msra.gmra.mrb[84].mxu1 %vm7053_vm9, %v2117_v2 }
0x10bd   :  { %4330 = vmatprep.mubr.msk.bf16.mxu1 %vm4847_vm4, %v4846_v30  ;;  %4353 = vmatpush3.bf16.msra.mxu1 %v4791_v29 }
0x10c4   :  { %4331 = vmatmul.mubr.msk.bf16.gmra.mrb[88].mxu1 %vm7053_vm9, %v2118_v13 }
0x10c5   :  { %4334 = vmatprep.mubr.msk.bf16.mxu1 %vm4847_vm4, %v4846_v30 }
0x10cc   :  { %4335 = vmatmul.mubr.msk.bf16.gmra.mrb[92].mxu1 %vm7053_vm9, %v2119_v21 }
0x10cd   :  { %4354 = vmatprep.mubr.msk.bf16.mxu1 %vm4847_vm4, %v4846_v30 }
0x1177   :  { %v2173_v41 = vpop.f32.mrb[72].mxu1 }
0x1178   :  { %v2174_v22 = vadd.f32 %v3967_v51, %v2173_v41  ;;  %v4300_v31 = vpop.f32.mrb[73].mxu1 }
0x1179   :  { %v2176_v32 = vpop.f32.mrb[74].mxu1 }
0x117a   :  { %v2177_v33 = vadd.f32 %v3967_v51, %v2176_v32  ;;  %v4301_v36 = vpop.f32.mrb[75].mxu1  ;;  %v2196_v37 = vmax.f32 %v2174_v22, 0.0 }
0x117c   :  { %v2197_v34 = vmax.f32 %v2177_v33, 0.0 }
0x117e   :  { %v2202_v55 = vpack.c.bf16 %v2197_v34, %v2196_v37 }
0x117f   :  { %v2181_v40 = vpop.f32.mrb[76].mxu1 }
0x1180   :  { %v2182_v56 = vadd.f32 %v3967_v51, %v2181_v40  ;;  %v4304_v45 = vpop.f32.mrb[77].mxu1  ;;  %4313 = vmatmul.mubr.msk.bf16.vlgmr.msra.gmra.mrb[84].mxu0 %vm7053_vm9, %v2202_v55 }
0x1181   :  { %v2184_v57 = vpop.f32.mrb[78].mxu1  ;;  %4316 = vmatprep.mubr.msk.bf16.mxu0 %vm4847_vm4, %v4846_v30  ;;  %4339 = vmatpush3.bf16.msra.mxu0 %v4790_v53 }
0x1182   :  { %v2185_v7 = vadd.f32 %v3967_v51, %v2184_v57  ;;  %v4305_v39 = vpop.f32.mrb[79].mxu1  ;;  %v2198_v43 = vmax.f32 %v2182_v56, 0.0 }
0x1184   :  { %v2199_v48 = vmax.f32 %v2185_v7, 0.0 }
0x1186   :  { %v2203_v46 = vpack.c.bf16 %v2199_v48, %v2198_v43 }
0x1187   :  { %v2189_v6 = vpop.f32.mrb[80].mxu1 }
0x1188   :  { %v2190_v19 = vadd.f32 %v3967_v51, %v2189_v6  ;;  %v4308_v3 = vpop.f32.mrb[81].mxu1  ;;  %4317 = vmatmul.mubr.msk.bf16.gmra.mrb[88].mxu0 %vm7053_vm9, %v2203_v46 }
0x1189   :  { %v2192_v47 = vpop.f32.mrb[82].mxu1  ;;  %4320 = vmatprep.mubr.msk.bf16.mxu0 %vm4847_vm4, %v4846_v30 }
0x118a   :  { %v2193_v61 = vadd.f32 %v3967_v51, %v2192_v47  ;;  %v4309_v58 = vpop.f32.mrb[83].mxu1  ;;  %v2200_v62 = vmax.f32 %v2190_v19, 0.0 }
0x118c   :  { %v2201_v63 = vmax.f32 %v2193_v61, 0.0 }
0x118e   :  { %v2204_v27 = vpack.c.bf16 %v2201_v63, %v2200_v62 }
0x118f   :  { %v2334_v59 = vpop.f32.mrb[84].mxu1 }
0x1190   :  { %4321 = vmatmul.mubr.msk.bf16.gmra.mrb[92].mxu0 %vm7053_vm9, %v2204_v27  ;;  %v4328_v49 = vpop.f32.mrb[85].mxu1  ;;  %v2335_v12 = vadd.f32 %v3977_v28, %v2334_v59  ;;  %v3982_v27 = vld [vmem:[%s7050_s2 + $0x10] ss:$0 sm:$0xff] }
0x1191   :  { %v2337_v44 = vpop.f32.mrb[86].mxu1  ;;  %4340 = vmatprep.mubr.msk.bf16.mxu0 %vm4847_vm4, %v4846_v30 }
0x1192   :  { %v4329_v0 = vpop.f32.mrb[87].mxu1  ;;  %v2338_v14 = vadd.f32 %v3977_v28, %v2337_v44 }
0x1197   :  { %v2342_v60 = vpop.f32.mrb[88].mxu1 }
0x1198   :  { %v4332_v42 = vpop.f32.mrb[89].mxu1  ;;  %v2343_v41 = vadd.f32 %v3977_v28, %v2342_v60 }
0x1199   :  { %v2345_v54 = vpop.f32.mrb[90].mxu1 }
0x119a   :  { %v4333_v5 = vpop.f32.mrb[91].mxu1  ;;  %v2346_v36 = vadd.f32 %v3977_v28, %v2345_v54 }
0x119f   :  { %v2350_v8 = vpop.f32.mrb[92].mxu1 }
0x11a0   :  { %v4336_v2 = vpop.f32.mrb[93].mxu1  ;;  %v2351_v39 = vadd.f32 %v3977_v28, %v2350_v8 }
0x11a1   :  { %v2353_v52 = vpop.f32.mrb[94].mxu1 }
0x11a2   :  { %v4337_v11 = vpop.f32.mrb[95].mxu1  ;;  %v2354_v19 = vadd.f32 %v3977_v28, %v2353_v52 }
0x1253   :  { %v2258_v16 = vpop.f32.mrb[84].mxu0 }
0x1254   :  { %v2259_v9 = vadd.f32 %v3972_v1, %v2258_v16  ;;  %v4314_v4 = vpop.f32.mrb[85].mxu0 }
0x1255   :  { %v2261_v10 = vpop.f32.mrb[86].mxu0 }
0x1256   :  { %v2281_v24 = vmax.f32 %v2259_v9, 0.0  ;;  %v2262_v50 = vadd.f32 %v3972_v1, %v2261_v10  ;;  %v4315_v13 = vpop.f32.mrb[87].mxu0 }
0x1258   :  { %v5813_v35 = vadd.f32 %v2335_v12, %v2281_v24  ;;  %v2282_v15 = vmax.f32 %v2262_v50, 0.0 }
0x125a   :  { %v5815_v23 = vadd.f32 %v2338_v14, %v2282_v15  ;;  %v2363_v38 = vmax.f32 %v5813_v35, 0.0 }
0x125b   :  { %v2266_v17 = vpop.f32.mrb[88].mxu0 }
0x125c   :  { %v2364_v18 = vmax.f32 %v5815_v23, 0.0  ;;  %v2267_v20 = vadd.f32 %v3972_v1, %v2266_v17  ;;  %v4318_v21 = vpop.f32.mrb[89].mxu0 }
0x125d   :  { %v2269_v51 = vpop.f32.mrb[90].mxu0  ;;  %v3987_v21 = vld [vmem:[%s7050_s2 + $0x11] ss:$0 sm:$0xff]  ;;  %s4854_s2 = smov 127  }
0x125e   :  { %v2375_v22 = vpack.c.bf16 %v2364_v18, %v2363_v38  ;;  %v2283_v31 = vmax.f32 %v2267_v20, 0.0  ;;  %v2270_v32 = vadd.f32 %v3972_v1, %v2269_v51  ;;  %v4319_v33 = vpop.f32.mrb[91].mxu0 }
0x1260   :  { %v5823_v37 = vadd.f32 %v2343_v41, %v2283_v31  ;;  %v2284_v34 = vmax.f32 %v2270_v32, 0.0  ;;  %4341 = vmatmul.mubr.msk.bf16.vlgmr.msra.gmra.mrb[96].mxu0 %vm7053_vm9, %v2375_v22 }
0x1261   :  { %4344 = vmatprep.mubr.msk.bf16.mxu0 %vm4847_vm4, %v4846_v30 }
0x1262   :  { %v5828_v53 = vadd.f32 %v2346_v36, %v2284_v34  ;;  %v2365_v40 = vmax.f32 %v5823_v37, 0.0 }
0x1263   :  { %v2274_v55 = vpop.f32.mrb[92].mxu0 }
0x1264   :  { %v2366_v56 = vmax.f32 %v5828_v53, 0.0  ;;  %v2275_v45 = vadd.f32 %v3972_v1, %v2274_v55  ;;  %v4322_v57 = vpop.f32.mrb[93].mxu0 }
0x1265   :  { %v2277_v7 = vpop.f32.mrb[94].mxu0 }
0x1266   :  { %v2376_v43 = vpack.c.bf16 %v2366_v56, %v2365_v40  ;;  %v2285_v48 = vmax.f32 %v2275_v45, 0.0  ;;  %v2278_v46 = vadd.f32 %v3972_v1, %v2277_v7  ;;  %v4323_v6 = vpop.f32.mrb[95].mxu0 }
0x1268   :  { %v5836_v3 = vadd.f32 %v2351_v39, %v2285_v48  ;;  %v2286_v47 = vmax.f32 %v2278_v46, 0.0  ;;  %4345 = vmatmul.mubr.msk.bf16.gmra.mrb[100].mxu0 %vm7053_vm9, %v2376_v43 }
0x1269   :  { %4348 = vmatprep.mubr.msk.bf16.mxu0 %vm4847_vm4, %v4846_v30 }
0x126a   :  { %v5841_v61 = vadd.f32 %v2354_v19, %v2286_v47  ;;  %v2367_v58 = vmax.f32 %v5836_v3, 0.0 }
0x126c   :  { %v2368_v62 = vmax.f32 %v5841_v61, 0.0 }
0x126e   :  { %v2377_v63 = vpack.c.bf16 %v2368_v62, %v2367_v58 }
0x1270   :  { %4349 = vmatmul.mubr.msk.bf16.gmra.mrb[104].mxu0 %vm7053_vm9, %v2377_v63 }
0x1271   :  { %3748 = vmatprep.mubr.f32.mxu0 %v4846_v30 }
0x1333   :  { %v2431_v59 = vpop.f32.mrb[96].mxu0 }
0x1334   :  { %v2432_v49 = vadd.f32 %v3982_v27, %v2431_v59  ;;  %v4342_v44 = vpop.f32.mrb[97].mxu0 }
0x1335   :  { %v2434_v0 = vpop.f32.mrb[98].mxu0 }
0x1336   :  { %v2435_v60 = vadd.f32 %v3982_v27, %v2434_v0  ;;  %v4343_v42 = vpop.f32.mrb[99].mxu0  ;;  %v2454_v54 = vmax.f32 %v2432_v49, 0.0 }
0x1338   :  { %v2455_v5 = vmax.f32 %v2435_v60, 0.0 }
0x133a   :  { %v2460_v8 = vpack.c.bf16 %v2455_v5, %v2454_v54 }
0x133b   :  { %v2439_v2 = vpop.f32.mrb[100].mxu0 }
0x133c   :  { %v2440_v52 = vadd.f32 %v3982_v27, %v2439_v2  ;;  %v4346_v11 = vpop.f32.mrb[101].mxu0  ;;  %4355 = vmatmul.mubr.msk.bf16.vlgmr.msra.gmra.mrb[96].mxu1 %vm7053_vm9, %v2460_v8 }
0x133d   :  { %v2442_v29 = vpop.f32.mrb[102].mxu0  ;;  %4358 = vmatprep.mubr.msk.bf16.mxu1 %vm4847_vm4, %v4846_v30 }
0x133e   :  { %v2443_v1 = vadd.f32 %v3982_v27, %v2442_v29  ;;  %v4347_v28 = vpop.f32.mrb[103].mxu0  ;;  %v2456_v16 = vmax.f32 %v2440_v52, 0.0 }
0x1340   :  { %v2457_v9 = vmax.f32 %v2443_v1, 0.0 }
0x1342   :  { %v2461_v4 = vpack.c.bf16 %v2457_v9, %v2456_v16 }
0x1343   :  { %v2447_v10 = vpop.f32.mrb[104].mxu0 }
0x1344   :  { %v2448_v12 = vadd.f32 %v3982_v27, %v2447_v10  ;;  %v4350_v24 = vpop.f32.mrb[105].mxu0  ;;  %4359 = vmatmul.mubr.msk.bf16.gmra.mrb[100].mxu1 %vm7053_vm9, %v2461_v4 }
0x1345   :  { %v2450_v50 = vpop.f32.mrb[106].mxu0  ;;  %4362 = vmatprep.mubr.msk.bf16.mxu1 %vm4847_vm4, %v4846_v30  ;;  %vm2818_vm4 = vcmask 15360  }
0x1346   :  { %v2451_v13 = vadd.f32 %v3982_v27, %v2450_v50  ;;  %v4351_v14 = vpop.f32.mrb[107].mxu0  ;;  %v2458_v15 = vmax.f32 %v2448_v12, 0.0 }
0x1348   :  { %v2459_v17 = vmax.f32 %v2451_v13, 0.0 }
0x134a   :  { %v2462_v20 = vpack.c.bf16 %v2459_v17, %v2458_v15 }
0x134c   :  { %4363 = vmatmul.mubr.msk.bf16.gmra.mrb[104].mxu1 %vm7053_vm9, %v2462_v20 }
0x134d   :  { %3819 = vmatprep.mubr.f32.mxu1 %v4846_v30 }
0x140f   :  { %v2516_v51 = vpop.f32.mrb[96].mxu1 }
0x1410   :  { %v2517_v41 = vadd.f32 %v3987_v21, %v2516_v51  ;;  %v4356_v22 = vpop.f32.mrb[97].mxu1 }
0x1411   :  { %v2519_v31 = vpop.f32.mrb[98].mxu1 }
0x1412   :  { %v2539_v32 = vmax.f32 %v2517_v41, 0.0  ;;  %v2520_v33 = vadd.f32 %v3987_v21, %v2519_v31  ;;  %v4357_v36 = vpop.f32.mrb[99].mxu1 }
0x1414   :  { %v2545_v34 = vadd.f32 %v2539_v32, %v2363_v38  ;;  %v2540_v55 = vmax.f32 %v2520_v33, 0.0 }
0x1416   :  { %v2551_v45 = vmax.f32 %v2545_v34, 0.0  ;;  %v2546_v57 = vadd.f32 %v2540_v55, %v2364_v18 }
0x1417   :  { %v2524_v30 = vpop.f32.mrb[100].mxu1 }
0x1418   :  { %v2552_v7 = vmax.f32 %v2546_v57, 0.0  ;;  %v2525_v39 = vadd.f32 %v3987_v21, %v2524_v30  ;;  %2563 = vrot.lane.b32.xlu0 %v2551_v45, %s4849_s8  ;;  %v4360_v43 = vpop.f32.mrb[101].mxu1 }
0x1419   :  { %v2527_v48 = vpop.f32.mrb[102].mxu1 }
0x141a   :  { %v2528_v46 = vadd.f32 %v3987_v21, %v2527_v48  ;;  %2565 = vrot.lane.b32.xlu1 %v2552_v7, %s4849_s8  ;;  %v4361_v6 = vpop.f32.mrb[103].mxu1  ;;  %v2541_v19 = vmax.f32 %v2525_v39, 0.0 }
0x141c   :  { %v2542_v47 = vmax.f32 %v2528_v46, 0.0  ;;  %v2547_v23 = vadd.f32 %v2541_v19, %v2365_v40 }
0x141e   :  { %v2548_v35 = vadd.f32 %v2542_v47, %v2366_v56  ;;  %v2553_v60 = vmax.f32 %v2547_v23, 0.0  ;;  %v4832_v47 = vld [vmem:[%s7048_s0 + $0x10] sm:$0xff] }
0x141f   :  { %v2532_v38 = vpop.f32.mrb[104].mxu1 }
0x1420   :  { %v2554_v18 = vmax.f32 %v2548_v35, 0.0  ;;  %v2533_v63 = vadd.f32 %v3987_v21, %v2532_v38  ;;  %v4364_v27 = vpop.f32.mrb[105].mxu1  ;;  %v4833_v38 = vld [vmem:[%s7048_s0 + $0x18] sm:$0xff] }
0x1421   :  { %v2535_v59 = vpop.f32.mrb[106].mxu1  ;;  %v4835_v27 = vld [vmem:[%s7048_s0 + $0x8] sm:$0xff] }
0x1422   :  { %v2543_v49 = vmax.f32 %v2533_v63, 0.0  ;;  %v2536_v44 = vadd.f32 %v3987_v21, %v2535_v59  ;;  %2569 = vrot.lane.b32.xlu0 %v2554_v18, %s4849_s8  ;;  %v4365_v0 = vpop.f32.mrb[107].mxu1 }
0x1424   :  { %v2549_v42 = vadd.f32 %v2543_v49, %v2367_v58  ;;  %v2544_v54 = vmax.f32 %v2536_v44, 0.0 }
0x1426   :  { %v2555_v5 = vmax.f32 %v2549_v42, 0.0  ;;  %v2550_v53 = vadd.f32 %v2544_v54, %v2368_v62  ;;  %2567 = vrot.lane.b32.xlu0 %v2553_v60, %s4849_s8  ;;  %v4837_v54 = vld [vmem:[%s7048_s0 + $0x28] sm:$0xff] }
0x1428   :  { %2571 = vrot.lane.b32.xlu1 %v2555_v5, %s4849_s8  ;;  %v2556_v37 = vmax.f32 %v2550_v53, 0.0 }
0x142c   :  { %2573 = vrot.lane.b32.xlu1 %v2556_v37, %s4849_s8  ;;  %s4853_s8 = smov 1  }
0x148a   :  { %v2564_v40 = vpop.permute.xlu0 %2563 }
0x148b   :  { %v2581_v56 = vadd.f32 %v2564_v40, %v2551_v45 }
0x148c   :  { %v2566_v8 = vpop.permute.xlu1 %2565 }
0x148d   :  { %v2587_v2 = vsub.f32 0.0, %v2581_v56  ;;  %v2582_v52 = vadd.f32 %v2566_v8, %v2552_v7 }
0x148f   :  { %v2593_v11 = vmul.f32 1.442695, %v2587_v2  ;;  %v2588_v29 = vsub.f32 0.0, %v2582_v52  ;;  %v4838_v2 = vld [vmem:[%s7048_s0 + $0x40] sm:$0xff] }
0x1491   :  { %4792 = vpow2.f32 %v2593_v11  ;;  %v2595_v1 = vmul.f32 1.442695, %v2588_v29  ;;  %v4839_v11 = vld [vmem:[%s7048_s0 + $0x48] sm:$0xff] }
0x1493   :  { %4794 = vpow2.f32 %v2595_v1 }
0x1494   :  { %v2570_v3 = vpop.permute.xlu0 %2569 }
0x1495   :  { %v2584_v58 = vadd.f32 %v2570_v3, %v2554_v18  ;;  %v4834_v18 = vld [vmem:[%s7048_s0] sm:$0xff] }
0x1497   :  { %v2590_v28 = vsub.f32 0.0, %v2584_v58 }
0x1498   :  { %v2568_v16 = vpop.permute.xlu0 %2567 }
0x1499   :  { %v2599_v61 = vmul.f32 1.442695, %v2590_v28  ;;  %v2583_v62 = vadd.f32 %v2568_v16, %v2553_v60  ;;  %v4836_v60 = vld [vmem:[%s7048_s0 + $0x20] sm:$0xff]  ;;  %v4840_v16 = vld [vmem:[%s7048_s0 + $0x30] sm:$0xff] }
0x149a   :  { %v2572_v9 = vpop.permute.xlu1 %2571 }
0x149b   :  { %v4793_v4 = vpop.eup %4792  ;;  %4796 = vpow2.f32 %v2599_v61  ;;  %v2589_v10 = vsub.f32 0.0, %v2583_v62  ;;  %v2585_v12 = vadd.f32 %v2572_v9, %v2555_v5  ;;  %v4841_v62 = vld [vmem:[%s7048_s0 + $0x38] sm:$0xff] }
0x149c   :  { %v2605_v24 = vadd.f32 1.0, %v4793_v4 }
0x149d   :  { %v4795_v50 = vpop.eup %4794  ;;  %v2597_v13 = vmul.f32 1.442695, %v2589_v10  ;;  %v2591_v14 = vsub.f32 0.0, %v2585_v12 }
0x149e   :  { %4798 = vrcp.f32 %v2605_v24  ;;  %v2606_v15 = vadd.f32 1.0, %v4795_v50  ;;  %v2574_v17 = vpop.permute.xlu1 %2573 }
0x149f   :  { %4800 = vpow2.f32 %v2597_v13  ;;  %v2601_v20 = vmul.f32 1.442695, %v2591_v14  ;;  %v2586_v21 = vadd.f32 %v2574_v17, %v2556_v37 }
0x14a0   :  { %4802 = vrcp.f32 %v2606_v15  ;;  %v4842_v15 = vld [vmem:[%s7048_s0 + $0x50] sm:$0xff] }
0x14a1   :  { %4804 = vpow2.f32 %v2601_v20  ;;  %v2592_v51 = vsub.f32 0.0, %v2586_v21  ;;  %v4843_v20 = vld [vmem:[%s7048_s0 + $0x58] sm:$0xff]  ;;  %s4850_s0 = smov 126  }
0x14a3   :  { %v2603_v41 = vmul.f32 1.442695, %v2592_v51 }
0x14a5   :  { %v4797_v22 = vpop.eup %4796  ;;  %4806 = vpow2.f32 %v2603_v41 }
0x14a6   :  { %v2608_v31 = vadd.f32 1.0, %v4797_v22 }
0x14a8   :  { %v4799_v32 = vpop.eup %4798  ;;  %4808 = vrcp.f32 %v2608_v31 }
0x14a9   :  { %v4801_v33 = vpop.eup %4800  ;;  %2619 = vperm.xlu0 %4440, %v4799_v32  }
0x14aa   :  { %v4803_v36 = vpop.eup %4802  ;;  %v2607_v34 = vadd.f32 1.0, %v4801_v33 }
0x14ab   :  { %v4805_v55 = vpop.eup %4804  ;;  %2624 = vperm.xlu1 %4441, %v4803_v36  }
0x14ac   :  { %4810 = vrcp.f32 %v2607_v34  ;;  %v2609_v45 = vadd.f32 1.0, %v4805_v55 }
0x14ae   :  { %4812 = vrcp.f32 %v2609_v45 }
0x14af   :  { %v4807_v57 = vpop.eup %4806 }
0x14b0   :  { %v2610_v30 = vadd.f32 1.0, %v4807_v57 }
0x14b2   :  { %v4809_v7 = vpop.eup %4808  ;;  %4814 = vrcp.f32 %v2610_v30 }
0x14b3   :  { %2634 = vperm.xlu0 %4440, %v4809_v7  }
0x14b6   :  { %v4811_v39 = vpop.eup %4810 }
0x14b7   :  { %2629 = vperm.xlu0 %4440, %v4811_v39  }
0x14b8   :  { %v4813_v43 = vpop.eup %4812 }
0x14b9   :  { %2639 = vperm.xlu1 %4441, %v4813_v43  }
0x14bc   :  { %v4815_v48 = vpop.eup %4814 }
0x14bd   :  { %2644 = vperm.xlu1 %4441, %v4815_v48  }
0x1528   :  { %v2620_v46 = vpop.permute.xlu0 %2619 }
0x1529   :  { %v5890_v63 = vmul.f32 %v4834_v18, %v2620_v46  ;;  %v5895_v59 = vmul.f32 %v4835_v27, %v2620_v46 }
0x152a   :  { %v2625_v6 = vpop.permute.xlu1 %2624 }
0x152b   :  { %v5880_v35 = vmul.f32 %v4832_v47, %v2625_v6  ;;  %v5885_v23 = vmul.f32 %v4833_v38, %v2625_v6  ;;  %7083 = vst [vmem:[#allocation3_spill] sm:$0xff] %v5895_v59 }
0x152d   :  { %7082 = vst [vmem:[#allocation2_spill] sm:$0xff] %v5885_v23  ;;  %v2675_v44 = vadd.f32 %v5880_v35, %v5890_v63  ;;  %v2683_v0 = vadd.f32 %v5885_v23, %v5895_v59 }
0x1532   :  { %v2635_v19 = vpop.permute.xlu0 %2634 }
0x1533   :  { %v5932_v61 = vmul.f32 %v4840_v16, %v2635_v19  ;;  %v5937_v9 = vmul.f32 %v4841_v62, %v2635_v19 }
0x1535   :  { %7087 = vst [vmem:[#allocation7_spill] sm:$0xff] %v5932_v61  ;;  %7088 = vst [vmem:[#allocation8_spill] sm:$0xff] %v5937_v9 }
0x1536   :  { %v2630_v49 = vpop.permute.xlu0 %2629 }
0x1537   :  { %v5904_v42 = vmul.f32 %v4836_v60, %v2630_v49  ;;  %v5909_v5 = vmul.f32 %v4837_v54, %v2630_v49 }
0x1538   :  { %v2640_v53 = vpop.permute.xlu1 %2639 }
0x1539   :  { %7084 = vst [vmem:[#allocation4_spill] sm:$0xff] %v5909_v5  ;;  %v2659_v37 = vmax.f32 %v5890_v63, %v5904_v42  ;;  %v2667_v40 = vmax.f32 %v5895_v59, %v5909_v5  ;;  %v2676_v56 = vadd.f32 %v2675_v44, %v5904_v42  ;;  %v2684_v8 = vadd.f32 %v2683_v0, %v5909_v5 }
0x153a   :  { %v5920_v52 = vmul.f32 %v4838_v2, %v2640_v53  ;;  %v5925_v29 = vmul.f32 %v4839_v11, %v2640_v53 }
0x153b   :  { %v2660_v1 = vmax.f32 %v2659_v37, %v5880_v35  ;;  %v2668_v3 = vmax.f32 %v2667_v40, %v5885_v23  ;;  %v2677_v58 = vrot.slane %v2676_v56, 4  ;;  %v2685_v28 = vrot.slane %v2684_v8, 4 }
0x153c   :  { %7085 = vst [vmem:[#allocation5_spill] sm:$0xff] %v5920_v52  ;;  %7086 = vst [vmem:[#allocation6_spill] sm:$0xff] %v5925_v29  ;;  %v2645_v4 = vpop.permute.xlu1 %2644  ;;  %v2710_v13 = vadd.f32 %v5920_v52, %v5932_v61  ;;  %v2718_v14 = vadd.f32 %v5925_v29, %v5937_v9 }
0x153d   :  { %v2661_v10 = vrot.slane %v2660_v1, 4  ;;  %v2669_v12 = vrot.slane %v2668_v3, 4  ;;  %v2678_v24 = vadd.f32 %v2677_v58, %v2676_v56  ;;  %v2686_v50 = vadd.f32 %v2685_v28, %v2684_v8 }
0x153e   :  { %v5946_v17 = vmul.f32 %v4842_v15, %v2645_v4  ;;  %v5951_v21 = vmul.f32 %v4843_v20, %v2645_v4 }
0x153f   :  { %v2662_v51 = vmax.f32 %v2660_v1, %v2661_v10  ;;  %v2670_v41 = vmax.f32 %v2668_v3, %v2669_v12  ;;  %v2679_v22 = vrot.slane %v2678_v24, 2  ;;  %v2687_v31 = vrot.slane %v2686_v50, 2 }
0x1540   :  { %7089 = vst [vmem:[#allocation9_spill] sm:$0xff] %v5946_v17  ;;  %7090 = vst [vmem:[#allocation10_spill] sm:$0xff] %v5951_v21  ;;  %v2694_v32 = vmax.f32 %v5932_v61, %v5946_v17  ;;  %v2702_v33 = vmax.f32 %v5937_v9, %v5951_v21  ;;  %v2711_v36 = vadd.f32 %v2710_v13, %v5946_v17 }
0x1541   :  { %v2719_v34 = vadd.f32 %v2718_v14, %v5951_v21  ;;  %v2663_v55 = vrot.slane %v2662_v51, 2  ;;  %v2671_v45 = vrot.slane %v2670_v41, 2  ;;  %v2680_v57 = vadd.f32 %v2679_v22, %v2678_v24 }
0x1542   :  { %v2688_v30 = vadd.f32 %v2687_v31, %v2686_v50  ;;  %v2695_v7 = vmax.f32 %v2694_v32, %v5920_v52  ;;  %v2703_v39 = vmax.f32 %v2702_v33, %v5925_v29  ;;  %v2712_v43 = vrot.slane %v2711_v36, 4 }
0x1543   :  { %v2720_v48 = vrot.slane %v2719_v34, 4  ;;  %v2664_v46 = vmax.f32 %v2662_v51, %v2663_v55  ;;  %v2672_v6 = vmax.f32 %v2670_v41, %v2671_v45  ;;  %v2681_v19 = vrot.slane %v2680_v57, 1 }
0x1544   :  { %v2689_v47 = vrot.slane %v2688_v30, 1  ;;  %v2696_v38 = vrot.slane %v2695_v7, 4  ;;  %v2704_v18 = vrot.slane %v2703_v39, 4  ;;  %v2713_v27 = vadd.f32 %v2712_v43, %v2711_v36 }
0x1545   :  { %v2721_v49 = vadd.f32 %v2720_v48, %v2719_v34  ;;  %v2665_v44 = vrot.slane %v2664_v46, 1  ;;  %v2673_v0 = vrot.slane %v2672_v6, 1  ;;  %v2682_v60 = vadd.f32 %v2681_v19, %v2680_v57 }
0x1546   :  { %v2690_v54 = vadd.f32 %v2689_v47, %v2688_v30  ;;  %v2697_v53 = vmax.f32 %v2695_v7, %v2696_v38  ;;  %v2705_v37 = vmax.f32 %v2703_v39, %v2704_v18  ;;  %v2714_v40 = vrot.slane %v2713_v27, 2 }
0x1547   :  { %v2722_v56 = vrot.slane %v2721_v49, 2  ;;  %v2692_v8 = vmul.f32 0.041666668, %v2682_v60  ;;  %v2666_v28 = vmax.f32 %v2664_v46, %v2665_v44  ;;  %v2674_v16 = vmax.f32 %v2672_v6, %v2673_v0 }
0x1548   :  { %v2693_v2 = vmul.f32 0.041666668, %v2690_v54  ;;  %v2698_v11 = vrot.slane %v2697_v53, 2  ;;  %v2706_v1 = vrot.slane %v2705_v37, 2  ;;  %v2715_v3 = vadd.f32 %v2714_v40, %v2713_v27 }
0x1549   :  { %v2723_v58 = vadd.f32 %v2722_v56, %v2721_v49  ;;  %v2732_v62 = vrot.slane %v2692_v8, 7  ;;  %v5994_v7 = vand.u32 127, %v94_v25 }
0x154a   :  { %v2733_v4 = vrot.slane %v2693_v2, 7  ;;  %v2699_v10 = vmax.f32 %v2697_v53, %v2698_v11  ;;  %v2707_v12 = vmax.f32 %v2705_v37, %v2706_v1  ;;  %v2716_v24 = vrot.slane %v2715_v3, 1 }
0x154b   :  { %v2724_v50 = vrot.slane %v2723_v58, 1  ;;  %v5965_v14 = vsel %vm114_vm6, %v2666_v28, %v2732_v62  ;;  %v5997_v39 = vadd.s32 128, %v5994_v7  ;;  %v2749_v43 = vand.u32 15, %v5994_v7 }
0x154c   :  { %v5962_v13 = vsel %vm114_vm6, %v2674_v16, %v2733_v4  ;;  %v2717_v15 = vadd.f32 %v2716_v24, %v2715_v3  ;;  %v2700_v51 = vrot.slane %v2699_v10, 1  ;;  %v2708_v41 = vrot.slane %v2707_v12, 1 }
0x154d   :  { %v2725_v20 = vadd.f32 %v2724_v50, %v2723_v58  ;;  %2946 = vrot.lane.b32.xlu1 %v5962_v13, %s4850_s0  ;;  %v4622_v22 = vpack.i.bf16 %v5962_v13, %v5965_v14  ;;  %v6001_v48 = vand.u32 15, %v5997_v39  ;;  %v6004_v46 = vadd.s32 256, %v5994_v7 }
0x154e   :  { %v2726_v31 = vmul.f32 0.041666668, %v2717_v15  ;;  %v2701_v34 = vmax.f32 %v2699_v10, %v2700_v51  ;;  %v2709_v55 = vmax.f32 %v2707_v12, %v2708_v41  ;;  %v6007_v6 = vadd.s32 384, %v5994_v7 }
0x154f   :  { %v2727_v32 = vmul.f32 0.041666668, %v2725_v20  ;;  %4623 = vrot.lane.b32.xlu0 %v4622_v22, %s4851_s6  ;;  %v2827_v19 = vadd.s32 4294967294, %v2749_v43  ;;  %v2828_v47 = vadd.s32 4294967294, %v6001_v48  ;;  %v6013_v25 = vand.u32 15, %v6004_v46 }
0x1550   :  { %v2734_v33 = vrot.slane %v2726_v31, 7  ;;  %v2871_v18 = vadd.s32 4294967295, %v2749_v43  ;;  %v2872_v27 = vadd.s32 4294967295, %v6001_v48  ;;  %v6017_v49 = vand.u32 15, %v6007_v6 }
0x1551   :  { %v2735_v36 = vrot.slane %v2727_v32, 7  ;;  %2991 = vrot.lane.b32.xlu1 %v5962_v13, %s4852_s7  ;;  %v6019_v44 = vadd.s32 4294967293, %v2749_v43  ;;  %v6022_v0 = vadd.s32 4294967293, %v6001_v48  ;;  %vm2832_vm7 = vcmp.ge.s32.totalorder %v2828_v47, 0 }
0x1552   :  { %v5973_v45 = vsel %vm114_vm6, %v2701_v34, %v2734_v33  ;;  %v6032_v56 = vadd.s32 4294967294, %v6013_v25  ;;  %vm2875_vm11 = vcmp.ge.s32.totalorder %v2871_v18, 0  ;;  %vm2876_vm13 = vcmp.ge.s32.totalorder %v2872_v27, 0 }
0x1553   :  { %4628 = vrot.lane.b32.xlu0 %v4622_v22, %s4853_s8  ;;  %v5976_v57 = vsel %vm114_vm6, %v2709_v55, %v2735_v36  ;;  %vm2831_vm6 = vcmp.ge.s32.totalorder %v2827_v19, 0  ;;  %v6035_v8 = vadd.s32 4294967294, %v6017_v49  ;;  %v6037_v2 = vadd.s32 2, %v2749_v43 }
0x1554   :  { %v4637_v30 = vpack.i.bf16 %v5976_v57, %v5973_v45  ;;  %vm2786_vm14 = vcmp.ge.s32.totalorder %v6019_v44, 0  ;;  %vm2787_vm15 = vcmp.ge.s32.totalorder %v6022_v0, 0  ;;  %v6042_v1 = vadd.s32 3, %v2749_v43 }
0x1555   :  { %2901 = vrot.lane.b32.xlu1 %v5962_v13, %s4854_s2  ;;  %v6047_v58 = vadd.s32 4294967295, %v6013_v25  ;;  %v6050_v28 = vadd.s32 4294967295, %v6017_v49  ;;  %v6053_v16 = vadd.s32 4294967293, %v6013_v25  ;;  %vm2834_vm9 = vcmp.ge.s32.totalorder %v6035_v8, 0 }
0x1556   :  { %v6068_v15 = vadd.s32 4294967293, %v6017_v49  ;;  %v6071_v51 = vadd.s32 1, %v2749_v43  ;;  %vm3014_vm0 = vcmp.lt.s32.totalorder %v6042_v1, 16  ;;  %v6079_v31 = vadd.s32 2, %v6017_v49 }
0x1557   :  { %4633 = vrot.lane.b32.xlu0 %v4622_v22, %s4855_s9  ;;  %v6082_v32 = vadd.s32 2, %v6001_v48  ;;  %vm2877_vm5 = vcmp.ge.s32.totalorder %v6047_v58, 0  ;;  %vm2878_vm10 = vcmp.ge.s32.totalorder %v6050_v28, 0  ;;  %v6091_v55 = vadd.s32 2, %v6013_v25 }
0x1558   :  { %v6101_v20 = vadd.s32 3, %v6001_v48  ;;  %v6104_v62 = vadd.s32 3, %v6013_v25  ;;  %v6123_v23 = vadd.s32 1, %v6017_v49 }
0x1559   :  { %4638 = vrot.lane.b32.xlu1 %v4637_v30, %s4851_s6 }
0x155b   :  { %2944 = vrot.lane.b32.xlu0 %v5965_v14, %s4850_s0 }
0x155d   :  { %4643 = vrot.lane.b32.xlu1 %v4637_v30, %s4853_s8 }
0x155f   :  { %2989 = vrot.lane.b32.xlu0 %v5965_v14, %s4852_s7 }
0x1561   :  { %4648 = vrot.lane.b32.xlu1 %v4637_v30, %s4855_s9  ;;  %v6094_v30 = vadd.s32 3, %v6017_v49 }
0x1563   :  { %2899 = vrot.lane.b32.xlu0 %v5965_v14, %s4854_s2 }
0x1565   :  { %2950 = vrot.lane.b32.xlu1 %v5976_v57, %s4850_s0 }
0x1567   :  { %2948 = vrot.lane.b32.xlu0 %v5973_v45, %s4850_s0 }
0x1569   :  { %2995 = vrot.lane.b32.xlu1 %v5976_v57, %s4852_s7 }
0x156b   :  { %2993 = vrot.lane.b32.xlu0 %v5973_v45, %s4852_s7 }
0x156d   :  { %2905 = vrot.lane.b32.xlu1 %v5976_v57, %s4854_s2 }
0x156f   :  { %2903 = vrot.lane.b32.xlu0 %v5973_v45, %s4854_s2 }
0x15bf   :  { %v6010_v38 = vpop.permute.xlu1 %2946 }
0x15c1   :  { %v6024_v60 = vpop.permute.xlu0 %4623 }
0x15c2   :  { %v4626_v54 = vunpack.i.h.bf16 %v6024_v60  ;;  %v4625_v53 = vunpack.i.l.bf16 %v6024_v60  ;;  %v7092_v60 = vrot.slane %v5962_v13, 2 }
0x15c3   :  { %v6028_v37 = vpop.permute.xlu1 %2991 }
0x15c4   :  { %v2819_v4 = vsel %vm2818_vm4, %v4625_v53, %v4626_v54  ;;  %v2826_v10 = vsel %vm2818_vm4, 0.0, %v4625_v53 }
0x15c5   :  { %v6044_v3 = vpop.permute.xlu0 %4628  ;;  %v2851_v33 = vsel %vm2831_vm6, %v2826_v10, 0.0  ;;  %v2852_v36 = vsel %vm2832_vm7, %v2819_v4, 0.0  ;;  %vm2907_vm6 = vcmask 1039360   ;;  %vm2788_vm7 = vcmp.ge.s32.totalorder %v6053_v16, 0 }
0x15c6   :  { %v7055_v12 = vunpack.i.h.bf16 %v6044_v3  ;;  %v4630_v24 = vunpack.i.l.bf16 %v6044_v3  ;;  %v3039_v40 = vrot.slane %v2852_v36, 6 }
0x15c7   :  { %v6062_v50 = vpop.permute.xlu1 %2901 }
0x15c8   :  { %v2863_v41 = vsel %vm73_vm2, %v4630_v24, %v7055_v12  ;;  %v2870_v22 = vsel %vm73_vm2, 0.0, %v4630_v24  ;;  %v3038_v12 = vrot.slane %v2851_v33, 6 }
0x15c9   :  { %v6086_v34 = vpop.permute.xlu0 %4633  ;;  %v2895_v43 = vsel %vm2875_vm11, %v2870_v22, 0.0  ;;  %v2896_v53 = vsel %vm2876_vm13, %v2863_v41, 0.0  ;;  %vm2789_vm11 = vcmp.ge.s32.totalorder %v6068_v15, 0  ;;  %vm2924_vm13 = vcmp.lt.s32.totalorder %v6071_v51, 16 }
0x15ca   :  { %v7056_v19 = vunpack.i.h.bf16 %v6086_v34  ;;  %v4635_v47 = vunpack.i.l.bf16 %v6086_v34  ;;  %v3050_v41 = vrot.slane %v2895_v43, 4  ;;  %v3051_v22 = vrot.slane %v2896_v53, 4 }
0x15cb   :  { %v4639_v4 = vpop.permute.xlu1 %4638  ;;  %v6129_v53 = vadd.s32 1, %v6001_v48  ;;  %v7098_v58 = vunpack.i.h.bf16 %v6086_v34 }
0x15cc   :  { %v4641_v10 = vunpack.i.h.bf16 %v4639_v4  ;;  %v4640_v24 = vunpack.i.l.bf16 %v4639_v4  ;;  %v2774_v18 = vsel %vm2773_vm8, %v4635_v47, %v7056_v19  ;;  %v2781_v27 = vsel %vm2773_vm8, 0.0, %v4635_v47 }
0x15cd   :  { %v2806_v4 = vsel %vm2786_vm14, %v2781_v27, 0.0  ;;  %v2807_v33 = vsel %vm2787_vm15, %v2774_v18, 0.0  ;;  %v2945_v36 = vpop.permute.xlu0 %2944  ;;  %vm7093_vm14 = vcmask 1031168   ;;  %vm7094_vm15 = vcmp.ge.s32.totalorder %v6032_v56, 0 }
0x15ce   :  { %v3090_v11 = vsel %vm7061_vm12, %v2806_v4, %v3038_v12  ;;  %v3091_v19 = vsel %vm7061_vm12, %v2807_v33, %v3039_v40  ;;  %v2820_v47 = vsel %vm2818_vm4, %v4626_v54, %v4640_v24  ;;  %v2821_v0 = vsel %vm2818_vm4, %v4640_v24, %v4641_v10 }
0x15cf   :  { %v4644_v5 = vpop.permute.xlu1 %4643  ;;  %v3094_v43 = vsel %vm7059_vm1, %v3090_v11, %v3050_v41  ;;  %v3095_v44 = vsel %vm7059_vm1, %v3091_v19, %v3051_v22  ;;  %v7091_v12 = vrot.slane %v5965_v14, 2  ;;  %v2953_v49 = vsel %vm7093_vm14, %v2945_v36, %v6010_v38 }
0x15d0   :  { %v6139_v54 = vsel %vm7060_vm3, %v3095_v44, %v7092_v60  ;;  %v4646_v11 = vunpack.i.h.bf16 %v4644_v5  ;;  %v2853_v19 = vsel %vm7094_vm15, %v2820_v47, 0.0  ;;  %v4645_v10 = vunpack.i.l.bf16 %v4644_v5 }
0x15d1   :  { %v6134_v40 = vsel %vm7060_vm3, %v3094_v43, %v7091_v12  ;;  %v2990_v48 = vpop.permute.xlu0 %2989  ;;  %vm2972_vm4 = vcmp.lt.s32.totalorder %v6079_v31, 16  ;;  %vm2970_vm1 = vcmp.lt.s32.totalorder %v6082_v32, 16  ;;  %v2854_v13 = vsel %vm2834_vm9, %v2821_v0, 0.0 }
0x15d2   :  { %v4652_v14 = vpack.i.bf16 %v6139_v54, %v6134_v40  ;;  %vm7095_vm3 = vcmp.lt.s32.totalorder %v6037_v2, 16  ;;  %vm7096_vm14 = vcmask 1022976   ;;  %vm2971_vm15 = vcmp.lt.s32.totalorder %v6091_v55, 16 }
0x15d3   :  { %v2985_v24 = vsel %vm7095_vm3, %v2953_v49, 0.0  ;;  %v2998_v18 = vsel %vm7096_vm14, %v2990_v48, %v6028_v37  ;;  %v4649_v56 = vpop.permute.xlu1 %4648  ;;  %v7097_v5 = vunpack.i.h.bf16 %v6044_v3  ;;  %v2865_v41 = vsel %vm73_vm2, %v4645_v10, %v4646_v11 }
0x15d4   :  { %v3030_v22 = vsel %vm3014_vm0, %v2998_v18, 0.0  ;;  %4653 = vrot.lane.b32.xlu0 %v4652_v14, %s4856_s10  ;;  %v4651_v8 = vunpack.i.h.bf16 %v4649_v56  ;;  %v2898_v4 = vsel %vm2878_vm10, %v2865_v41, 0.0  ;;  %v4650_v33 = vunpack.i.l.bf16 %v4649_v56 }
0x15d5   :  { %v2864_v27 = vsel %vm73_vm2, %v7097_v5, %v4645_v10  ;;  %vm3017_vm9 = vcmp.lt.s32.totalorder %v6094_v30, 16  ;;  %v6169_v3 = vadd.s32 1, %v6013_v25  ;;  %v3040_v36 = vrot.slane %v2853_v19, 6  ;;  %v2900_v44 = vpop.permute.xlu0 %2899 }
0x15d6   :  { %v2897_v2 = vsel %vm2877_vm5, %v2864_v27, 0.0  ;;  %v3041_v47 = vrot.slane %v2854_v13, 6  ;;  %v3070_v1 = vrot.slane %v2985_v24, 6  ;;  %v3082_v43 = vrot.slane %v3030_v22, 4 }
0x15d7   :  { %vm3015_vm2 = vcmp.lt.s32.totalorder %v6101_v20, 16  ;;  %v3052_v0 = vrot.slane %v2897_v2, 4  ;;  %v2775_v12 = vsel %vm2773_vm8, %v7098_v58, %v4650_v33  ;;  %v2776_v28 = vsel %vm2773_vm8, %v4650_v33, %v4651_v8  ;;  %v2951_v49 = vpop.permute.xlu1 %2950 }
0x15d8   :  { %v2908_v60 = vsel %vm2907_vm6, %v2900_v44, %v6062_v50  ;;  %v3053_v25 = vrot.slane %v2898_v4, 4  ;;  %v2808_v11 = vsel %vm2788_vm7, %v2775_v12, 0.0  ;;  %v2809_v19 = vsel %vm2789_vm11, %v2776_v28, 0.0  ;;  %4658 = vrot.lane.b32.xlu0 %v4652_v14, %s4857_s11 }
0x15d9   :  { %v2940_v10 = vsel %vm2924_vm13, %v2908_v60, 0.0  ;;  %v3092_v34 = vsel %vm7061_vm12, %v2808_v11, %v3040_v36  ;;  %v3093_v48 = vsel %vm7061_vm12, %v2809_v19, %v3041_v47  ;;  %vm3016_vm10 = vcmp.lt.s32.totalorder %v6104_v62, 16  ;;  %v2949_v18 = vpop.permute.xlu0 %2948 }
0x15da   :  { %v3103_v13 = vsel %vm7061_vm12, %v2940_v10, %v3070_v1  ;;  %vm7099_vm8 = vcmask 1043456   ;;  %vm7102_vm0 = vcmask 1031168   ;;  %v7103_v56 = vrot.slane %v5973_v45, 2 }
0x15db   :  { %v3096_v16 = vsel %vm7099_vm8, %v3092_v34, %v3052_v0  ;;  %vm7100_vm3 = vmmov %vm7099_vm8  ;;  %v2960_v51 = vsel %vm7102_vm0, %v2951_v49, 0.0  ;;  %vm7104_vm7 = vcmask 1045504   ;;  %v7105_v27 = vrot.slane %v5976_v57, 2  ;;  %v2996_v2 = vpop.permute.xlu1 %2995 }
0x15dc   :  { %v3097_v24 = vsel %vm7100_vm3, %v3093_v48, %v3053_v25  ;;  %vm7101_vm5 = vmmov %vm7100_vm3  ;;  %v6198_v5 = vsel %vm7104_vm7, %v3096_v16, %v7103_v56  ;;  %4663 = vrot.lane.b32.xlu0 %v4652_v14, %s4848_s17  ;;  %vm2927_vm8 = vcmp.lt.s32.totalorder %v6123_v23, 16  ;;  %vm2925_vm3 = vcmp.lt.s32.totalorder %v6129_v53, 16 }
0x15dd   :  { %v6192_v15 = vsel %vm7101_vm5, %v3103_v13, %v3082_v43  ;;  %vm7106_vm11 = vmmov %vm7104_vm7  ;;  %vm2926_vm5 = vcmp.lt.s32.totalorder %v6169_v3, 16  ;;  %v2988_v45 = vsel %vm2972_vm4, %v2960_v51, 0.0  ;;  %v2994_v36 = vpop.permute.xlu0 %2993  ;;  %v4732_v47 = vpack.i.bf16 %v6198_v5, %v6139_v54 }
0x15de   :  { %v6203_v41 = vsel %vm7106_vm11, %v3097_v24, %v7105_v27  ;;  %vm7107_vm13 = vmmov %vm7102_vm0  ;;  %v4667_v4 = vpack.i.bf16 %v6192_v15, %v6134_v40  ;;  %v3073_v43 = vrot.slane %v2988_v45, 6  ;;  %v7067_v53 = vrot.slane %v6139_v54, 6 }
0x15df   :  { %v2954_v22 = vsel %vm7107_vm13, %v6010_v38, %v2949_v18  ;;  %vm7108_vm14 = vmmov %vm7102_vm0  ;;  %vm7109_vm0 = vcmask 1022976   ;;  %v4717_v14 = vpack.i.bf16 %v6203_v41, %v6198_v5  ;;  %v2906_v1 = vpop.permute.xlu1 %2905  ;;  %v4737_v0 = vpack.i.bf16 %v6134_v40, %v6203_v41 }
0x15e0   :  { %v2955_v8 = vsel %vm7108_vm14, %v2949_v18, %v2951_v49  ;;  %v2986_v57 = vsel %vm2970_vm1, %v2954_v22, 0.0  ;;  %v3005_v38 = vsel %vm7109_vm0, %v2996_v2, 0.0  ;;  %4668 = vrot.lane.b32.xlu1 %v4667_v4, %s4858_s12  ;;  %vm7110_vm4 = vmmov %vm7109_vm0  ;;  %v2915_v55 = vsel %vm2907_vm6, %v2906_v1, 0.0 }
0x15e1   :  { %v2987_v33 = vsel %vm2971_vm15, %v2955_v8, 0.0  ;;  %v2999_v31 = vsel %vm7110_vm4, %v6028_v37, %v2994_v36  ;;  %vm7111_vm7 = vmmov %vm7109_vm0  ;;  %v3033_v44 = vsel %vm3017_vm9, %v3005_v38, 0.0  ;;  %v2943_v37 = vsel %vm2927_vm8, %v2915_v55, 0.0  ;;  %v2904_v49 = vpop.permute.xlu0 %2903 }
0x15e2   :  { %v3000_v32 = vsel %vm7111_vm7, %v2994_v36, %v2996_v2  ;;  %v3031_v58 = vsel %vm3015_vm2, %v2999_v31, 0.0  ;;  %v3071_v28 = vrot.slane %v2986_v57, 6  ;;  %v3072_v60 = vrot.slane %v2987_v33, 6 }
0x15e3   :  { %v3032_v12 = vsel %vm3016_vm10, %v3000_v32, 0.0  ;;  %v3085_v25 = vrot.slane %v3033_v44, 4  ;;  %v3106_v30 = vsel %vm7061_vm12, %v2943_v37, %v3073_v43  ;;  %v2909_v11 = vsel %vm2907_vm6, %v6062_v50, %v2904_v49 }
0x15e4   :  { %v2910_v19 = vsel %vm2907_vm6, %v2904_v49, %v2906_v1  ;;  %v3083_v10 = vrot.slane %v3031_v58, 4  ;;  %v3084_v20 = vrot.slane %v3032_v12, 4  ;;  %v2941_v62 = vsel %vm2925_vm3, %v2909_v11, 0.0 }
0x15e5   :  { %v2942_v23 = vsel %vm2926_vm5, %v2910_v19, 0.0  ;;  %v3104_v34 = vsel %vm7061_vm12, %v2941_v62, %v3071_v28  ;;  %vm7112_vm1 = vcmask 1043456   ;;  %v7066_v3 = vrot.slane %v6134_v40, 6 }
0x15e6   :  { %v3105_v48 = vsel %vm7061_vm12, %v2942_v23, %v3072_v60  ;;  %v3110_v13 = vsel %vm7112_vm1, %v3106_v30, %v3085_v25  ;;  %vm7113_vm15 = vmmov %vm7112_vm1  ;;  %v7064_v56 = vrot.slane %v6203_v41, 6  ;;  %v3575_v27 = vrot.slane %v6192_v15, 6 }
0x15e7   :  { %v3108_v16 = vsel %vm7113_vm15, %v3104_v34, %v3083_v10  ;;  %vm7114_vm9 = vmmov %vm7112_vm1  ;;  %v3581_v8 = vrot.slane %v3110_v13, 6  ;;  %v7062_v4 = vrot.slane %v6198_v5, 6  ;;  %v4712_v33 = vpack.i.bf16 %v6192_v15, %v3110_v13 }
0x15e8   :  { %v3109_v50 = vsel %vm7114_vm9, %v3105_v48, %v3084_v20  ;;  %v4672_v24 = vpack.i.bf16 %v3108_v16, %v6192_v15  ;;  %v3577_v18 = vrot.slane %v3108_v16, 6  ;;  %v6273_v45 = vsel %vm7061_vm12, %v7066_v3, %v3575_v27 }
0x15e9   :  { %v4677_v51 = vpack.i.bf16 %v3110_v13, %v3109_v50  ;;  %v3579_v22 = vrot.slane %v3109_v50, 6  ;;  %v6278_v57 = vsel %vm7061_vm12, %v7064_v56, %v3581_v8  ;;  %v4707_v36 = vpack.i.bf16 %v3109_v50, %v3108_v16 }
0x15ea   :  { %4673 = vrot.lane.b32.xlu0 %v4672_v24, %s4857_s11  ;;  %v6265_v2 = vsel %vm7061_vm12, %v7067_v53, %v3577_v18  ;;  %v4747_v31 = vpack.i.bf16 %v3108_v16, %v6203_v41  ;;  %v2754_v32 = vshra.s32 %v5997_v39, 4  ;;  %v2753_v1 = vshra.s32 %v5994_v7, 4 }
0x15eb   :  { %4678 = vrot.lane.b32.xlu1 %v4677_v51, %s4857_s11  ;;  %v6283_v38 = vsel %vm7061_vm12, %v7062_v4, %v3579_v22  ;;  %v2756_v55 = vshra.s32 %v6007_v6, 4 }
0x15ec   :  { %v2758_v43 = vand.u32 15, %v2754_v32 }
0x15ed   :  { %v2760_v28 = vand.u32 15, %v2756_v55 }
0x15ee   :  { %4683 = vrot.lane.b32.xlu0 %v4672_v24, %s4856_s10  ;;  %v3217_v58 = vadd.s32 4294967294, %v2758_v43  ;;  %v6372_v22 = vadd.s32 2, %v2758_v43  ;;  %v6374_v8 = vadd.s32 3, %v2758_v43 }
0x15ef   :  { %4688 = vrot.lane.b32.xlu1 %v4677_v51, %s4856_s10  ;;  %v6317_v30 = vadd.s32 4294967294, %v2760_v28  ;;  %v6321_v11 = vadd.s32 4294967293, %v2760_v28  ;;  %v6339_v34 = vadd.s32 4294967295, %v2760_v28 }
0x15f0   :  { %vm3221_vm6 = vcmp.ge.s32.totalorder %v3217_v58, 0  ;;  %vm3225_vm10 = vcmp.lt.s32.totalorder %v3217_v58, 16 }
0x15f1   :  { %vm6331_vm12 = vmand %vm3221_vm6, %vm3225_vm10  ;;  %vm7119_vm6 = vcmask 261120   ;;  %vm3159_vm15 = vcmp.ge.s32.totalorder %v6321_v11, 0  ;;  %vm7150_vm9 = vcmp.ge.s32.totalorder %v6317_v30, 0 }
0x15f2   :  { %4693 = vrot.lane.b32.xlu0 %v4672_v24, %s4848_s17  ;;  %vm7120_vm10 = vmmov %vm7119_vm6  ;;  %v6355_v24 = vadd.s32 2, %v2760_v28 }
0x15f3   :  { %4698 = vrot.lane.b32.xlu1 %v4677_v51, %s4848_s17 }
0x15f6   :  { %4703 = vrot.lane.b32.xlu0 %v4677_v51, %s4858_s12 }
0x15f7   :  { %4713 = vrot.lane.b32.xlu1 %v4712_v33, %s4859_s13  ;;  %v6376_v33 = vadd.s32 1, %v2758_v43 }
0x15fa   :  { %4708 = vrot.lane.b32.xlu0 %v4707_v36, %s4859_s13 }
0x15fb   :  { %4718 = vrot.lane.b32.xlu1 %v4717_v14, %s4856_s10 }
0x15fe   :  { %3452 = vrot.lane.b32.xlu0 %v3108_v16, %s4860_s14 }
0x15ff   :  { %4723 = vrot.lane.b32.xlu1 %v4717_v14, %s4857_s11 }
0x1602   :  { %4733 = vrot.lane.b32.xlu0 %v4732_v47, %s4859_s13 }
0x1603   :  { %4728 = vrot.lane.b32.xlu1 %v4717_v14, %s4848_s17  ;;  %v6298_v14 = vand.u32 15, %v2753_v1 }
0x1605   :  { %v3216_v12 = vadd.s32 4294967294, %v6298_v14  ;;  %v6307_v7 = vadd.s32 4294967293, %v6298_v14  ;;  %v6370_v27 = vadd.s32 2, %v6298_v14 }
0x1606   :  { %4743 = vrot.lane.b32.xlu0 %v4732_v47, %s4858_s12 }
0x1607   :  { %3454 = vrot.lane.b32.xlu1 %v3109_v50, %s4860_s14  ;;  %vm3220_vm2 = vcmp.ge.s32.totalorder %v3216_v12, 0  ;;  %vm3224_vm11 = vcmp.lt.s32.totalorder %v3216_v12, 16  ;;  %vm3156_vm0 = vcmp.ge.s32.totalorder %v6307_v7, 0  ;;  %vm3160_vm4 = vcmp.lt.s32.totalorder %v6307_v7, 16 }
0x1608   :  { %vm6343_vm7 = vmand %vm3220_vm2, %vm3224_vm11  ;;  %vm3163_vm2 = vcmp.lt.s32.totalorder %v6321_v11, 16  ;;  %v6396_v12 = vadd.s32 3, %v2760_v28 }
0x160a   :  { %4753 = vrot.lane.b32.xlu0 %v4732_v47, %s4860_s14  ;;  %v2755_v47 = vshra.s32 %v6004_v46, 4  ;;  %v6311_v46 = vadd.s32 4294967293, %v2758_v43 }
0x160b   :  { %4738 = vrot.lane.b32.xlu1 %v4737_v0, %s4859_s13 }
0x160c   :  { %v2759_v39 = vand.u32 15, %v2755_v47  ;;  %vm7129_vm1 = vcmp.lt.s32.totalorder %v6311_v46, 16 }
0x160e   :  { %3456 = vrot.lane.b32.xlu0 %v3110_v13, %s4860_s14  ;;  %v6309_v60 = vadd.s32 4294967294, %v2759_v39  ;;  %v6323_v19 = vadd.s32 4294967293, %v2759_v39  ;;  %v6337_v23 = vadd.s32 4294967295, %v2759_v39  ;;  %v6353_v50 = vadd.s32 2, %v2759_v39 }
0x160f   :  { %4748 = vrot.lane.b32.xlu1 %v4747_v31, %s4858_s12  ;;  %v6394_v58 = vadd.s32 3, %v2759_v39 }
0x1613   :  { %4758 = vrot.lane.b32.xlu1 %v4737_v0, %s4860_s14  ;;  %v3281_v0 = vadd.s32 4294967295, %v2758_v43 }
0x1615   :  { %vm3285_vm14 = vcmp.ge.s32.totalorder %v3281_v0, 0  ;;  %vm3289_vm3 = vcmp.lt.s32.totalorder %v3281_v0, 16  ;;  %v6403_v0 = vadd.s32 1, %v2760_v28 }
0x1617   :  { %3450 = vrot.lane.b32.xlu1 %v6192_v15, %s4860_s14  ;;  %v3280_v15 = vadd.s32 4294967295, %v6298_v14 }
0x1619   :  { %vm3284_vm13 = vcmp.ge.s32.totalorder %v3280_v15, 0  ;;  %vm3288_vm8 = vcmp.lt.s32.totalorder %v3280_v15, 16  ;;  %v6401_v15 = vadd.s32 1, %v6298_v14 }
0x1646   :  { %v6296_v44 = vpop.permute.xlu0 %4653 }
0x1647   :  { %v7065_v6 = vunpack.i.h.bf16 %v6296_v44  ;;  %v4655_v49 = vunpack.i.l.bf16 %v6296_v44 }
0x1649   :  { %v3200_v13 = vsel %vm7119_vm6, %v4655_v49, %v7065_v6  ;;  %v3214_v16 = vsel %vm7120_vm10, 0.0, %v4655_v49  ;;  %vm6363_vm6 = vmand %vm3284_vm13, %vm3288_vm8  ;;  %vm7125_vm8 = vcmask 130048   ;;  %v6405_v49 = vadd.s32 1, %v2759_v39 }
0x164a   :  { %v6303_v37 = vpop.permute.xlu0 %4658  ;;  %v3240_v36 = vsel %vm6343_vm7, %v3214_v16, 0.0  ;;  %v3241_v31 = vsel %vm6331_vm12, %v3200_v13, 0.0  ;;  %vm6384_vm13 = vmand %vm3285_vm14, %vm3289_vm3  ;;  %vm7130_vm14 = vcmp.ge.s32.totalorder %v6311_v46, 0  ;;  %v7206_v46 = vrot.slane %v6203_v41, 6 }
0x164b   :  { %vm7126_vm10 = vmmov %vm7125_vm8  ;;  %v7068_v43 = vunpack.i.h.bf16 %v6303_v37  ;;  %v4660_v55 = vunpack.i.l.bf16 %v6303_v37  ;;  %v6410_v13 = vrot.slane %v3240_v36, 2  ;;  %v6412_v16 = vrot.slane %v3241_v31, 2 }
0x164c   :  { %vm6422_vm3 = vmand %vm3156_vm0, %vm3160_vm4  ;;  %vm7133_vm0 = vcmask 392192  }
0x164d   :  { %vm6432_vm5 = vmand %vm7130_vm14, %vm7129_vm1 }
0x164e   :  { %v6315_v25 = vpop.permute.xlu0 %4663  ;;  %vm7134_vm4 = vmmov %vm7133_vm0 }
0x164f   :  { %v7063_v20 = vunpack.i.h.bf16 %v6315_v25  ;;  %v4665_v62 = vunpack.i.l.bf16 %v6315_v25  ;;  %v3150_v6 = vsel %vm7134_vm4, 0.0, %v4660_v55  ;;  %vm7139_vm1 = vmmov %vm7133_vm0  ;;  %vm7149_vm4 = vcmp.lt.s32.totalorder %v6317_v30, 16 }
0x1650   :  { %vm7140_vm14 = vmmov %vm7133_vm0 }
0x1651   :  { %v3264_v1 = vsel %vm7125_vm8, %v4665_v62, %v7063_v20  ;;  %v3278_v47 = vsel %vm7126_vm10, 0.0, %v4665_v62  ;;  %v6408_v62 = vadd.s32 3, %v6298_v14  ;;  %vm7135_vm8 = vcmp.lt.s32.totalorder %v6309_v60, 16 }
0x1652   :  { %v6367_v18 = vpop.permute.xlu1 %4668  ;;  %v3304_v4 = vsel %vm6363_vm6, %v3278_v47, 0.0  ;;  %v3305_v20 = vsel %vm6384_vm13, %v3264_v1, 0.0  ;;  %v3136_v1 = vsel %vm7133_vm0, %v4660_v55, %v7068_v43  ;;  %vm7136_vm10 = vcmp.ge.s32.totalorder %v6309_v60, 0 }
0x1653   :  { %vm6446_vm11 = vmand %vm7136_vm10, %vm7135_vm8 }
0x1654   :  { %vm6463_vm8 = vmand %vm3159_vm15, %vm3163_vm2  ;;  %vm7144_vm2 = vcmp.lt.s32.totalorder %v6323_v19, 16  ;;  %vm7077_vm15 = vcmask 785408  }
0x1655   :  { %vm7143_vm10 = vmmov %vm7133_vm0 }
0x165c   :  { %v4674_v14 = vpop.permute.xlu0 %4673 }
0x165d   :  { %v4679_v28 = vpop.permute.xlu1 %4678  ;;  %v4676_v36 = vunpack.i.h.bf16 %v4674_v14  ;;  %v4675_v31 = vunpack.i.l.bf16 %v4674_v14 }
0x165e   :  { %v4681_v47 = vunpack.i.h.bf16 %v4679_v28  ;;  %v4680_v56 = vunpack.i.l.bf16 %v4679_v28  ;;  %v6450_v28 = vrot.slane %v3304_v4, 4  ;;  %v6467_v4 = vrot.slane %v3305_v20, 4 }
0x165f   :  { %v3139_v53 = vsel %vm7139_vm1, %v4675_v31, %v4676_v36  ;;  %v3151_v43 = vsel %vm7140_vm14, 0.0, %v4675_v31  ;;  %vm7145_vm14 = vcmp.ge.s32.totalorder %v6323_v19, 0  ;;  %vm6492_vm1 = vmand %vm7150_vm9, %vm7149_vm4  ;;  %vm7156_vm9 = vcmask 261120  }
0x1660   :  { %v6455_v55 = vsel %vm7133_vm0, %v4680_v56, %v4681_v47  ;;  %v3180_v31 = vsel %vm6422_vm3, %v3151_v43, 0.0  ;;  %v6472_v47 = vsel %vm7143_vm10, %v4676_v36, %v4680_v56  ;;  %v4684_v3 = vpop.permute.xlu0 %4683  ;;  %v3181_v59 = vsel %vm6432_vm5, %v3139_v53, 0.0  ;;  %vm6482_vm0 = vmand %vm7145_vm14, %vm7144_vm2 }
0x1661   :  { %v4689_v14 = vpop.permute.xlu1 %4688  ;;  %vm7148_vm10 = vcmask 1045504   ;;  %v4686_v20 = vunpack.i.h.bf16 %v4684_v3  ;;  %v4685_v43 = vunpack.i.l.bf16 %v4684_v3  ;;  %vm7075_vm14 = vmmov 1   ;;  %vm7157_vm4 = vmmov %vm7156_vm9 }
0x1662   :  { %v3651_v56 = vsel %vm7148_vm10, %v3180_v31, %v6410_v13  ;;  %v4691_v36 = vunpack.i.h.bf16 %v4689_v14  ;;  %v4690_v19 = vunpack.i.l.bf16 %v4689_v14  ;;  %vm7153_vm2 = vmmov %vm7148_vm10 }
0x1663   :  { %v4369_v21 = vpack.c.bf16 %v3651_v56, %v3150_v6  ;;  %v3652_v29 = vsel %vm7153_vm2, %v3181_v59, %v6412_v16  ;;  %vm6501_vm10 = vmpackc.low %vm7075_vm14, %vm6432_vm5  ;;  %v3203_v31 = vsel %vm7156_vm9, %v4685_v43, %v4686_v20  ;;  %v3215_v6 = vsel %vm7157_vm4, 0.0, %v4685_v43 }
0x1664   :  { %v4366_v14 = vpack.c.bf16 %v3652_v29, %v3136_v1  ;;  %vm6513_vm2 = vmpackc.low %vm7075_vm14, %vm6422_vm3  ;;  %v3244_v56 = vsel %vm6343_vm7, %v3215_v6, 0.0  ;;  %v3245_v30 = vsel %vm6331_vm12, %v3203_v31, 0.0  ;;  %v3205_v39 = vsel %vm7157_vm4, %v4690_v19, %v4691_v36  ;;  %v4694_v1 = vpop.permute.xlu0 %4693 }
0x1665   :  { %vm7160_vm9 = vmmov %vm7157_vm4  ;;  %v4699_v43 = vpop.permute.xlu1 %4698  ;;  %v3519_v9 = vrot.slane %v3244_v56, 2  ;;  %v3521_v17 = vrot.slane %v3245_v30, 2  ;;  %v3247_v7 = vsel %vm6492_vm1, %v3205_v39, 0.0  ;;  %v4695_v36 = vunpack.i.l.bf16 %v4694_v1 }
0x1666   :  { %v3204_v29 = vsel %vm7160_vm9, %v4686_v20, %v4690_v19  ;;  %4368 = vmatprep.subr.msk.bf16.mxu0 %vm6501_vm10, %v4366_v14  ;;  %v6536_v48 = vrot.slane %v3247_v7, 2  ;;  %v4696_v20 = vunpack.i.h.bf16 %v4694_v1  ;;  %vm7161_vm3 = vcmp.lt.s32.totalorder %v6337_v23, 16 }
0x1667   :  { %v3246_v52 = vsel %vm6446_vm11, %v3204_v29, 0.0  ;;  %vm7162_vm9 = vcmp.ge.s32.totalorder %v6337_v23, 0  ;;  %4371 = vmatpush1.bf16.msk.msra.mxu0 %vm6513_vm2, %v4369_v21  ;;  %vm7165_vm10 = vcmp.lt.s32.totalorder %v6339_v34, 16  ;;  %vm7166_vm14 = vcmp.ge.s32.totalorder %v6339_v34, 0 }
0x1668   :  { %v6534_v10 = vrot.slane %v3246_v52, 2  ;;  %vm6542_vm4 = vmand %vm7162_vm9, %vm7161_vm3  ;;  %v4701_v3 = vunpack.i.h.bf16 %v4699_v43  ;;  %v4700_v30 = vunpack.i.l.bf16 %v4699_v43  ;;  %vm7169_vm12 = vcmask 1045504   ;;  %v6562_v14 = vpop.permute.xlu0 %4703 }
0x1669   :  { %vm6552_vm7 = vmand %vm7166_vm14, %vm7165_vm10  ;;  %v3522_v23 = vsel %vm7169_vm12, %v6412_v16, %v3521_v17  ;;  %vm7170_vm3 = vcmask 1043456   ;;  %vm7171_vm9 = vcmask 130048   ;;  %v4714_v59 = vpop.permute.xlu1 %4713 }
0x166a   :  { %v3656_v31 = vsel %vm7170_vm3, %v3521_v17, %v6467_v4  ;;  %v3267_v6 = vsel %vm7171_vm9, %v4695_v36, %v4696_v20  ;;  %vm7172_vm5 = vmmov %vm7171_vm9  ;;  %vm7180_vm9 = vcmp.lt.s32.totalorder %v6355_v24, 16 }
0x166b   :  { %v3279_v21 = vsel %vm7172_vm5, 0.0, %v4695_v36  ;;  %v4372_v34 = vpack.c.bf16 %v3656_v31, %v3522_v23  ;;  %vm7173_vm14 = vmmov %vm7169_vm12  ;;  %v3309_v16 = vsel %vm6384_vm13, %v3267_v6, 0.0  ;;  %vm7177_vm13 = vcmp.ge.s32.totalorder %v6353_v50, 0 }
0x166c   :  { %v3520_v7 = vsel %vm7173_vm14, %v6410_v13, %v3519_v9  ;;  %v3308_v56 = vsel %vm6363_vm6, %v3279_v21, 0.0  ;;  %vm7174_vm2 = vmmov %vm7172_vm5  ;;  %vm3418_vm5 = vcmp.lt.s32.totalorder %v6370_v27, 16  ;;  %v3553_v1 = vrot.slane %v3309_v16, 4  ;;  %v4709_v6 = vpop.permute.xlu0 %4708 }
0x166d   :  { %v3268_v29 = vsel %vm7174_vm2, %v4696_v20, %v4700_v30  ;;  %vm7175_vm12 = vmmov %vm7174_vm2  ;;  %v3551_v39 = vrot.slane %v3308_v56, 4  ;;  %vm7176_vm6 = vcmp.lt.s32.totalorder %v6353_v50, 16  ;;  %4373 = vmatprep.subr.bf16.mxu0 %v4372_v34  ;;  %vm7181_vm14 = vcmp.ge.s32.totalorder %v6355_v24, 0  ;;  %v4719_v21 = vpop.permute.xlu1 %4718 }
0x166e   :  { %v3269_v17 = vsel %vm7175_vm12, %v4700_v30, %v4701_v3  ;;  %v3310_v43 = vsel %vm6542_vm4, %v3268_v29, 0.0  ;;  %vm6582_vm3 = vmand %vm7177_vm13, %vm7176_vm6  ;;  %v7182_v36 = vmov 0  ;;  %v4706_v3 = vunpack.i.h.bf16 %v6562_v14 }
0x166f   :  { %v3311_v51 = vsel %vm6552_vm7, %v3269_v17, 0.0  ;;  %v6586_v13 = vrot.slane %v3310_v43, 4  ;;  %vm6594_vm2 = vmand %vm7181_vm14, %vm7180_vm9  ;;  %v7078_v50 = vunpack.i.l.bf16 %v6562_v14  ;;  %v4716_v30 = vunpack.i.h.bf16 %v4714_v59 }
0x1670   :  { %v6588_v20 = vrot.slane %v3311_v51, 4  ;;  %v7183_v36 = vsel %vm6594_vm2, 4294967295, %v7182_v36  ;;  %v4715_v23 = vunpack.i.l.bf16 %v4714_v59  ;;  %vm7184_vm13 = vcmask 1043456  }
0x1671   :  { %v3655_v31 = vsel %vm7184_vm13, %v3519_v9, %v6450_v28  ;;  %vm7185_vm9 = vmmov %vm7184_vm13  ;;  %v3409_v34 = vsel %vm7077_vm15, %v4706_v3, 0.0  ;;  %v3399_v56 = vsel %vm7077_vm15, %v7078_v50, %v4706_v3  ;;  %v4711_v59 = vunpack.i.h.bf16 %v4709_v6  ;;  %v6639_v50 = vpop.permute.xlu0 %3452 }
0x1672   :  { %v3554_v24 = vsel %vm7185_vm9, %v6467_v4, %v3553_v1  ;;  %v4374_v16 = vpack.c.bf16 %v3655_v31, %v3520_v7  ;;  %v3441_v9 = vsel %vm6594_vm2, %v3409_v34, 0.0  ;;  %v3440_v4 = vsel %vm6582_vm3, %v3399_v56, 0.0 }
0x1673   :  { %vm7186_vm9 = vcmask 916480   ;;  %v4710_v17 = vunpack.i.l.bf16 %v4709_v6  ;;  %v6623_v7 = vrot.slane %v3441_v9, 2  ;;  %v6625_v43 = vrot.slane %v3440_v4, 2  ;;  %v4724_v4 = vpop.permute.xlu1 %4723 }
0x1674   :  { %v6619_v29 = vsel %vm7186_vm9, %v4715_v23, 0.0  ;;  %4375 = vmatpush1.bf16.msra.mxu0 %v4374_v16  ;;  %vm7187_vm12 = vmmov %vm7186_vm9  ;;  %v4721_v3 = vunpack.i.h.bf16 %v4719_v21  ;;  %v4720_v6 = vunpack.i.l.bf16 %v4719_v21  ;;  %v7189_v56 = vrot.slane %v6139_v54, 6 }
0x1675   :  { %v6628_v51 = vsel %vm7187_vm12, %v4711_v59, %v4715_v23  ;;  %vm7188_vm10 = vmmov %vm7186_vm9  ;;  %v6634_v34 = vsel %vm7186_vm9, %v4710_v17, %v4711_v59  ;;  %vm7190_vm14 = vcmask 1041408   ;;  %vm7191_vm15 = vcmp.lt.s32.totalorder %v6376_v33, 16 }
0x1676   :  { %v6631_v31 = vsel %vm7188_vm10, %v4716_v30, %v4710_v17  ;;  %v3660_v9 = vsel %vm7190_vm14, %v3553_v1, %v7189_v56  ;;  %vm7192_vm12 = vcmp.ge.s32.totalorder %v6376_v33, 0  ;;  %vm7195_vm10 = vmmov %vm7184_vm13  ;;  %v7196_v21 = vrot.slane %v6134_v40, 6 }
0x1677   :  { %vm6645_vm6 = vmand %vm7192_vm12, %vm7191_vm15  ;;  %v4376_v30 = vpack.c.bf16 %v3660_v9, %v3554_v24  ;;  %v3552_v16 = vsel %vm7195_vm10, %v6450_v28, %v3551_v39  ;;  %v4726_v1 = vunpack.i.h.bf16 %v4724_v4  ;;  %v7198_v59 = vunpack.i.h.bf16 %v6296_v44 }
0x1678   :  { %vm7197_vm9 = vmmov %vm7190_vm14  ;;  %vm7199_vm14 = vcmask 261120   ;;  %v4725_v61 = vunpack.i.l.bf16 %v4724_v4  ;;  %vm7201_vm15 = vmmov 1   ;;  %v7208_v9 = vunpack.i.h.bf16 %v6303_v37 }
0x1679   :  { %v3659_v54 = vsel %vm7197_vm9, %v3551_v39, %v7196_v21  ;;  %v3201_v17 = vsel %vm7199_vm14, %v7198_v59, %v4720_v6  ;;  %vm7200_vm13 = vmmov %vm7199_vm14  ;;  %4377 = vmatprep.subr.bf16.mxu0 %v4376_v30  ;;  %v3374_v39 = vsel %vm6645_vm6, %v6634_v34, 0.0  ;;  %v4729_v21 = vpop.permute.xlu1 %4728  ;;  %vm7211_vm14 = vcmp.ge.s32.totalorder %v6370_v27, 0 }
0x167a   :  { %v3202_v56 = vsel %vm7200_vm13, %v4720_v6, %v4721_v3  ;;  %v4378_v33 = vpack.c.bf16 %v3659_v54, %v3552_v16  ;;  %vm6661_vm12 = vmpackc.low %vm7201_vm15, %vm6463_vm8  ;;  %v3242_v40 = vsel %vm6446_vm11, %v3201_v17, 0.0  ;;  %v6693_v16 = vpop.permute.xlu0 %4733  ;;  %v4731_v37 = vunpack.i.h.bf16 %v4729_v21 }
0x167b   :  { %v3243_v44 = vsel %vm6492_vm1, %v3202_v56, 0.0  ;;  %vm6674_vm13 = vmpackc.low %vm7201_vm15, %vm6482_vm0  ;;  %v3517_v3 = vrot.slane %v3242_v40, 2  ;;  %vm7209_vm1 = vcmask 392192   ;;  %v4736_v54 = vunpack.i.h.bf16 %v6693_v16 }
0x167c   :  { %vm7207_vm11 = vmmov %vm7197_vm9  ;;  %v3518_v6 = vrot.slane %v3243_v44, 2  ;;  %4379 = vmatpush1.bf16.msra.mxu0 %v4378_v33  ;;  %v3137_v4 = vsel %vm7209_vm1, %v7208_v9, %v4725_v61  ;;  %v4735_v59 = vunpack.i.l.bf16 %v6693_v16  ;;  %v4730_v17 = vunpack.i.l.bf16 %v4729_v21 }
0x167d   :  { %v6687_v53 = vsel %vm7207_vm11, %v6588_v20, %v7206_v46  ;;  %vm7210_vm9 = vmmov %vm7209_vm1  ;;  %v7216_v27 = vsel %vm6463_vm8, %v6455_v55, 0.0  ;;  %v7218_v56 = vsel %vm6482_vm0, %v6472_v47, 0.0  ;;  %vm7222_vm11 = vcmp.lt.s32.totalorder %v6403_v0, 16 }
0x167e   :  { %v3138_v30 = vsel %vm7210_vm9, %v4725_v61, %v4726_v1  ;;  %vm6699_vm10 = vmand %vm7211_vm14, %vm3418_vm5  ;;  %vm7217_vm14 = vcmask 1045504   ;;  %vm7223_vm5 = vcmp.ge.s32.totalorder %v6403_v0, 0  ;;  %vm7226_vm0 = vcmask 916480  }
0x167f   :  { %vm6708_vm9 = vmpackc.low %vm6645_vm6, %vm7201_vm15  ;;  %v3654_v1 = vsel %vm7217_vm14, %v7216_v27, %v3518_v6  ;;  %v3330_v60 = vsel %vm7226_vm0, %v4735_v59, %v4736_v54  ;;  %v7227_v47 = vunpack.i.h.bf16 %v6315_v25  ;;  %v6760_v27 = vpop.permute.xlu0 %4743  ;;  %vm7235_vm0 = vcmp.ge.s32.totalorder %v6374_v8, 0 }
0x1680   :  { %vm7219_vm1 = vmmov %vm7217_vm14  ;;  %vm7230_vm14 = vcmp.lt.s32.totalorder %v6401_v15, 16  ;;  %v4745_v52 = vunpack.i.l.bf16 %v6760_v27  ;;  %v7243_v24 = vrot.slane %v6198_v5, 6 }
0x1681   :  { %v3653_v33 = vsel %vm7219_vm1, %v7218_v56, %v3517_v3  ;;  %vm7220_vm6 = vmmov %vm7219_vm1 }
0x1682   :  { %v3526_v40 = vsel %vm7220_vm6, %v3518_v6, %v6536_v48  ;;  %vm7221_vm2 = vmmov %vm7219_vm1  ;;  %vm7228_vm6 = vcmask 130048   ;;  %v4380_v6 = vpack.c.bf16 %v3330_v60, %v6265_v2  ;;  %v4397_v21 = vpack.c.bf16 %v3653_v33, %v3137_v4 }
0x1683   :  { %v6728_v44 = vsel %vm7221_vm2, %v3517_v3, %v6534_v10  ;;  %vm6734_vm8 = vmand %vm7223_vm5, %vm7222_vm11  ;;  %v3265_v11 = vsel %vm7228_vm6, %v7227_v47, %v4730_v17  ;;  %v4394_v3 = vpack.c.bf16 %v3654_v1, %v3138_v30  ;;  %vm7231_vm11 = vcmp.ge.s32.totalorder %v6401_v15, 0  ;;  %v3455_v30 = vpop.permute.xlu1 %3454 }
0x1684   :  { %vm7229_vm2 = vmmov %vm7228_vm6  ;;  %v3306_v9 = vsel %vm6542_vm4, %v3265_v11, 0.0  ;;  %vm7234_vm1 = vcmp.lt.s32.totalorder %v6374_v8, 16  ;;  %vm7238_vm4 = vcmp.lt.s32.totalorder %v6372_v22, 16  ;;  %v4746_v8 = vunpack.i.h.bf16 %v6760_v27  ;;  %4382 = vmatprep.subr.msk.bf16.mxu0 %vm6708_vm9, %v4380_v6 }
0x1685   :  { %v3266_v46 = vsel %vm7229_vm2, %v4730_v17, %v4731_v37  ;;  %vm6751_vm5 = vmand %vm7231_vm11, %vm7230_vm14  ;;  %v3549_v37 = vrot.slane %v3306_v9, 4  ;;  %4396 = vmatprep.subr.msk.bf16.mxu1 %vm6661_vm12, %v4394_v3  ;;  %vm7242_vm14 = vcmask 654336   ;;  %vm7244_vm12 = vcmask 1041408  }
0x1686   :  { %v3307_v25 = vsel %vm6552_vm7, %v3266_v46, 0.0  ;;  %vm6766_vm6 = vmand %vm7235_vm0, %vm7234_vm1  ;;  %vm7239_vm7 = vcmp.ge.s32.totalorder %v6372_v22, 0  ;;  %4399 = vmatpush1.bf16.msk.msra.mxu1 %vm6674_vm13, %v4397_v21  ;;  %v3463_v4 = vsel %vm7242_vm14, %v6639_v50, %v3455_v30  ;;  %v3373_v22 = vsel %vm6751_vm5, %v6631_v31, 0.0  ;;  %v6814_v46 = vpop.permute.xlu0 %4753 }
0x1687   :  { %v3550_v2 = vrot.slane %v3307_v25, 4  ;;  %vm6776_vm2 = vmand %vm7239_vm7, %vm7238_vm4  ;;  %v3661_v17 = vsel %vm7244_vm12, %v6586_v13, %v7243_v24  ;;  %v3376_v28 = vsel %vm6734_vm8, %v6619_v29, 0.0  ;;  %v7245_v1 = vunpack.i.l.bf16 %v6367_v18  ;;  %v4739_v3 = vpop.permute.xlu1 %4738 }
0x1688   :  { %vm7246_vm13 = vcmask 785408   ;;  %v3504_v33 = vsel %vm6766_vm6, %v3463_v4, 0.0  ;;  %vm7248_vm11 = vcmask 1043456   ;;  %v4755_v21 = vunpack.i.l.bf16 %v6814_v46 }
0x1689   :  { %v3394_v56 = vsel %vm7246_vm13, %v7245_v1, %v4745_v52  ;;  %vm7247_vm9 = vmmov %vm7246_vm13  ;;  %v3658_v5 = vsel %vm7248_vm11, %v6536_v48, %v3550_v2  ;;  %v6812_v11 = vrot.slane %v3504_v33, 4  ;;  %v4756_v48 = vunpack.i.h.bf16 %v6814_v46 }
0x168a   :  { %v3395_v61 = vsel %vm7247_vm9, %v4745_v52, %v4746_v8  ;;  %v3434_v60 = vsel %vm6699_vm10, %v3394_v56, 0.0  ;;  %v4400_v6 = vpack.c.bf16 %v3658_v5, %v3526_v40  ;;  %vm7249_vm4 = vcmp.lt.s32.totalorder %v6394_v58, 16  ;;  %vm7253_vm12 = vmmov %vm7248_vm11  ;;  %v3457_v5 = vpop.permute.xlu0 %3456 }
0x168b   :  { %v3435_v47 = vsel %vm6776_vm2, %v3395_v61, 0.0  ;;  %v6818_v9 = vrot.slane %v3434_v60, 2  ;;  %vm7250_vm7 = vcmp.ge.s32.totalorder %v6394_v58, 0  ;;  %v4741_v40 = vunpack.i.h.bf16 %v4739_v3  ;;  %vm7258_vm1 = vmmov %vm7253_vm12  ;;  %v4749_v60 = vpop.permute.xlu1 %4748 }
0x168c   :  { %v3600_v25 = vrot.slane %v3435_v47, 2  ;;  %vm6826_vm14 = vmand %vm7250_vm7, %vm7249_vm4  ;;  %v4740_v4 = vunpack.i.l.bf16 %v4739_v3  ;;  %4401 = vmatprep.subr.bf16.mxu1 %v4400_v6  ;;  %v3657_v24 = vsel %vm7253_vm12, %v6534_v10, %v3549_v37  ;;  %vm7254_vm13 = vcmp.lt.s32.totalorder %v6396_v12, 16 }
0x168d   :  { %vm7255_vm9 = vcmp.ge.s32.totalorder %v6396_v12, 0  ;;  %v3558_v58 = vsel %vm7258_vm1, %v3550_v2, %v6588_v20  ;;  %vm7259_vm4 = vcmask 654336   ;;  %v4402_v61 = vpack.c.bf16 %v3657_v24, %v6728_v44  ;;  %vm6852_vm7 = vmpackc.low %vm6751_vm5, %vm7201_vm15 }
0x168e   :  { %vm6836_vm11 = vmand %vm7255_vm9, %vm7254_vm13  ;;  %v3460_v56 = vsel %vm7259_vm4, %v4755_v21, %v4756_v48  ;;  %v4404_v10 = vpack.c.bf16 %v6687_v53, %v3558_v58  ;;  %vm7266_vm4 = vcmp.lt.s32.totalorder %v6405_v49, 16  ;;  %vm7267_vm0 = vcmp.ge.s32.totalorder %v6405_v49, 0 }
0x168f   :  { %vm7262_vm12 = vmmov %vm7258_vm1  ;;  %v3500_v2 = vsel %vm6766_vm6, %v3460_v56, 0.0  ;;  %vm7263_vm1 = vcmask 916480   ;;  %4403 = vmatpush1.bf16.msra.mxu1 %v4402_v61  ;;  %vm7270_vm6 = vcmask 654336   ;;  %v4751_v3 = vunpack.i.h.bf16 %v4749_v60  ;;  %v4759_v61 = vpop.permute.xlu1 %4758 }
0x1690   :  { %v3556_v20 = vsel %vm7262_vm12, %v3549_v37, %v6586_v13  ;;  %v3329_v33 = vsel %vm7263_vm1, %v4741_v40, %v4735_v59  ;;  %vm7264_vm13 = vmmov %vm7263_vm1  ;;  %v6875_v15 = vrot.slane %v3500_v2, 4  ;;  %v3464_v37 = vsel %vm7270_vm6, %v3455_v30, %v3457_v5  ;;  %4405 = vmatprep.subr.bf16.mxu1 %v4404_v10 }
0x1691   :  { %v3331_v53 = vsel %vm7264_vm13, %v4736_v54, %v4740_v4  ;;  %vm7265_vm9 = vmmov %vm7263_vm1  ;;  %v4383_v59 = vpack.c.bf16 %v3329_v33, %v6273_v45  ;;  %v4750_v6 = vunpack.i.l.bf16 %v4749_v60  ;;  %v3505_v49 = vsel %vm6826_vm14, %v3464_v37, 0.0 }
0x1692   :  { %v3343_v44 = vsel %vm7265_vm9, %v4740_v4, 0.0  ;;  %vm6871_vm12 = vmand %vm7267_vm0, %vm7266_vm4  ;;  %v4411_v54 = vpack.c.bf16 %v3331_v53, %v6283_v38  ;;  %v4406_v45 = vpack.c.bf16 %v3661_v17, %v3556_v20  ;;  %v6898_v30 = vrot.slane %v3505_v49, 4 }
0x1693   :  { %v4408_v16 = vpack.c.bf16 %v3343_v44, %v6278_v57  ;;  %vm7271_vm1 = vmmov %vm7270_vm6  ;;  %4385 = vmatpush1.bf16.msk.msra.mxu0 %vm6852_vm7, %v4383_v59  ;;  %v3375_v38 = vsel %vm6871_vm12, %v6628_v51, 0.0  ;;  %v7274_v24 = vunpack.i.h.bf16 %v6367_v18  ;;  %vm7275_vm13 = vcmask 785408  }
0x1694   :  { %v3474_v47 = vsel %vm7271_vm1, %v3457_v5, 0.0  ;;  %vm6891_vm0 = vmpackc.low %vm6734_vm8, %vm7201_vm15  ;;  %v7276_v17 = vunpack.i.l.bf16 %v6562_v14  ;;  %4407 = vmatpush1.bf16.msra.mxu1 %v4406_v45  ;;  %vm7280_vm6 = vnez %v7183_v36  ;;  %v4761_v19 = vunpack.i.h.bf16 %v4759_v61  ;;  %v3451_v36 = vpop.permute.xlu1 %3450 }
0x1695   :  { %v3506_v40 = vsel %vm6836_vm11, %v3474_v47, 0.0  ;;  %v3397_v58 = vsel %vm7275_vm13, %v7274_v24, %v4751_v3  ;;  %vm7277_vm7 = vmmov %vm7275_vm13  ;;  %4410 = vmatprep.subr.msk.bf16.mxu1 %vm6891_vm0, %v4408_v16  ;;  %vm7282_vm1 = vcmp.ge.s32.totalorder %v6408_v62, 0 }
0x1696   :  { %v6900_v4 = vrot.slane %v3506_v40, 4  ;;  %v3398_v56 = vsel %vm7277_vm7, %v4751_v3, %v7276_v17  ;;  %v3438_v10 = vsel %vm6699_vm10, %v3397_v58, 0.0  ;;  %vm7278_vm9 = vmmov %vm7277_vm7 }
0x1697   :  { %v3439_v12 = vsel %vm6776_vm2, %v3398_v56, 0.0  ;;  %v3396_v51 = vsel %vm7278_vm9, %v4746_v8, %v4750_v6  ;;  %vm7279_vm4 = vmmov %vm7277_vm7  ;;  %v3603_v18 = vrot.slane %v3438_v10, 2  ;;  %v4760_v8 = vunpack.i.l.bf16 %v4759_v61 }
0x1698   :  { %v3408_v20 = vsel %vm7279_vm4, %v4750_v6, 0.0  ;;  %v3605_v2 = vrot.slane %v3439_v12, 2  ;;  %v3436_v14 = vsel %vm6582_vm3, %v3396_v51, 0.0  ;;  %vm4412_vm10 = vmpackc.low %vm6871_vm12, %vm7201_vm15  ;;  %vm7281_vm2 = vcmp.lt.s32.totalorder %v6408_v62, 16 }
0x1699   :  { %v3437_v33 = vsel %vm7280_vm6, %v3408_v20, 0.0  ;;  %v3601_v41 = vrot.slane %v3436_v14, 2  ;;  %vm6929_vm13 = vmand %vm7282_vm1, %vm7281_vm2  ;;  %vm7285_vm3 = vcmask 1045504   ;;  %vm7290_vm9 = vcmask 654336   ;;  %4413 = vmatpush1.bf16.msk.msra.mxu1 %vm4412_vm10, %v4411_v54 }
0x169a   :  { %v3602_v27 = vrot.slane %v3437_v33, 2  ;;  %v3606_v53 = vsel %vm7285_vm3, %v3600_v25, %v3605_v2  ;;  %vm7287_vm15 = vmmov %vm7285_vm3  ;;  %v3461_v60 = vsel %vm7290_vm9, %v4756_v48, %v4760_v8 }
0x169b   :  { %v3664_v44 = vsel %vm7287_vm15, %v3374_v39, %v3600_v25  ;;  %vm7288_vm12 = vmmov %vm7285_vm3  ;;  %v3501_v0 = vsel %vm6826_vm14, %v3461_v60, 0.0 }
0x169c   :  { %v3604_v5 = vsel %vm7288_vm12, %v6818_v9, %v3603_v18  ;;  %vm7289_vm7 = vmmov %vm7285_vm3  ;;  %v3633_v25 = vrot.slane %v3501_v0, 4  ;;  %v7310_v0 = vld [vmem:[#allocation7_spill] sm:$0xff] }
0x169d   :  { %v3663_v62 = vsel %vm7289_vm7, %v3373_v22, %v6818_v9  ;;  %vm7291_vm4 = vmmov %vm7290_vm9  ;;  %vm7306_vm9 = vcmask 1041408  }
0x169e   :  { %v3473_v23 = vsel %vm7291_vm4, %v4760_v8, 0.0  ;;  %vm7292_vm6 = vmmov %vm7291_vm4  ;;  %v4388_v1 = vpack.c.bf16 %v3604_v5, %v3663_v62  ;;  %v3848_v8 = vsub.s32 0, %v4926_v26 }
0x169f   :  { %v3459_v34 = vsel %vm7292_vm6, %v4761_v19, %v4755_v21  ;;  %vm7293_vm2 = vmmov %vm7291_vm4  ;;  %v3502_v31 = vsel %vm6836_vm11, %v3473_v23, 0.0  ;;  %v4386_v21 = vpack.c.bf16 %v3606_v53, %v3664_v44  ;;  %vm7296_vm11 = vcmask 1043456  }
0x16a0   :  { %v3462_v39 = vsel %vm7293_vm2, %v3451_v36, %v6639_v50  ;;  %v3499_v22 = vsel %vm6929_vm13, %v3459_v34, 0.0  ;;  %v3634_v48 = vrot.slane %v3502_v31, 4  ;;  %vm7294_vm5 = vmmov %vm7285_vm3  ;;  %vm3672_vm6 = vcmask 801792  }
0x16a1   :  { %v3503_v9 = vsel %vm6929_vm13, %v3462_v39, 0.0  ;;  %v3631_v46 = vrot.slane %v3499_v22, 4  ;;  %v3610_v50 = vsel %vm7294_vm5, %v3602_v27, %v6623_v7  ;;  %vm7295_vm14 = vmmov %vm7285_vm3  ;;  %4387 = vmatprep.subr.bf16.mxu0 %v4386_v21  ;;  %v7311_v22 = vld [vmem:[#allocation5_spill] sm:$0xff] }
0x16a2   :  { %v3635_v13 = vrot.slane %v3503_v9, 4  ;;  %v3666_v52 = vsel %vm7295_vm14, %v3376_v28, %v3602_v27  ;;  %vm7297_vm10 = vmmov %vm7285_vm3  ;;  %4389 = vmatpush1.bf16.msra.mxu0 %v4388_v1  ;;  %v7317_v1 = vld [vmem:[#allocation2_spill] sm:$0xff] }
0x16a3   :  { %v4414_v16 = vpack.c.bf16 %v3610_v50, %v3666_v52  ;;  %v3608_v54 = vsel %vm7297_vm10, %v3601_v41, %v6625_v43  ;;  %vm7298_vm1 = vmmov %vm7285_vm3  ;;  %v7316_v50 = vld [vmem:[#allocation3_spill] sm:$0xff] }
0x16a4   :  { %v3636_v59 = vsel %vm7296_vm11, %v3631_v46, %v3635_v13  ;;  %v3665_v37 = vsel %vm7298_vm1, %v3375_v38, %v3601_v41  ;;  %vm7299_vm13 = vmmov %vm7296_vm11 }
0x16a5   :  { %v4416_v47 = vpack.c.bf16 %v3608_v54, %v3665_v37  ;;  %v3638_v3 = vsel %vm7299_vm13, %v6875_v15, %v6812_v11  ;;  %vm7300_vm3 = vmmov %vm7296_vm11  ;;  %4415 = vmatprep.subr.bf16.mxu1 %v4414_v16  ;;  %v7318_v16 = vld [vmem:[#allocation4_spill] sm:$0xff] }
0x16a6   :  { %v3668_v29 = vsel %vm7300_vm3, %v3605_v2, %v6875_v15  ;;  %vm7301_vm8 = vmmov %vm7300_vm3 }
0x16a7   :  { %v3642_v55 = vsel %vm7301_vm8, %v3634_v48, %v6900_v4  ;;  %v4390_v28 = vpack.c.bf16 %v3638_v3, %v3668_v29  ;;  %vm7302_vm0 = vmmov %vm7300_vm3  ;;  %4417 = vmatpush1.bf16.msra.mxu1 %v4416_v47 }
0x16a8   :  { %v3670_v6 = vsel %vm7302_vm0, %v6623_v7, %v3634_v48  ;;  %vm7303_vm15 = vmmov %vm7302_vm0  ;;  %v3671_v7 = vld [vmem:[%s7051_s3] sm:$0x1] }
0x16a9   :  { %v3640_v49 = vsel %vm7303_vm15, %v3633_v25, %v6898_v30  ;;  %v4418_v40 = vpack.c.bf16 %v3642_v55, %v3670_v6  ;;  %vm7304_vm12 = vmmov %vm7302_vm0  ;;  %4391 = vmatprep.subr.bf16.mxu0 %v4390_v28 }
0x16aa   :  { %v3669_v45 = vsel %vm7304_vm12, %v6625_v43, %v3633_v25  ;;  %vm7305_vm7 = vmmov %vm7302_vm0  ;;  %v7312_v25 = vld [vmem:[#allocation9_spill] sm:$0xff] }
0x16ab   :  { %v3667_v57 = vsel %vm7305_vm7, %v3603_v18, %v3631_v46  ;;  %v4420_v15 = vpack.c.bf16 %v3640_v49, %v3669_v45  ;;  %4419 = vmatprep.subr.bf16.mxu1 %v4418_v40  ;;  %vm7307_vm4 = vmmov %vm7306_vm9 }
0x16ac   :  { %v4392_v38 = vpack.c.bf16 %v3636_v59, %v3667_v57  ;;  %vm7308_vm2 = vmmov %vm7307_vm4 }
0x16ad   :  { %4421 = vmatpush1.bf16.msra.mxu1 %v4420_v15  ;;  %vm7309_vm5 = vmmov %vm7308_vm2 }
0x16ae   :  { %4393 = vmatpush1.bf16.msra.mxu0 %v4392_v38  ;;  %4003 = vmatprep.subr.msk.mxu1 %vm7307_vm4, %v6900_v4 }
0x16af   :  { %3996 = vmatprep.subr.msk.mxu0 %vm7306_vm9, %v6812_v11 }
0x16b1   :  { %4004 = vmatpush1.msk.msra.mxu1 %vm7309_vm5, %v6898_v30 }
0x16b2   :  { %3997 = vmatpush1.msk.msra.mxu0 %vm7308_vm2, %v3635_v13  ;;  %4005 = vmatmul.mubr.msk.f32.vlgmr.msra.gmra.mrb[108].mxu1 %vm3672_vm6, %v3671_v7  ;;  %v7315_v13 = vld [vmem:[#allocation10_spill] sm:$0xff] }
0x16b3   :  { %3998 = vmatmul.mubr.msk.f32.vlgmr.msra.gmra.mrb[108].mxu0 %vm3672_vm6, %v3671_v7 }
0x1785   :  { %v3821_v24 = vpop.f32.mrb[108].mxu1 }
0x1786   :  { %v3750_v43 = vpop.f32.mrb[108].mxu0  ;;  %v3828_v11 = vsub.f32 0.0, %v3821_v24  ;;  %v3823_v56 = vpop.f32.mrb[109].mxu1 }
0x1787   :  { %v3826_v58 = vsub.f32 0.0, %v3750_v43  ;;  %v3752_v17 = vpop.f32.mrb[109].mxu0  ;;  %v3829_v10 = vsub.f32 0.0, %v3823_v56 }
0x1788   :  { %v3827_v61 = vsub.f32 0.0, %v3752_v17  ;;  %v3834_v12 = vmul.f32 1.442695, %v3828_v11 }
0x1789   :  { %v3830_v4 = vmul.f32 1.442695, %v3826_v58  ;;  %v3836_v20 = vmul.f32 1.442695, %v3829_v10 }
0x178a   :  { %v3832_v51 = vmul.f32 1.442695, %v3827_v61 }
0x178b   :  { %4816 = vpow2.f32 %v3830_v4 }
0x178c   :  { %4818 = vpow2.f32 %v3834_v12 }
0x178d   :  { %4820 = vpow2.f32 %v3836_v20 }
0x178e   :  { %4822 = vpow2.f32 %v3832_v51 }
0x1795   :  { %v4817_v18 = vpop.eup %4816 }
0x1796   :  { %v4819_v30 = vpop.eup %4818  ;;  %v3838_v2 = vadd.f32 1.0, %v4817_v18 }
0x1797   :  { %v4821_v14 = vpop.eup %4820  ;;  %v3840_v33 = vadd.f32 1.0, %v4819_v30 }
0x1798   :  { %v4823_v41 = vpop.eup %4822  ;;  %4824 = vrcp.f32 %v3838_v2  ;;  %v3841_v27 = vadd.f32 1.0, %v4821_v14 }
0x1799   :  { %4826 = vrcp.f32 %v3840_v33  ;;  %v3839_v19 = vadd.f32 1.0, %v4823_v41 }
0x179a   :  { %4828 = vrcp.f32 %v3841_v27 }
0x179b   :  { %4830 = vrcp.f32 %v3839_v19 }
0x17a2   :  { %v4825_v32 = vpop.eup %4824 }
0x17a3   :  { %v4827_v36 = vpop.eup %4826  ;;  %v3849_v53 = vrot.slane %v4825_v32, %v3848_v8 }
0x17a4   :  { %v4829_v44 = vpop.eup %4828  ;;  %v3869_v5 = vrot.slane %v4827_v36, %v3848_v8 }
0x17a5   :  { %v4831_v62 = vpop.eup %4830  ;;  %v3854_v60 = vmul.f32 %v3849_v53, %v5890_v63  ;;  %v3856_v23 = vmul.f32 %v3849_v53, %v5880_v35  ;;  %v3858_v34 = vmul.f32 %v3849_v53, %v5904_v42  ;;  %v3873_v39 = vrot.slane %v4829_v44, %v3848_v8  ;;  %v7313_v35 = vld [vmem:[#allocation8_spill] sm:$0xff]  ;;  %v7314_v42 = vld [vmem:[#allocation6_spill] sm:$0xff] }
0x17a6   :  { %v3874_v31 = vmul.f32 %v3869_v5, %v7310_v0  ;;  %v3876_v9 = vmul.f32 %v3869_v5, %v7311_v22  ;;  %v3878_v48 = vmul.f32 %v3869_v5, %v7312_v25  ;;  %v3853_v26 = vrot.slane %v4831_v62, %v3848_v8 }
0x17a7   :  { %3860 = vst [vmem:[%s7052_s4] sm:$0xff] %v3854_v60  ;;  %3862 = vst [vmem:[%s7052_s4 + $0x10] sm:$0xff] %v3856_v23  ;;  %v3875_v63 = vmul.f32 %v3873_v39, %v7313_v35  ;;  %v3877_v46 = vmul.f32 %v3873_v39, %v7314_v42  ;;  %v3879_v21 = vmul.f32 %v3873_v39, %v7315_v13 }
0x17a8   :  { %3864 = vst [vmem:[%s7052_s4 + $0x20] sm:$0xff] %v3858_v34  ;;  %3880 = vst [vmem:[%s7052_s4 + $0x30] sm:$0xff] %v3874_v31  ;;  %v3855_v52 = vmul.f32 %v3853_v26, %v7316_v50  ;;  %v3857_v59 = vmul.f32 %v3853_v26, %v7317_v1  ;;  %v3859_v54 = vmul.f32 %v3853_v26, %v7318_v16 }
0x17a9   :  { %3882 = vst [vmem:[%s7052_s4 + $0x40] sm:$0xff] %v3876_v9  ;;  %3884 = vst [vmem:[%s7052_s4 + $0x50] sm:$0xff] %v3878_v48 }
0x17aa   :  { %3881 = vst [vmem:[%s7052_s4 + $0x38] sm:$0xff] %v3875_v63  ;;  %3883 = vst [vmem:[%s7052_s4 + $0x48] sm:$0xff] %v3877_v46 }
0x17ab   :  { %3885 = vst [vmem:[%s7052_s4 + $0x58] sm:$0xff] %v3879_v21  ;;  %3861 = vst [vmem:[%s7052_s4 + $0x8] sm:$0xff] %v3855_v52 }
0x17ac   :  { %3863 = vst [vmem:[%s7052_s4 + $0x18] sm:$0xff] %v3857_v59  ;;  %3865 = vst [vmem:[%s7052_s4 + $0x28] sm:$0xff] %v3859_v54 }

</bundles_post_ra>
